<compile_context>
chip_gen: v5e
topology: v5e:2x2
jax: 0.10.0
libtpu: 0.0.40
codegen_flags: <defaults>
</compile_context>

<pallas_src>
import jax
import jax.numpy as jnp
from jax.experimental import pallas as pl
from jax.experimental.pallas import tpu as pltpu

EPS = 1e-5
SLOPE = 0.01  # nn.LeakyReLU() default negative_slope


def _make_kernel(C, N, H, W, WP, L, LW, M0):
    CN = C * N
    INV_CNT = 1.0 / float(N * H * W)
    taps = [(dh, dw, (dh - 1) * WP + (dw - 1)) for dh in range(3) for dw in range(3)]
    GAMMA_COL = C * 9
    BETA_COL = C * 9 + 1

    def kernel(xp_ref, w1_ref, w2_ref, o_ref, bcast_ref, h1s_ref):
        def leaky(v):
            return jnp.where(v >= 0, v, SLOPE * v)

        # ---- hoisted index helpers (computed once, VPU/XLU) -----------------
        sub = jax.lax.broadcasted_iota(jnp.int32, (CN, 1), 0)  # sublane index

        def rows_ind(rows):
            m = sub == rows[0]
            for r in rows[1:]:
                m = m | (sub == r)
            return m.astype(jnp.float32)

        # batch-n rows {k*N + n} and output-channel-group rows {co*N + n}
        ind_b = [rows_ind([k * N + n for k in range(C)]) for n in range(N)]
        ind_g = [rows_ind([co * N + n for n in range(N)]) for co in range(C)]

        # interior mask of the flattened padded plane (1 at real pixels,
        # 0 at the padding ring); float-floor row index avoids integer div.
        lane = jax.lax.broadcasted_iota(jnp.int32, (CN, L), 1)
        rowi = jnp.floor((lane.astype(jnp.float32) + 0.5) * (1.0 / WP)).astype(jnp.int32)
        coli = lane - rowi * WP
        interior = (rowi >= 1) & (rowi <= H) & (coli >= 1) & (coli <= W)

        def build_bcast(src_ref, src_width, dst_start, dst_width):
            # For each input channel ci, build a (CN, width) slab whose sublane
            # r = co*N + n holds channel ci / batch n data, and store it into
            # bcast_ref[ci].  The sublane block-broadcast is done with indicator
            # FMAs on (1, width) row reads (no cross-sublane reshape/relayout).
            for ci in range(C):
                bci = ind_b[0] * src_ref[ci * N + 0:ci * N + 1, :src_width]
                for n in range(1, N):
                    bci = bci + ind_b[n] * src_ref[ci * N + n:ci * N + n + 1, :src_width]
                bcast_ref[ci, :, pl.ds(dst_start, dst_width)] = bci

        def conv(w_ref):
            # 3x3 'same' conv on flattened padded planes: 9 static lane-window
            # reads per input channel from the broadcast scratch + C*9 dense
            # (CN, L) FMAs with per-sublane weight columns.
            acc = jnp.zeros((CN, L), jnp.float32)
            for ci in range(C):
                base = ci * 9
                for t, (dh, dw, off) in enumerate(taps):
                    sh = bcast_ref[ci, :, pl.ds(M0 + off, L)]          # (CN, L)
                    wcol = w_ref[:, base + t:base + t + 1]             # (CN, 1)
                    acc = acc + wcol * sh
            return acc

        def batchnorm(acc, w_ref):
            # training-mode BN: batch stats over N*H*W interior positions,
            # computed from the accumulator while it is still live in vregs.
            gamma = w_ref[:, GAMMA_COL:GAMMA_COL + 1]                  # (CN, 1)
            beta = w_ref[:, BETA_COL:BETA_COL + 1]                     # (CN, 1)

            masked = jnp.where(interior, acc, 0.0)
            s_row = jnp.sum(masked, axis=1, keepdims=True)             # (CN, 1)
            mean_vec = jnp.zeros((CN, 1), jnp.float32)
            for co in range(C):
                m = jnp.sum(ind_g[co] * s_row, keepdims=True) * INV_CNT   # (1,1)
                mean_vec = mean_vec + m * ind_g[co]

            d = acc - mean_vec
            d2 = jnp.where(interior, d * d, 0.0)
            v_row = jnp.sum(d2, axis=1, keepdims=True)                 # (CN, 1)
            var_vec = jnp.zeros((CN, 1), jnp.float32)
            for co in range(C):
                v = jnp.sum(ind_g[co] * v_row, keepdims=True) * INV_CNT   # (1,1)
                var_vec = var_vec + v * ind_g[co]

            return d * (jax.lax.rsqrt(var_vec + EPS) * gamma) + beta

        # ---- CBL1: conv -> BN -> LeakyReLU ----------------------------------
        # broadcast planes for layer 1 (full LW width: zero margins come from
        # the wrapper-padded input, so conv2's margins stay zero afterwards).
        build_bcast(xp_ref, LW, 0, LW)
        h1 = leaky(batchnorm(conv(w1_ref), w1_ref))

        # stage masked h1 (zero ring = conv2 'same' padding) and rebuild the
        # per-channel broadcast planes; margins keep their layer-1 zeros.
        h1s_ref[...] = jnp.where(interior, h1, 0.0)
        build_bcast(h1s_ref, L, M0, L)

        # ---- CBL2: conv -> BN (identity activation) -------------------------
        h2 = batchnorm(conv(w2_ref), w2_ref)

        # ---- residual add + LeakyReLU, sublane/lane-dense store -------------
        xc = xp_ref[:, pl.ds(M0, L)]
        o_ref[:, pl.ds(0, L)] = leaky(xc + h2)
        o_ref[:, pl.ds(L, LW - L)] = jnp.zeros((CN, LW - L), jnp.float32)

    return kernel


def _pack_cbl(w_oihw, gamma, beta, N):
    # (C_out, C_in, 3, 3) conv weights + BN affine params -> one (C*N, 128) VMEM
    # tile: row r = co*N + n; cols [ci*9 + kh*3 + kw] = w[co,ci,kh,kw],
    # col C*9 = gamma[co], col C*9+1 = beta[co].
    C = w_oihw.shape[0]
    assert C * 9 + 2 <= 128, "VPU conv path only packs weights for small C"
    cols = jnp.concatenate(
        [w_oihw.reshape(C, C * 9), gamma[:, None], beta[:, None]], axis=1)
    tile = jnp.repeat(cols, N, axis=0)                              # (C*N, C*9+2)
    return jnp.pad(tile, ((0, 0), (0, 128 - tile.shape[1])))        # (C*N, 128)


def resblock_forward(x_nchw, params):
    x = x_nchw.astype(jnp.float32)
    N, C, H, W = x.shape
    CN = C * N
    HP, WP = H + 2, W + 2
    L = HP * WP                               # flattened padded plane length
    M0 = WP + 1                               # largest |3x3 tap offset|
    LW = pl.cdiv(M0 + L + M0, 128) * 128      # lane-dense buffer width

    # Layout plumbing (fused into this jit): channel-major sublane packing
    # (sublane = c*N + n), zero-padded plane flattened on the lane axis with an
    # M0-lane margin for the shifted conv reads.
    x_cn = jnp.transpose(x, (1, 0, 2, 3))                           # (C,N,H,W)
    xp = jnp.pad(x_cn, ((0, 0), (0, 0), (1, 1), (1, 1)))            # (C,N,HP,WP)
    xbuf = jnp.pad(xp.reshape(CN, L), ((0, 0), (M0, LW - M0 - L)))  # (CN,LW)

    w1_tile = _pack_cbl(params["w1_oihw"], params["g1"], params["b1"], N)
    w2_tile = _pack_cbl(params["w2_oihw"], params["g2"], params["b2"], N)

    kernel = _make_kernel(C, N, H, W, WP, L, LW, M0)

    out_flat = pl.pallas_call(
        kernel,
        out_shape=jax.ShapeDtypeStruct((CN, LW), jnp.float32),
        grid=(1,),
        in_specs=[
            pl.BlockSpec((CN, LW), lambda i: (0, 0)),    # packed activation planes
            pl.BlockSpec((CN, 128), lambda i: (0, 0)),   # CBL1 weights + gamma/beta
            pl.BlockSpec((CN, 128), lambda i: (0, 0)),   # CBL2 weights + gamma/beta
        ],
        out_specs=pl.BlockSpec((CN, LW), lambda i: (0, 0)),
        scratch_shapes=[
            pltpu.VMEM((C, CN, LW), jnp.float32),   # per-input-channel broadcast planes
            pltpu.VMEM((CN, L), jnp.float32),       # masked h1 staging for layer 2
        ],
        compiler_params=pltpu.CompilerParams(dimension_semantics=("arbitrary",)),
    )(xbuf, w1_tile, w2_tile)

    out = out_flat[:, :L].reshape(C, N, HP, WP)[:, :, 1:H + 1, 1:W + 1]
    return jnp.transpose(out, (1, 0, 2, 3))                          # -> NCHW


def make_params(key, c):
    k1, k2 = jax.random.split(key)
    # PyTorch conv weight layout is (C_out, C_in, kh, kw)
    w1_oihw = 0.1 * jax.random.normal(k1, (c, c, 3, 3), jnp.float32)
    w2_oihw = 0.1 * jax.random.normal(k2, (c, c, 3, 3), jnp.float32)
    return {
        "w1_oihw": w1_oihw,
        "w2_oihw": w2_oihw,
        # HWIO copies for the plain-JAX reference
        "w1_hwio": jnp.transpose(w1_oihw, (2, 3, 1, 0)),
        "w2_hwio": jnp.transpose(w2_oihw, (2, 3, 1, 0)),
        # BatchNorm2d defaults: weight=1, bias=0
        "g1": jnp.ones((c,), jnp.float32),
        "b1": jnp.zeros((c,), jnp.float32),
        "g2": jnp.ones((c,), jnp.float32),
        "b2": jnp.zeros((c,), jnp.float32),
    }


def ref_forward(x_nchw, p):
    # plain-JAX reference of the same math (correctness check)
    x = jnp.transpose(x_nchw, (0, 2, 3, 1)).astype(jnp.float32)

    def conv(v, w_hwio):
        return jax.lax.conv_general_dilated(
            v, w_hwio, (1, 1), ((1, 1), (1, 1)),
            dimension_numbers=("NHWC", "HWIO", "NHWC"))

    def bn(v, g, b):
        m = jnp.mean(v, axis=(0, 1, 2), keepdims=True)
        var = jnp.mean((v - m) ** 2, axis=(0, 1, 2), keepdims=True)
        return (v - m) * jax.lax.rsqrt(var + EPS) * g.reshape(1, 1, 1, -1) \
            + b.reshape(1, 1, 1, -1)

    leaky = lambda v: jnp.where(v >= 0, v, SLOPE * v)
    h = leaky(bn(conv(x, p["w1_hwio"]), p["g1"], p["b1"]))
    h = bn(conv(h, p["w2_hwio"]), p["g2"], p["b2"])
    out = leaky(x + h)
    return jnp.transpose(out, (0, 3, 1, 2))


if __name__ == "__main__":
    key = jax.random.PRNGKey(0)
    kx, kp = jax.random.split(key)

    N, C, H, W = 2, 4, 16, 16
    x = jax.random.normal(kx, (N, C, H, W), jnp.float32)
    params = make_params(kp, C)

    out = jax.jit(resblock_forward)(x, params)
    out = jax.block_until_ready(out)

    ref = ref_forward(x, params)
    assert out.shape == (N, C, H, W)
    assert jnp.allclose(out, ref, atol=1e-2, rtol=1e-2), \
        float(jnp.max(jnp.abs(out - ref)))

    print("KERNEL_OK")
</pallas_src>

<mosaic_0001>
module attributes {stable_mosaic.version = 11 : i64} {
  func.func @kernel(%arg0: i32, %arg1: memref<8x384xf32, #tpu.memory_space<vmem>>, %arg2: memref<8x128xf32, #tpu.memory_space<vmem>>, %arg3: memref<8x128xf32, #tpu.memory_space<vmem>>, %arg4: memref<8x384xf32, #tpu.memory_space<vmem>>, %arg5: memref<4x8x384xf32, #tpu.memory_space<vmem>>, %arg6: memref<8x324xf32, #tpu.memory_space<vmem>>) attributes {dimension_semantics = [#tpu.dimension_semantics<arbitrary>], iteration_bounds = array<i64: 1>, scalar_prefetch = 0 : i64, scratch_operands = 2 : i64, tpu.core_type = #tpu.core_type<tc>, window_params = [{pipeline_mode = #tpu.pipeline_mode<synchronous>, transform_indices = @transform_0, window_bounds = array<i64: 8, 384>}, {pipeline_mode = #tpu.pipeline_mode<synchronous>, transform_indices = @transform_1, window_bounds = array<i64: 8, 128>}, {pipeline_mode = #tpu.pipeline_mode<synchronous>, transform_indices = @transform_2, window_bounds = array<i64: 8, 128>}, {pipeline_mode = #tpu.pipeline_mode<synchronous>, transform_indices = @transform_3, window_bounds = array<i64: 8, 384>}]} {
    %0 = tpu.iota {dimensions = array<i32: 0>} : vector<8x1xi32>
    %c0_i32 = arith.constant 0 : i32
    %1 = vector.broadcast %c0_i32 : i32 to vector<8x1xi32>
    %2 = arith.cmpi eq, %0, %1 : vector<8x1xi32>
    %c2_i32 = arith.constant 2 : i32
    %3 = vector.broadcast %c2_i32 : i32 to vector<8x1xi32>
    %4 = arith.cmpi eq, %0, %3 : vector<8x1xi32>
    %5 = arith.ori %2, %4 : vector<8x1xi1>
    %c4_i32 = arith.constant 4 : i32
    %6 = vector.broadcast %c4_i32 : i32 to vector<8x1xi32>
    %7 = arith.cmpi eq, %0, %6 : vector<8x1xi32>
    %8 = arith.ori %5, %7 : vector<8x1xi1>
    %c6_i32 = arith.constant 6 : i32
    %9 = vector.broadcast %c6_i32 : i32 to vector<8x1xi32>
    %10 = arith.cmpi eq, %0, %9 : vector<8x1xi32>
    %11 = arith.ori %8, %10 : vector<8x1xi1>
    %12 = arith.extui %11 : vector<8x1xi1> to vector<8x1xi32>
    %13 = arith.sitofp %12 : vector<8x1xi32> to vector<8x1xf32>
    %c1_i32 = arith.constant 1 : i32
    %14 = vector.broadcast %c1_i32 : i32 to vector<8x1xi32>
    %15 = arith.cmpi eq, %0, %14 : vector<8x1xi32>
    %c3_i32 = arith.constant 3 : i32
    %16 = vector.broadcast %c3_i32 : i32 to vector<8x1xi32>
    %17 = arith.cmpi eq, %0, %16 : vector<8x1xi32>
    %18 = arith.ori %15, %17 : vector<8x1xi1>
    %c5_i32 = arith.constant 5 : i32
    %19 = vector.broadcast %c5_i32 : i32 to vector<8x1xi32>
    %20 = arith.cmpi eq, %0, %19 : vector<8x1xi32>
    %21 = arith.ori %18, %20 : vector<8x1xi1>
    %c7_i32 = arith.constant 7 : i32
    %22 = vector.broadcast %c7_i32 : i32 to vector<8x1xi32>
    %23 = arith.cmpi eq, %0, %22 : vector<8x1xi32>
    %24 = arith.ori %21, %23 : vector<8x1xi1>
    %25 = arith.extui %24 : vector<8x1xi1> to vector<8x1xi32>
    %26 = arith.sitofp %25 : vector<8x1xi32> to vector<8x1xf32>
    %c0_i32_0 = arith.constant 0 : i32
    %27 = vector.broadcast %c0_i32_0 : i32 to vector<8x1xi32>
    %28 = arith.cmpi eq, %0, %27 : vector<8x1xi32>
    %c1_i32_1 = arith.constant 1 : i32
    %29 = vector.broadcast %c1_i32_1 : i32 to vector<8x1xi32>
    %30 = arith.cmpi eq, %0, %29 : vector<8x1xi32>
    %31 = arith.ori %28, %30 : vector<8x1xi1>
    %32 = arith.extui %31 : vector<8x1xi1> to vector<8x1xi32>
    %33 = arith.sitofp %32 : vector<8x1xi32> to vector<8x1xf32>
    %c2_i32_2 = arith.constant 2 : i32
    %34 = vector.broadcast %c2_i32_2 : i32 to vector<8x1xi32>
    %35 = arith.cmpi eq, %0, %34 : vector<8x1xi32>
    %c3_i32_3 = arith.constant 3 : i32
    %36 = vector.broadcast %c3_i32_3 : i32 to vector<8x1xi32>
    %37 = arith.cmpi eq, %0, %36 : vector<8x1xi32>
    %38 = arith.ori %35, %37 : vector<8x1xi1>
    %39 = arith.extui %38 : vector<8x1xi1> to vector<8x1xi32>
    %40 = arith.sitofp %39 : vector<8x1xi32> to vector<8x1xf32>
    %c4_i32_4 = arith.constant 4 : i32
    %41 = vector.broadcast %c4_i32_4 : i32 to vector<8x1xi32>
    %42 = arith.cmpi eq, %0, %41 : vector<8x1xi32>
    %c5_i32_5 = arith.constant 5 : i32
    %43 = vector.broadcast %c5_i32_5 : i32 to vector<8x1xi32>
    %44 = arith.cmpi eq, %0, %43 : vector<8x1xi32>
    %45 = arith.ori %42, %44 : vector<8x1xi1>
    %46 = arith.extui %45 : vector<8x1xi1> to vector<8x1xi32>
    %47 = arith.sitofp %46 : vector<8x1xi32> to vector<8x1xf32>
    %c6_i32_6 = arith.constant 6 : i32
    %48 = vector.broadcast %c6_i32_6 : i32 to vector<8x1xi32>
    %49 = arith.cmpi eq, %0, %48 : vector<8x1xi32>
    %c7_i32_7 = arith.constant 7 : i32
    %50 = vector.broadcast %c7_i32_7 : i32 to vector<8x1xi32>
    %51 = arith.cmpi eq, %0, %50 : vector<8x1xi32>
    %52 = arith.ori %49, %51 : vector<8x1xi1>
    %53 = arith.extui %52 : vector<8x1xi1> to vector<8x1xi32>
    %54 = arith.sitofp %53 : vector<8x1xi32> to vector<8x1xf32>
    %55 = tpu.iota {dimensions = array<i32: 1>} : vector<8x324xi32>
    %56 = arith.sitofp %55 : vector<8x324xi32> to vector<8x324xf32>
    %cst = arith.constant 5.000000e-01 : f32
    %57 = vector.broadcast %cst : f32 to vector<8x324xf32>
    %58 = arith.addf %56, %57 : vector<8x324xf32>
    %cst_8 = arith.constant 0.055555556 : f32
    %59 = vector.broadcast %cst_8 : f32 to vector<8x324xf32>
    %60 = arith.mulf %58, %59 : vector<8x324xf32>
    %61 = math.floor %60 : vector<8x324xf32>
    %62 = arith.fptosi %61 : vector<8x324xf32> to vector<8x324xi32>
    %c18_i32 = arith.constant 18 : i32
    %63 = vector.broadcast %c18_i32 : i32 to vector<8x324xi32>
    %64 = arith.muli %62, %63 : vector<8x324xi32>
    %65 = arith.subi %55, %64 : vector<8x324xi32>
    %c1_i32_9 = arith.constant 1 : i32
    %66 = vector.broadcast %c1_i32_9 : i32 to vector<8x324xi32>
    %67 = arith.cmpi sge, %62, %66 : vector<8x324xi32>
    %c16_i32 = arith.constant 16 : i32
    %68 = vector.broadcast %c16_i32 : i32 to vector<8x324xi32>
    %69 = arith.cmpi sle, %62, %68 : vector<8x324xi32>
    %70 = arith.andi %67, %69 : vector<8x324xi1>
    %c1_i32_10 = arith.constant 1 : i32
    %71 = vector.broadcast %c1_i32_10 : i32 to vector<8x324xi32>
    %72 = arith.cmpi sge, %65, %71 : vector<8x324xi32>
    %73 = arith.andi %70, %72 : vector<8x324xi1>
    %c16_i32_11 = arith.constant 16 : i32
    %74 = vector.broadcast %c16_i32_11 : i32 to vector<8x324xi32>
    %75 = arith.cmpi sle, %65, %74 : vector<8x324xi32>
    %76 = arith.andi %73, %75 : vector<8x324xi1>
    %c0 = arith.constant 0 : index
    %c0_12 = arith.constant 0 : index
    %77 = vector.load %arg1[%c0, %c0_12] : memref<8x384xf32, #tpu.memory_space<vmem>>, vector<1x384xf32>
    %78 = vector.broadcast %13 : vector<8x1xf32> to vector<8x384xf32>
    %79 = vector.broadcast %77 : vector<1x384xf32> to vector<8x384xf32>
    %80 = arith.mulf %78, %79 : vector<8x384xf32>
    %c1 = arith.constant 1 : index
    %c0_13 = arith.constant 0 : index
    %81 = vector.load %arg1[%c1, %c0_13] : memref<8x384xf32, #tpu.memory_space<vmem>>, vector<1x384xf32>
    %82 = vector.broadcast %26 : vector<8x1xf32> to vector<8x384xf32>
    %83 = vector.broadcast %81 : vector<1x384xf32> to vector<8x384xf32>
    %84 = arith.mulf %82, %83 : vector<8x384xf32>
    %85 = arith.addf %80, %84 : vector<8x384xf32>
    %c0_14 = arith.constant 0 : index
    %c0_15 = arith.constant 0 : index
    %c0_16 = arith.constant 0 : index
    %86 = vector.load %arg5[%c0_14, %c0_15, %c0_16] : memref<4x8x384xf32, #tpu.memory_space<vmem>>, vector<1x8x384xf32>
    %87 = vector.shape_cast %86 : vector<1x8x384xf32> to vector<8x384xf32>
    %88 = vector.shape_cast %85 : vector<8x384xf32> to vector<1x8x384xf32>
    tpu.vector_store %arg5[%c0_14, %c0_15, %c0_16], %88 {strides = array<i32>} : memref<4x8x384xf32, #tpu.memory_space<vmem>>, vector<1x8x384xf32>,
    %c2 = arith.constant 2 : index
    %c0_17 = arith.constant 0 : index
    %89 = vector.load %arg1[%c2, %c0_17] : memref<8x384xf32, #tpu.memory_space<vmem>>, vector<1x384xf32>
    %90 = vector.broadcast %13 : vector<8x1xf32> to vector<8x384xf32>
    %91 = vector.broadcast %89 : vector<1x384xf32> to vector<8x384xf32>
    %92 = arith.mulf %90, %91 : vector<8x384xf32>
    %c3 = arith.constant 3 : index
    %c0_18 = arith.constant 0 : index
    %93 = vector.load %arg1[%c3, %c0_18] : memref<8x384xf32, #tpu.memory_space<vmem>>, vector<1x384xf32>
    %94 = vector.broadcast %26 : vector<8x1xf32> to vector<8x384xf32>
    %95 = vector.broadcast %93 : vector<1x384xf32> to vector<8x384xf32>
    %96 = arith.mulf %94, %95 : vector<8x384xf32>
    %97 = arith.addf %92, %96 : vector<8x384xf32>
    %c1_19 = arith.constant 1 : index
    %c0_20 = arith.constant 0 : index
    %c0_21 = arith.constant 0 : index
    %98 = vector.load %arg5[%c1_19, %c0_20, %c0_21] : memref<4x8x384xf32, #tpu.memory_space<vmem>>, vector<1x8x384xf32>
    %99 = vector.shape_cast %98 : vector<1x8x384xf32> to vector<8x384xf32>
    %100 = vector.shape_cast %97 : vector<8x384xf32> to vector<1x8x384xf32>
    tpu.vector_store %arg5[%c1_19, %c0_20, %c0_21], %100 {strides = array<i32>} : memref<4x8x384xf32, #tpu.memory_space<vmem>>, vector<1x8x384xf32>,
    %c4 = arith.constant 4 : index
    %c0_22 = arith.constant 0 : index
    %101 = vector.load %arg1[%c4, %c0_22] : memref<8x384xf32, #tpu.memory_space<vmem>>, vector<1x384xf32>
    %102 = vector.broadcast %13 : vector<8x1xf32> to vector<8x384xf32>
    %103 = vector.broadcast %101 : vector<1x384xf32> to vector<8x384xf32>
    %104 = arith.mulf %102, %103 : vector<8x384xf32>
    %c5 = arith.constant 5 : index
    %c0_23 = arith.constant 0 : index
    %105 = vector.load %arg1[%c5, %c0_23] : memref<8x384xf32, #tpu.memory_space<vmem>>, vector<1x384xf32>
    %106 = vector.broadcast %26 : vector<8x1xf32> to vector<8x384xf32>
    %107 = vector.broadcast %105 : vector<1x384xf32> to vector<8x384xf32>
    %108 = arith.mulf %106, %107 : vector<8x384xf32>
    %109 = arith.addf %104, %108 : vector<8x384xf32>
    %c2_24 = arith.constant 2 : index
    %c0_25 = arith.constant 0 : index
    %c0_26 = arith.constant 0 : index
    %110 = vector.load %arg5[%c2_24, %c0_25, %c0_26] : memref<4x8x384xf32, #tpu.memory_space<vmem>>, vector<1x8x384xf32>
    %111 = vector.shape_cast %110 : vector<1x8x384xf32> to vector<8x384xf32>
    %112 = vector.shape_cast %109 : vector<8x384xf32> to vector<1x8x384xf32>
    tpu.vector_store %arg5[%c2_24, %c0_25, %c0_26], %112 {strides = array<i32>} : memref<4x8x384xf32, #tpu.memory_space<vmem>>, vector<1x8x384xf32>,
    %c6 = arith.constant 6 : index
    %c0_27 = arith.constant 0 : index
    %113 = vector.load %arg1[%c6, %c0_27] : memref<8x384xf32, #tpu.memory_space<vmem>>, vector<1x384xf32>
    %114 = vector.broadcast %13 : vector<8x1xf32> to vector<8x384xf32>
    %115 = vector.broadcast %113 : vector<1x384xf32> to vector<8x384xf32>
    %116 = arith.mulf %114, %115 : vector<8x384xf32>
    %c7 = arith.constant 7 : index
    %c0_28 = arith.constant 0 : index
    %117 = vector.load %arg1[%c7, %c0_28] : memref<8x384xf32, #tpu.memory_space<vmem>>, vector<1x384xf32>
    %118 = vector.broadcast %26 : vector<8x1xf32> to vector<8x384xf32>
    %119 = vector.broadcast %117 : vector<1x384xf32> to vector<8x384xf32>
    %120 = arith.mulf %118, %119 : vector<8x384xf32>
    %121 = arith.addf %116, %120 : vector<8x384xf32>
    %c3_29 = arith.constant 3 : index
    %c0_30 = arith.constant 0 : index
    %c0_31 = arith.constant 0 : index
    %122 = vector.load %arg5[%c3_29, %c0_30, %c0_31] : memref<4x8x384xf32, #tpu.memory_space<vmem>>, vector<1x8x384xf32>
    %123 = vector.shape_cast %122 : vector<1x8x384xf32> to vector<8x384xf32>
    %124 = vector.shape_cast %121 : vector<8x384xf32> to vector<1x8x384xf32>
    tpu.vector_store %arg5[%c3_29, %c0_30, %c0_31], %124 {strides = array<i32>} : memref<4x8x384xf32, #tpu.memory_space<vmem>>, vector<1x8x384xf32>,
    %cst_32 = arith.constant 0.000000e+00 : f32
    %125 = vector.broadcast %cst_32 : f32 to vector<8x324xf32>
    %c0_33 = arith.constant 0 : index
    %c0_34 = arith.constant 0 : index
    %c0_35 = arith.constant 0 : index
    %126 = vector.load %arg5[%c0_33, %c0_34, %c0_35] : memref<4x8x384xf32, #tpu.memory_space<vmem>>, vector<1x8x324xf32>
    %127 = vector.shape_cast %126 : vector<1x8x324xf32> to vector<8x324xf32>
    %c0_36 = arith.constant 0 : index
    %c0_37 = arith.constant 0 : index
    %128 = vector.load %arg2[%c0_36, %c0_37] : memref<8x128xf32, #tpu.memory_space<vmem>>, vector<8x1xf32>
    %129 = vector.broadcast %128 : vector<8x1xf32> to vector<8x324xf32>
    %130 = arith.mulf %129, %127 : vector<8x324xf32>
    %131 = arith.addf %125, %130 : vector<8x324xf32>
    %c0_38 = arith.constant 0 : index
    %c0_39 = arith.constant 0 : index
    %c1_40 = arith.constant 1 : index
    %132 = vector.load %arg5[%c0_38, %c0_39, %c1_40] : memref<4x8x384xf32, #tpu.memory_space<vmem>>, vector<1x8x324xf32>
    %133 = vector.shape_cast %132 : vector<1x8x324xf32> to vector<8x324xf32>
    %c0_41 = arith.constant 0 : index
    %c1_42 = arith.constant 1 : index
    %134 = vector.load %arg2[%c0_41, %c1_42] : memref<8x128xf32, #tpu.memory_space<vmem>>, vector<8x1xf32>
    %135 = vector.broadcast %134 : vector<8x1xf32> to vector<8x324xf32>
    %136 = arith.mulf %135, %133 : vector<8x324xf32>
    %137 = arith.addf %131, %136 : vector<8x324xf32>
    %c0_43 = arith.constant 0 : index
    %c0_44 = arith.constant 0 : index
    %c2_45 = arith.constant 2 : index
    %138 = vector.load %arg5[%c0_43, %c0_44, %c2_45] : memref<4x8x384xf32, #tpu.memory_space<vmem>>, vector<1x8x324xf32>
    %139 = vector.shape_cast %138 : vector<1x8x324xf32> to vector<8x324xf32>
    %c0_46 = arith.constant 0 : index
    %c2_47 = arith.constant 2 : index
    %140 = vector.load %arg2[%c0_46, %c2_47] : memref<8x128xf32, #tpu.memory_space<vmem>>, vector<8x1xf32>
    %141 = vector.broadcast %140 : vector<8x1xf32> to vector<8x324xf32>
    %142 = arith.mulf %141, %139 : vector<8x324xf32>
    %143 = arith.addf %137, %142 : vector<8x324xf32>
    %c0_48 = arith.constant 0 : index
    %c0_49 = arith.constant 0 : index
    %c18 = arith.constant 18 : index
    %144 = vector.load %arg5[%c0_48, %c0_49, %c18] : memref<4x8x384xf32, #tpu.memory_space<vmem>>, vector<1x8x324xf32>
    %145 = vector.shape_cast %144 : vector<1x8x324xf32> to vector<8x324xf32>
    %c0_50 = arith.constant 0 : index
    %c3_51 = arith.constant 3 : index
    %146 = vector.load %arg2[%c0_50, %c3_51] : memref<8x128xf32, #tpu.memory_space<vmem>>, vector<8x1xf32>
    %147 = vector.broadcast %146 : vector<8x1xf32> to vector<8x324xf32>
    %148 = arith.mulf %147, %145 : vector<8x324xf32>
    %149 = arith.addf %143, %148 : vector<8x324xf32>
    %c0_52 = arith.constant 0 : index
    %c0_53 = arith.constant 0 : index
    %c19 = arith.constant 19 : index
    %150 = vector.load %arg5[%c0_52, %c0_53, %c19] : memref<4x8x384xf32, #tpu.memory_space<vmem>>, vector<1x8x324xf32>
    %151 = vector.shape_cast %150 : vector<1x8x324xf32> to vector<8x324xf32>
    %c0_54 = arith.constant 0 : index
    %c4_55 = arith.constant 4 : index
    %152 = vector.load %arg2[%c0_54, %c4_55] : memref<8x128xf32, #tpu.memory_space<vmem>>, vector<8x1xf32>
    %153 = vector.broadcast %152 : vector<8x1xf32> to vector<8x324xf32>
    %154 = arith.mulf %153, %151 : vector<8x324xf32>
    %155 = arith.addf %149, %154 : vector<8x324xf32>
    %c0_56 = arith.constant 0 : index
    %c0_57 = arith.constant 0 : index
    %c20 = arith.constant 20 : index
    %156 = vector.load %arg5[%c0_56, %c0_57, %c20] : memref<4x8x384xf32, #tpu.memory_space<vmem>>, vector<1x8x324xf32>
    %157 = vector.shape_cast %156 : vector<1x8x324xf32> to vector<8x324xf32>
    %c0_58 = arith.constant 0 : index
    %c5_59 = arith.constant 5 : index
    %158 = vector.load %arg2[%c0_58, %c5_59] : memref<8x128xf32, #tpu.memory_space<vmem>>, vector<8x1xf32>
    %159 = vector.broadcast %158 : vector<8x1xf32> to vector<8x324xf32>
    %160 = arith.mulf %159, %157 : vector<8x324xf32>
    %161 = arith.addf %155, %160 : vector<8x324xf32>
    %c0_60 = arith.constant 0 : index
    %c0_61 = arith.constant 0 : index
    %c36 = arith.constant 36 : index
    %162 = vector.load %arg5[%c0_60, %c0_61, %c36] : memref<4x8x384xf32, #tpu.memory_space<vmem>>, vector<1x8x324xf32>
    %163 = vector.shape_cast %162 : vector<1x8x324xf32> to vector<8x324xf32>
    %c0_62 = arith.constant 0 : index
    %c6_63 = arith.constant 6 : index
    %164 = vector.load %arg2[%c0_62, %c6_63] : memref<8x128xf32, #tpu.memory_space<vmem>>, vector<8x1xf32>
    %165 = vector.broadcast %164 : vector<8x1xf32> to vector<8x324xf32>
    %166 = arith.mulf %165, %163 : vector<8x324xf32>
    %167 = arith.addf %161, %166 : vector<8x324xf32>
    %c0_64 = arith.constant 0 : index
    %c0_65 = arith.constant 0 : index
    %c37 = arith.constant 37 : index
    %168 = vector.load %arg5[%c0_64, %c0_65, %c37] : memref<4x8x384xf32, #tpu.memory_space<vmem>>, vector<1x8x324xf32>
    %169 = vector.shape_cast %168 : vector<1x8x324xf32> to vector<8x324xf32>
    %c0_66 = arith.constant 0 : index
    %c7_67 = arith.constant 7 : index
    %170 = vector.load %arg2[%c0_66, %c7_67] : memref<8x128xf32, #tpu.memory_space<vmem>>, vector<8x1xf32>
    %171 = vector.broadcast %170 : vector<8x1xf32> to vector<8x324xf32>
    %172 = arith.mulf %171, %169 : vector<8x324xf32>
    %173 = arith.addf %167, %172 : vector<8x324xf32>
    %c0_68 = arith.constant 0 : index
    %c0_69 = arith.constant 0 : index
    %c38 = arith.constant 38 : index
    %174 = vector.load %arg5[%c0_68, %c0_69, %c38] : memref<4x8x384xf32, #tpu.memory_space<vmem>>, vector<1x8x324xf32>
    %175 = vector.shape_cast %174 : vector<1x8x324xf32> to vector<8x324xf32>
    %c0_70 = arith.constant 0 : index
    %c8 = arith.constant 8 : index
    %176 = vector.load %arg2[%c0_70, %c8] : memref<8x128xf32, #tpu.memory_space<vmem>>, vector<8x1xf32>
    %177 = vector.broadcast %176 : vector<8x1xf32> to vector<8x324xf32>
    %178 = arith.mulf %177, %175 : vector<8x324xf32>
    %179 = arith.addf %173, %178 : vector<8x324xf32>
    %c1_71 = arith.constant 1 : index
    %c0_72 = arith.constant 0 : index
    %c0_73 = arith.constant 0 : index
    %180 = vector.load %arg5[%c1_71, %c0_72, %c0_73] : memref<4x8x384xf32, #tpu.memory_space<vmem>>, vector<1x8x324xf32>
    %181 = vector.shape_cast %180 : vector<1x8x324xf32> to vector<8x324xf32>
    %c0_74 = arith.constant 0 : index
    %c9 = arith.constant 9 : index
    %182 = vector.load %arg2[%c0_74, %c9] : memref<8x128xf32, #tpu.memory_space<vmem>>, vector<8x1xf32>
    %183 = vector.broadcast %182 : vector<8x1xf32> to vector<8x324xf32>
    %184 = arith.mulf %183, %181 : vector<8x324xf32>
    %185 = arith.addf %179, %184 : vector<8x324xf32>
    %c1_75 = arith.constant 1 : index
    %c0_76 = arith.constant 0 : index
    %c1_77 = arith.constant 1 : index
    %186 = vector.load %arg5[%c1_75, %c0_76, %c1_77] : memref<4x8x384xf32, #tpu.memory_space<vmem>>, vector<1x8x324xf32>
    %187 = vector.shape_cast %186 : vector<1x8x324xf32> to vector<8x324xf32>
    %c0_78 = arith.constant 0 : index
    %c10 = arith.constant 10 : index
    %188 = vector.load %arg2[%c0_78, %c10] : memref<8x128xf32, #tpu.memory_space<vmem>>, vector<8x1xf32>
    %189 = vector.broadcast %188 : vector<8x1xf32> to vector<8x324xf32>
    %190 = arith.mulf %189, %187 : vector<8x324xf32>
    %191 = arith.addf %185, %190 : vector<8x324xf32>
    %c1_79 = arith.constant 1 : index
    %c0_80 = arith.constant 0 : index
    %c2_81 = arith.constant 2 : index
    %192 = vector.load %arg5[%c1_79, %c0_80, %c2_81] : memref<4x8x384xf32, #tpu.memory_space<vmem>>, vector<1x8x324xf32>
    %193 = vector.shape_cast %192 : vector<1x8x324xf32> to vector<8x324xf32>
    %c0_82 = arith.constant 0 : index
    %c11 = arith.constant 11 : index
    %194 = vector.load %arg2[%c0_82, %c11] : memref<8x128xf32, #tpu.memory_space<vmem>>, vector<8x1xf32>
    %195 = vector.broadcast %194 : vector<8x1xf32> to vector<8x324xf32>
    %196 = arith.mulf %195, %193 : vector<8x324xf32>
    %197 = arith.addf %191, %196 : vector<8x324xf32>
    %c1_83 = arith.constant 1 : index
    %c0_84 = arith.constant 0 : index
    %c18_85 = arith.constant 18 : index
    %198 = vector.load %arg5[%c1_83, %c0_84, %c18_85] : memref<4x8x384xf32, #tpu.memory_space<vmem>>, vector<1x8x324xf32>
    %199 = vector.shape_cast %198 : vector<1x8x324xf32> to vector<8x324xf32>
    %c0_86 = arith.constant 0 : index
    %c12 = arith.constant 12 : index
    %200 = vector.load %arg2[%c0_86, %c12] : memref<8x128xf32, #tpu.memory_space<vmem>>, vector<8x1xf32>
    %201 = vector.broadcast %200 : vector<8x1xf32> to vector<8x324xf32>
    %202 = arith.mulf %201, %199 : vector<8x324xf32>
    %203 = arith.addf %197, %202 : vector<8x324xf32>
    %c1_87 = arith.constant 1 : index
    %c0_88 = arith.constant 0 : index
    %c19_89 = arith.constant 19 : index
    %204 = vector.load %arg5[%c1_87, %c0_88, %c19_89] : memref<4x8x384xf32, #tpu.memory_space<vmem>>, vector<1x8x324xf32>
    %205 = vector.shape_cast %204 : vector<1x8x324xf32> to vector<8x324xf32>
    %c0_90 = arith.constant 0 : index
    %c13 = arith.constant 13 : index
    %206 = vector.load %arg2[%c0_90, %c13] : memref<8x128xf32, #tpu.memory_space<vmem>>, vector<8x1xf32>
    %207 = vector.broadcast %206 : vector<8x1xf32> to vector<8x324xf32>
    %208 = arith.mulf %207, %205 : vector<8x324xf32>
    %209 = arith.addf %203, %208 : vector<8x324xf32>
    %c1_91 = arith.constant 1 : index
    %c0_92 = arith.constant 0 : index
    %c20_93 = arith.constant 20 : index
    %210 = vector.load %arg5[%c1_91, %c0_92, %c20_93] : memref<4x8x384xf32, #tpu.memory_space<vmem>>, vector<1x8x324xf32>
    %211 = vector.shape_cast %210 : vector<1x8x324xf32> to vector<8x324xf32>
    %c0_94 = arith.constant 0 : index
    %c14 = arith.constant 14 : index
    %212 = vector.load %arg2[%c0_94, %c14] : memref<8x128xf32, #tpu.memory_space<vmem>>, vector<8x1xf32>
    %213 = vector.broadcast %212 : vector<8x1xf32> to vector<8x324xf32>
    %214 = arith.mulf %213, %211 : vector<8x324xf32>
    %215 = arith.addf %209, %214 : vector<8x324xf32>
    %c1_95 = arith.constant 1 : index
    %c0_96 = arith.constant 0 : index
    %c36_97 = arith.constant 36 : index
    %216 = vector.load %arg5[%c1_95, %c0_96, %c36_97] : memref<4x8x384xf32, #tpu.memory_space<vmem>>, vector<1x8x324xf32>
    %217 = vector.shape_cast %216 : vector<1x8x324xf32> to vector<8x324xf32>
    %c0_98 = arith.constant 0 : index
    %c15 = arith.constant 15 : index
    %218 = vector.load %arg2[%c0_98, %c15] : memref<8x128xf32, #tpu.memory_space<vmem>>, vector<8x1xf32>
    %219 = vector.broadcast %218 : vector<8x1xf32> to vector<8x324xf32>
    %220 = arith.mulf %219, %217 : vector<8x324xf32>
    %221 = arith.addf %215, %220 : vector<8x324xf32>
    %c1_99 = arith.constant 1 : index
    %c0_100 = arith.constant 0 : index
    %c37_101 = arith.constant 37 : index
    %222 = vector.load %arg5[%c1_99, %c0_100, %c37_101] : memref<4x8x384xf32, #tpu.memory_space<vmem>>, vector<1x8x324xf32>
    %223 = vector.shape_cast %222 : vector<1x8x324xf32> to vector<8x324xf32>
    %c0_102 = arith.constant 0 : index
    %c16 = arith.constant 16 : index
    %224 = vector.load %arg2[%c0_102, %c16] : memref<8x128xf32, #tpu.memory_space<vmem>>, vector<8x1xf32>
    %225 = vector.broadcast %224 : vector<8x1xf32> to vector<8x324xf32>
    %226 = arith.mulf %225, %223 : vector<8x324xf32>
    %227 = arith.addf %221, %226 : vector<8x324xf32>
    %c1_103 = arith.constant 1 : index
    %c0_104 = arith.constant 0 : index
    %c38_105 = arith.constant 38 : index
    %228 = vector.load %arg5[%c1_103, %c0_104, %c38_105] : memref<4x8x384xf32, #tpu.memory_space<vmem>>, vector<1x8x324xf32>
    %229 = vector.shape_cast %228 : vector<1x8x324xf32> to vector<8x324xf32>
    %c0_106 = arith.constant 0 : index
    %c17 = arith.constant 17 : index
    %230 = vector.load %arg2[%c0_106, %c17] : memref<8x128xf32, #tpu.memory_space<vmem>>, vector<8x1xf32>
    %231 = vector.broadcast %230 : vector<8x1xf32> to vector<8x324xf32>
    %232 = arith.mulf %231, %229 : vector<8x324xf32>
    %233 = arith.addf %227, %232 : vector<8x324xf32>
    %c2_107 = arith.constant 2 : index
    %c0_108 = arith.constant 0 : index
    %c0_109 = arith.constant 0 : index
    %234 = vector.load %arg5[%c2_107, %c0_108, %c0_109] : memref<4x8x384xf32, #tpu.memory_space<vmem>>, vector<1x8x324xf32>
    %235 = vector.shape_cast %234 : vector<1x8x324xf32> to vector<8x324xf32>
    %c0_110 = arith.constant 0 : index
    %c18_111 = arith.constant 18 : index
    %236 = vector.load %arg2[%c0_110, %c18_111] : memref<8x128xf32, #tpu.memory_space<vmem>>, vector<8x1xf32>
    %237 = vector.broadcast %236 : vector<8x1xf32> to vector<8x324xf32>
    %238 = arith.mulf %237, %235 : vector<8x324xf32>
    %239 = arith.addf %233, %238 : vector<8x324xf32>
    %c2_112 = arith.constant 2 : index
    %c0_113 = arith.constant 0 : index
    %c1_114 = arith.constant 1 : index
    %240 = vector.load %arg5[%c2_112, %c0_113, %c1_114] : memref<4x8x384xf32, #tpu.memory_space<vmem>>, vector<1x8x324xf32>
    %241 = vector.shape_cast %240 : vector<1x8x324xf32> to vector<8x324xf32>
    %c0_115 = arith.constant 0 : index
    %c19_116 = arith.constant 19 : index
    %242 = vector.load %arg2[%c0_115, %c19_116] : memref<8x128xf32, #tpu.memory_space<vmem>>, vector<8x1xf32>
    %243 = vector.broadcast %242 : vector<8x1xf32> to vector<8x324xf32>
    %244 = arith.mulf %243, %241 : vector<8x324xf32>
    %245 = arith.addf %239, %244 : vector<8x324xf32>
    %c2_117 = arith.constant 2 : index
    %c0_118 = arith.constant 0 : index
    %c2_119 = arith.constant 2 : index
    %246 = vector.load %arg5[%c2_117, %c0_118, %c2_119] : memref<4x8x384xf32, #tpu.memory_space<vmem>>, vector<1x8x324xf32>
    %247 = vector.shape_cast %246 : vector<1x8x324xf32> to vector<8x324xf32>
    %c0_120 = arith.constant 0 : index
    %c20_121 = arith.constant 20 : index
    %248 = vector.load %arg2[%c0_120, %c20_121] : memref<8x128xf32, #tpu.memory_space<vmem>>, vector<8x1xf32>
    %249 = vector.broadcast %248 : vector<8x1xf32> to vector<8x324xf32>
    %250 = arith.mulf %249, %247 : vector<8x324xf32>
    %251 = arith.addf %245, %250 : vector<8x324xf32>
    %c2_122 = arith.constant 2 : index
    %c0_123 = arith.constant 0 : index
    %c18_124 = arith.constant 18 : index
    %252 = vector.load %arg5[%c2_122, %c0_123, %c18_124] : memref<4x8x384xf32, #tpu.memory_space<vmem>>, vector<1x8x324xf32>
    %253 = vector.shape_cast %252 : vector<1x8x324xf32> to vector<8x324xf32>
    %c0_125 = arith.constant 0 : index
    %c21 = arith.constant 21 : index
    %254 = vector.load %arg2[%c0_125, %c21] : memref<8x128xf32, #tpu.memory_space<vmem>>, vector<8x1xf32>
    %255 = vector.broadcast %254 : vector<8x1xf32> to vector<8x324xf32>
    %256 = arith.mulf %255, %253 : vector<8x324xf32>
    %257 = arith.addf %251, %256 : vector<8x324xf32>
    %c2_126 = arith.constant 2 : index
    %c0_127 = arith.constant 0 : index
    %c19_128 = arith.constant 19 : index
    %258 = vector.load %arg5[%c2_126, %c0_127, %c19_128] : memref<4x8x384xf32, #tpu.memory_space<vmem>>, vector<1x8x324xf32>
    %259 = vector.shape_cast %258 : vector<1x8x324xf32> to vector<8x324xf32>
    %c0_129 = arith.constant 0 : index
    %c22 = arith.constant 22 : index
    %260 = vector.load %arg2[%c0_129, %c22] : memref<8x128xf32, #tpu.memory_space<vmem>>, vector<8x1xf32>
    %261 = vector.broadcast %260 : vector<8x1xf32> to vector<8x324xf32>
    %262 = arith.mulf %261, %259 : vector<8x324xf32>
    %263 = arith.addf %257, %262 : vector<8x324xf32>
    %c2_130 = arith.constant 2 : index
    %c0_131 = arith.constant 0 : index
    %c20_132 = arith.constant 20 : index
    %264 = vector.load %arg5[%c2_130, %c0_131, %c20_132] : memref<4x8x384xf32, #tpu.memory_space<vmem>>, vector<1x8x324xf32>
    %265 = vector.shape_cast %264 : vector<1x8x324xf32> to vector<8x324xf32>
    %c0_133 = arith.constant 0 : index
    %c23 = arith.constant 23 : index
    %266 = vector.load %arg2[%c0_133, %c23] : memref<8x128xf32, #tpu.memory_space<vmem>>, vector<8x1xf32>
    %267 = vector.broadcast %266 : vector<8x1xf32> to vector<8x324xf32>
    %268 = arith.mulf %267, %265 : vector<8x324xf32>
    %269 = arith.addf %263, %268 : vector<8x324xf32>
    %c2_134 = arith.constant 2 : index
    %c0_135 = arith.constant 0 : index
    %c36_136 = arith.constant 36 : index
    %270 = vector.load %arg5[%c2_134, %c0_135, %c36_136] : memref<4x8x384xf32, #tpu.memory_space<vmem>>, vector<1x8x324xf32>
    %271 = vector.shape_cast %270 : vector<1x8x324xf32> to vector<8x324xf32>
    %c0_137 = arith.constant 0 : index
    %c24 = arith.constant 24 : index
    %272 = vector.load %arg2[%c0_137, %c24] : memref<8x128xf32, #tpu.memory_space<vmem>>, vector<8x1xf32>
    %273 = vector.broadcast %272 : vector<8x1xf32> to vector<8x324xf32>
    %274 = arith.mulf %273, %271 : vector<8x324xf32>
    %275 = arith.addf %269, %274 : vector<8x324xf32>
    %c2_138 = arith.constant 2 : index
    %c0_139 = arith.constant 0 : index
    %c37_140 = arith.constant 37 : index
    %276 = vector.load %arg5[%c2_138, %c0_139, %c37_140] : memref<4x8x384xf32, #tpu.memory_space<vmem>>, vector<1x8x324xf32>
    %277 = vector.shape_cast %276 : vector<1x8x324xf32> to vector<8x324xf32>
    %c0_141 = arith.constant 0 : index
    %c25 = arith.constant 25 : index
    %278 = vector.load %arg2[%c0_141, %c25] : memref<8x128xf32, #tpu.memory_space<vmem>>, vector<8x1xf32>
    %279 = vector.broadcast %278 : vector<8x1xf32> to vector<8x324xf32>
    %280 = arith.mulf %279, %277 : vector<8x324xf32>
    %281 = arith.addf %275, %280 : vector<8x324xf32>
    %c2_142 = arith.constant 2 : index
    %c0_143 = arith.constant 0 : index
    %c38_144 = arith.constant 38 : index
    %282 = vector.load %arg5[%c2_142, %c0_143, %c38_144] : memref<4x8x384xf32, #tpu.memory_space<vmem>>, vector<1x8x324xf32>
    %283 = vector.shape_cast %282 : vector<1x8x324xf32> to vector<8x324xf32>
    %c0_145 = arith.constant 0 : index
    %c26 = arith.constant 26 : index
    %284 = vector.load %arg2[%c0_145, %c26] : memref<8x128xf32, #tpu.memory_space<vmem>>, vector<8x1xf32>
    %285 = vector.broadcast %284 : vector<8x1xf32> to vector<8x324xf32>
    %286 = arith.mulf %285, %283 : vector<8x324xf32>
    %287 = arith.addf %281, %286 : vector<8x324xf32>
    %c3_146 = arith.constant 3 : index
    %c0_147 = arith.constant 0 : index
    %c0_148 = arith.constant 0 : index
    %288 = vector.load %arg5[%c3_146, %c0_147, %c0_148] : memref<4x8x384xf32, #tpu.memory_space<vmem>>, vector<1x8x324xf32>
    %289 = vector.shape_cast %288 : vector<1x8x324xf32> to vector<8x324xf32>
    %c0_149 = arith.constant 0 : index
    %c27 = arith.constant 27 : index
    %290 = vector.load %arg2[%c0_149, %c27] : memref<8x128xf32, #tpu.memory_space<vmem>>, vector<8x1xf32>
    %291 = vector.broadcast %290 : vector<8x1xf32> to vector<8x324xf32>
    %292 = arith.mulf %291, %289 : vector<8x324xf32>
    %293 = arith.addf %287, %292 : vector<8x324xf32>
    %c3_150 = arith.constant 3 : index
    %c0_151 = arith.constant 0 : index
    %c1_152 = arith.constant 1 : index
    %294 = vector.load %arg5[%c3_150, %c0_151, %c1_152] : memref<4x8x384xf32, #tpu.memory_space<vmem>>, vector<1x8x324xf32>
    %295 = vector.shape_cast %294 : vector<1x8x324xf32> to vector<8x324xf32>
    %c0_153 = arith.constant 0 : index
    %c28 = arith.constant 28 : index
    %296 = vector.load %arg2[%c0_153, %c28] : memref<8x128xf32, #tpu.memory_space<vmem>>, vector<8x1xf32>
    %297 = vector.broadcast %296 : vector<8x1xf32> to vector<8x324xf32>
    %298 = arith.mulf %297, %295 : vector<8x324xf32>
    %299 = arith.addf %293, %298 : vector<8x324xf32>
    %c3_154 = arith.constant 3 : index
    %c0_155 = arith.constant 0 : index
    %c2_156 = arith.constant 2 : index
    %300 = vector.load %arg5[%c3_154, %c0_155, %c2_156] : memref<4x8x384xf32, #tpu.memory_space<vmem>>, vector<1x8x324xf32>
    %301 = vector.shape_cast %300 : vector<1x8x324xf32> to vector<8x324xf32>
    %c0_157 = arith.constant 0 : index
    %c29 = arith.constant 29 : index
    %302 = vector.load %arg2[%c0_157, %c29] : memref<8x128xf32, #tpu.memory_space<vmem>>, vector<8x1xf32>
    %303 = vector.broadcast %302 : vector<8x1xf32> to vector<8x324xf32>
    %304 = arith.mulf %303, %301 : vector<8x324xf32>
    %305 = arith.addf %299, %304 : vector<8x324xf32>
    %c3_158 = arith.constant 3 : index
    %c0_159 = arith.constant 0 : index
    %c18_160 = arith.constant 18 : index
    %306 = vector.load %arg5[%c3_158, %c0_159, %c18_160] : memref<4x8x384xf32, #tpu.memory_space<vmem>>, vector<1x8x324xf32>
    %307 = vector.shape_cast %306 : vector<1x8x324xf32> to vector<8x324xf32>
    %c0_161 = arith.constant 0 : index
    %c30 = arith.constant 30 : index
    %308 = vector.load %arg2[%c0_161, %c30] : memref<8x128xf32, #tpu.memory_space<vmem>>, vector<8x1xf32>
    %309 = vector.broadcast %308 : vector<8x1xf32> to vector<8x324xf32>
    %310 = arith.mulf %309, %307 : vector<8x324xf32>
    %311 = arith.addf %305, %310 : vector<8x324xf32>
    %c3_162 = arith.constant 3 : index
    %c0_163 = arith.constant 0 : index
    %c19_164 = arith.constant 19 : index
    %312 = vector.load %arg5[%c3_162, %c0_163, %c19_164] : memref<4x8x384xf32, #tpu.memory_space<vmem>>, vector<1x8x324xf32>
    %313 = vector.shape_cast %312 : vector<1x8x324xf32> to vector<8x324xf32>
    %c0_165 = arith.constant 0 : index
    %c31 = arith.constant 31 : index
    %314 = vector.load %arg2[%c0_165, %c31] : memref<8x128xf32, #tpu.memory_space<vmem>>, vector<8x1xf32>
    %315 = vector.broadcast %314 : vector<8x1xf32> to vector<8x324xf32>
    %316 = arith.mulf %315, %313 : vector<8x324xf32>
    %317 = arith.addf %311, %316 : vector<8x324xf32>
    %c3_166 = arith.constant 3 : index
    %c0_167 = arith.constant 0 : index
    %c20_168 = arith.constant 20 : index
    %318 = vector.load %arg5[%c3_166, %c0_167, %c20_168] : memref<4x8x384xf32, #tpu.memory_space<vmem>>, vector<1x8x324xf32>
    %319 = vector.shape_cast %318 : vector<1x8x324xf32> to vector<8x324xf32>
    %c0_169 = arith.constant 0 : index
    %c32 = arith.constant 32 : index
    %320 = vector.load %arg2[%c0_169, %c32] : memref<8x128xf32, #tpu.memory_space<vmem>>, vector<8x1xf32>
    %321 = vector.broadcast %320 : vector<8x1xf32> to vector<8x324xf32>
    %322 = arith.mulf %321, %319 : vector<8x324xf32>
    %323 = arith.addf %317, %322 : vector<8x324xf32>
    %c3_170 = arith.constant 3 : index
    %c0_171 = arith.constant 0 : index
    %c36_172 = arith.constant 36 : index
    %324 = vector.load %arg5[%c3_170, %c0_171, %c36_172] : memref<4x8x384xf32, #tpu.memory_space<vmem>>, vector<1x8x324xf32>
    %325 = vector.shape_cast %324 : vector<1x8x324xf32> to vector<8x324xf32>
    %c0_173 = arith.constant 0 : index
    %c33 = arith.constant 33 : index
    %326 = vector.load %arg2[%c0_173, %c33] : memref<8x128xf32, #tpu.memory_space<vmem>>, vector<8x1xf32>
    %327 = vector.broadcast %326 : vector<8x1xf32> to vector<8x324xf32>
    %328 = arith.mulf %327, %325 : vector<8x324xf32>
    %329 = arith.addf %323, %328 : vector<8x324xf32>
    %c3_174 = arith.constant 3 : index
    %c0_175 = arith.constant 0 : index
    %c37_176 = arith.constant 37 : index
    %330 = vector.load %arg5[%c3_174, %c0_175, %c37_176] : memref<4x8x384xf32, #tpu.memory_space<vmem>>, vector<1x8x324xf32>
    %331 = vector.shape_cast %330 : vector<1x8x324xf32> to vector<8x324xf32>
    %c0_177 = arith.constant 0 : index
    %c34 = arith.constant 34 : index
    %332 = vector.load %arg2[%c0_177, %c34] : memref<8x128xf32, #tpu.memory_space<vmem>>, vector<8x1xf32>
    %333 = vector.broadcast %332 : vector<8x1xf32> to vector<8x324xf32>
    %334 = arith.mulf %333, %331 : vector<8x324xf32>
    %335 = arith.addf %329, %334 : vector<8x324xf32>
    %c3_178 = arith.constant 3 : index
    %c0_179 = arith.constant 0 : index
    %c38_180 = arith.constant 38 : index
    %336 = vector.load %arg5[%c3_178, %c0_179, %c38_180] : memref<4x8x384xf32, #tpu.memory_space<vmem>>, vector<1x8x324xf32>
    %337 = vector.shape_cast %336 : vector<1x8x324xf32> to vector<8x324xf32>
    %c0_181 = arith.constant 0 : index
    %c35 = arith.constant 35 : index
    %338 = vector.load %arg2[%c0_181, %c35] : memref<8x128xf32, #tpu.memory_space<vmem>>, vector<8x1xf32>
    %339 = vector.broadcast %338 : vector<8x1xf32> to vector<8x324xf32>
    %340 = arith.mulf %339, %337 : vector<8x324xf32>
    %341 = arith.addf %335, %340 : vector<8x324xf32>
    %c0_182 = arith.constant 0 : index
    %c36_183 = arith.constant 36 : index
    %342 = vector.load %arg2[%c0_182, %c36_183] : memref<8x128xf32, #tpu.memory_space<vmem>>, vector<8x1xf32>
    %c0_184 = arith.constant 0 : index
    %c37_185 = arith.constant 37 : index
    %343 = vector.load %arg2[%c0_184, %c37_185] : memref<8x128xf32, #tpu.memory_space<vmem>>, vector<8x1xf32>
    %cst_186 = arith.constant 0.000000e+00 : f32
    %344 = vector.broadcast %cst_186 : f32 to vector<8x324xf32>
    %345 = arith.select %76, %341, %344 : vector<8x324xi1>, vector<8x324xf32>
    %cst_187 = arith.constant dense<0.000000e+00> : vector<8xf32>
    %346 = vector.multi_reduction <add>, %345, %cst_187 [1] : vector<8x324xf32> to vector<8xf32>
    %347 = vector.shape_cast %346 : vector<8xf32> to vector<8x1xf32>
    %cst_188 = arith.constant 0.000000e+00 : f32
    %348 = vector.broadcast %cst_188 : f32 to vector<8x1xf32>
    %349 = arith.mulf %33, %347 : vector<8x1xf32>
    %350 = vector.shape_cast %349 : vector<8x1xf32> to vector<1x8x1xf32>
    %cst_189 = arith.constant dense<0.000000e+00> : vector<1xf32>
    %351 = vector.multi_reduction <add>, %350, %cst_189 [1, 2] : vector<1x8x1xf32> to vector<1xf32>
    %352 = vector.shape_cast %351 : vector<1xf32> to vector<1x1x1xf32>
    %353 = vector.extract %352[0, 0, 0] : f32 from vector<1x1x1xf32>
    %354 = vector.broadcast %353 : f32 to vector<1x1xf32>
    %cst_190 = arith.constant 0.001953125 : f32
    %355 = vector.broadcast %cst_190 : f32 to vector<1x1xf32>
    %356 = arith.mulf %354, %355 : vector<1x1xf32>
    %357 = vector.broadcast %356 : vector<1x1xf32> to vector<8x1xf32>
    %358 = arith.mulf %357, %33 : vector<8x1xf32>
    %359 = arith.addf %348, %358 : vector<8x1xf32>
    %360 = arith.mulf %40, %347 : vector<8x1xf32>
    %361 = vector.shape_cast %360 : vector<8x1xf32> to vector<1x8x1xf32>
    %cst_191 = arith.constant dense<0.000000e+00> : vector<1xf32>
    %362 = vector.multi_reduction <add>, %361, %cst_191 [1, 2] : vector<1x8x1xf32> to vector<1xf32>
    %363 = vector.shape_cast %362 : vector<1xf32> to vector<1x1x1xf32>
    %364 = vector.extract %363[0, 0, 0] : f32 from vector<1x1x1xf32>
    %365 = vector.broadcast %364 : f32 to vector<1x1xf32>
    %cst_192 = arith.constant 0.001953125 : f32
    %366 = vector.broadcast %cst_192 : f32 to vector<1x1xf32>
    %367 = arith.mulf %365, %366 : vector<1x1xf32>
    %368 = vector.broadcast %367 : vector<1x1xf32> to vector<8x1xf32>
    %369 = arith.mulf %368, %40 : vector<8x1xf32>
    %370 = arith.addf %359, %369 : vector<8x1xf32>
    %371 = arith.mulf %47, %347 : vector<8x1xf32>
    %372 = vector.shape_cast %371 : vector<8x1xf32> to vector<1x8x1xf32>
    %cst_193 = arith.constant dense<0.000000e+00> : vector<1xf32>
    %373 = vector.multi_reduction <add>, %372, %cst_193 [1, 2] : vector<1x8x1xf32> to vector<1xf32>
    %374 = vector.shape_cast %373 : vector<1xf32> to vector<1x1x1xf32>
    %375 = vector.extract %374[0, 0, 0] : f32 from vector<1x1x1xf32>
    %376 = vector.broadcast %375 : f32 to vector<1x1xf32>
    %cst_194 = arith.constant 0.001953125 : f32
    %377 = vector.broadcast %cst_194 : f32 to vector<1x1xf32>
    %378 = arith.mulf %376, %377 : vector<1x1xf32>
    %379 = vector.broadcast %378 : vector<1x1xf32> to vector<8x1xf32>
    %380 = arith.mulf %379, %47 : vector<8x1xf32>
    %381 = arith.addf %370, %380 : vector<8x1xf32>
    %382 = arith.mulf %54, %347 : vector<8x1xf32>
    %383 = vector.shape_cast %382 : vector<8x1xf32> to vector<1x8x1xf32>
    %cst_195 = arith.constant dense<0.000000e+00> : vector<1xf32>
    %384 = vector.multi_reduction <add>, %383, %cst_195 [1, 2] : vector<1x8x1xf32> to vector<1xf32>
    %385 = vector.shape_cast %384 : vector<1xf32> to vector<1x1x1xf32>
    %386 = vector.extract %385[0, 0, 0] : f32 from vector<1x1x1xf32>
    %387 = vector.broadcast %386 : f32 to vector<1x1xf32>
    %cst_196 = arith.constant 0.001953125 : f32
    %388 = vector.broadcast %cst_196 : f32 to vector<1x1xf32>
    %389 = arith.mulf %387, %388 : vector<1x1xf32>
    %390 = vector.broadcast %389 : vector<1x1xf32> to vector<8x1xf32>
    %391 = arith.mulf %390, %54 : vector<8x1xf32>
    %392 = arith.addf %381, %391 : vector<8x1xf32>
    %393 = vector.broadcast %392 : vector<8x1xf32> to vector<8x324xf32>
    %394 = arith.subf %341, %393 : vector<8x324xf32>
    %395 = arith.mulf %394, %394 : vector<8x324xf32>
    %cst_197 = arith.constant 0.000000e+00 : f32
    %396 = vector.broadcast %cst_197 : f32 to vector<8x324xf32>
    %397 = arith.select %76, %395, %396 : vector<8x324xi1>, vector<8x324xf32>
    %cst_198 = arith.constant dense<0.000000e+00> : vector<8xf32>
    %398 = vector.multi_reduction <add>, %397, %cst_198 [1] : vector<8x324xf32> to vector<8xf32>
    %399 = vector.shape_cast %398 : vector<8xf32> to vector<8x1xf32>
    %cst_199 = arith.constant 0.000000e+00 : f32
    %400 = vector.broadcast %cst_199 : f32 to vector<8x1xf32>
    %401 = arith.mulf %33, %399 : vector<8x1xf32>
    %402 = vector.shape_cast %401 : vector<8x1xf32> to vector<1x8x1xf32>
    %cst_200 = arith.constant dense<0.000000e+00> : vector<1xf32>
    %403 = vector.multi_reduction <add>, %402, %cst_200 [1, 2] : vector<1x8x1xf32> to vector<1xf32>
    %404 = vector.shape_cast %403 : vector<1xf32> to vector<1x1x1xf32>
    %405 = vector.extract %404[0, 0, 0] : f32 from vector<1x1x1xf32>
    %406 = vector.broadcast %405 : f32 to vector<1x1xf32>
    %cst_201 = arith.constant 0.001953125 : f32
    %407 = vector.broadcast %cst_201 : f32 to vector<1x1xf32>
    %408 = arith.mulf %406, %407 : vector<1x1xf32>
    %409 = vector.broadcast %408 : vector<1x1xf32> to vector<8x1xf32>
    %410 = arith.mulf %409, %33 : vector<8x1xf32>
    %411 = arith.addf %400, %410 : vector<8x1xf32>
    %412 = arith.mulf %40, %399 : vector<8x1xf32>
    %413 = vector.shape_cast %412 : vector<8x1xf32> to vector<1x8x1xf32>
    %cst_202 = arith.constant dense<0.000000e+00> : vector<1xf32>
    %414 = vector.multi_reduction <add>, %413, %cst_202 [1, 2] : vector<1x8x1xf32> to vector<1xf32>
    %415 = vector.shape_cast %414 : vector<1xf32> to vector<1x1x1xf32>
    %416 = vector.extract %415[0, 0, 0] : f32 from vector<1x1x1xf32>
    %417 = vector.broadcast %416 : f32 to vector<1x1xf32>
    %cst_203 = arith.constant 0.001953125 : f32
    %418 = vector.broadcast %cst_203 : f32 to vector<1x1xf32>
    %419 = arith.mulf %417, %418 : vector<1x1xf32>
    %420 = vector.broadcast %419 : vector<1x1xf32> to vector<8x1xf32>
    %421 = arith.mulf %420, %40 : vector<8x1xf32>
    %422 = arith.addf %411, %421 : vector<8x1xf32>
    %423 = arith.mulf %47, %399 : vector<8x1xf32>
    %424 = vector.shape_cast %423 : vector<8x1xf32> to vector<1x8x1xf32>
    %cst_204 = arith.constant dense<0.000000e+00> : vector<1xf32>
    %425 = vector.multi_reduction <add>, %424, %cst_204 [1, 2] : vector<1x8x1xf32> to vector<1xf32>
    %426 = vector.shape_cast %425 : vector<1xf32> to vector<1x1x1xf32>
    %427 = vector.extract %426[0, 0, 0] : f32 from vector<1x1x1xf32>
    %428 = vector.broadcast %427 : f32 to vector<1x1xf32>
    %cst_205 = arith.constant 0.001953125 : f32
    %429 = vector.broadcast %cst_205 : f32 to vector<1x1xf32>
    %430 = arith.mulf %428, %429 : vector<1x1xf32>
    %431 = vector.broadcast %430 : vector<1x1xf32> to vector<8x1xf32>
    %432 = arith.mulf %431, %47 : vector<8x1xf32>
    %433 = arith.addf %422, %432 : vector<8x1xf32>
    %434 = arith.mulf %54, %399 : vector<8x1xf32>
    %435 = vector.shape_cast %434 : vector<8x1xf32> to vector<1x8x1xf32>
    %cst_206 = arith.constant dense<0.000000e+00> : vector<1xf32>
    %436 = vector.multi_reduction <add>, %435, %cst_206 [1, 2] : vector<1x8x1xf32> to vector<1xf32>
    %437 = vector.shape_cast %436 : vector<1xf32> to vector<1x1x1xf32>
    %438 = vector.extract %437[0, 0, 0] : f32 from vector<1x1x1xf32>
    %439 = vector.broadcast %438 : f32 to vector<1x1xf32>
    %cst_207 = arith.constant 0.001953125 : f32
    %440 = vector.broadcast %cst_207 : f32 to vector<1x1xf32>
    %441 = arith.mulf %439, %440 : vector<1x1xf32>
    %442 = vector.broadcast %441 : vector<1x1xf32> to vector<8x1xf32>
    %443 = arith.mulf %442, %54 : vector<8x1xf32>
    %444 = arith.addf %433, %443 : vector<8x1xf32>
    %cst_208 = arith.constant 9.99999974E-6 : f32
    %445 = vector.broadcast %cst_208 : f32 to vector<8x1xf32>
    %446 = arith.addf %444, %445 : vector<8x1xf32>
    %447 = math.rsqrt %446 : vector<8x1xf32>
    %448 = arith.mulf %447, %342 : vector<8x1xf32>
    %449 = vector.broadcast %448 : vector<8x1xf32> to vector<8x324xf32>
    %450 = arith.mulf %394, %449 : vector<8x324xf32>
    %451 = vector.broadcast %343 : vector<8x1xf32> to vector<8x324xf32>
    %452 = arith.addf %450, %451 : vector<8x324xf32>
    %cst_209 = arith.constant 0.000000e+00 : f32
    %453 = vector.broadcast %cst_209 : f32 to vector<8x324xf32>
    %454 = arith.cmpf oge, %452, %453 : vector<8x324xf32>
    %cst_210 = arith.constant 0.00999999977 : f32
    %455 = vector.broadcast %cst_210 : f32 to vector<8x324xf32>
    %456 = arith.mulf %455, %452 : vector<8x324xf32>
    %457 = arith.select %454, %452, %456 : vector<8x324xi1>, vector<8x324xf32>
    %cst_211 = arith.constant 0.000000e+00 : f32
    %458 = vector.broadcast %cst_211 : f32 to vector<8x324xf32>
    %459 = arith.select %76, %457, %458 : vector<8x324xi1>, vector<8x324xf32>
    %c0_212 = arith.constant 0 : index
    %c0_213 = arith.constant 0 : index
    %460 = vector.load %arg6[%c0_212, %c0_213] : memref<8x324xf32, #tpu.memory_space<vmem>>, vector<8x324xf32>
    tpu.vector_store %arg6[%c0_212, %c0_213], %459 {strides = array<i32>} : memref<8x324xf32, #tpu.memory_space<vmem>>, vector<8x324xf32>,
    %c0_214 = arith.constant 0 : index
    %c0_215 = arith.constant 0 : index
    %461 = vector.load %arg6[%c0_214, %c0_215] : memref<8x324xf32, #tpu.memory_space<vmem>>, vector<1x324xf32>
    %462 = vector.broadcast %13 : vector<8x1xf32> to vector<8x324xf32>
    %463 = vector.broadcast %461 : vector<1x324xf32> to vector<8x324xf32>
    %464 = arith.mulf %462, %463 : vector<8x324xf32>
    %c1_216 = arith.constant 1 : index
    %c0_217 = arith.constant 0 : index
    %465 = vector.load %arg6[%c1_216, %c0_217] : memref<8x324xf32, #tpu.memory_space<vmem>>, vector<1x324xf32>
    %466 = vector.broadcast %26 : vector<8x1xf32> to vector<8x324xf32>
    %467 = vector.broadcast %465 : vector<1x324xf32> to vector<8x324xf32>
    %468 = arith.mulf %466, %467 : vector<8x324xf32>
    %469 = arith.addf %464, %468 : vector<8x324xf32>
    %c0_218 = arith.constant 0 : index
    %c0_219 = arith.constant 0 : index
    %c19_220 = arith.constant 19 : index
    %470 = vector.load %arg5[%c0_218, %c0_219, %c19_220] : memref<4x8x384xf32, #tpu.memory_space<vmem>>, vector<1x8x324xf32>
    %471 = vector.shape_cast %470 : vector<1x8x324xf32> to vector<8x324xf32>
    %472 = vector.shape_cast %469 : vector<8x324xf32> to vector<1x8x324xf32>
    tpu.vector_store %arg5[%c0_218, %c0_219, %c19_220], %472 {strides = array<i32>} : memref<4x8x384xf32, #tpu.memory_space<vmem>>, vector<1x8x324xf32>,
    %c2_221 = arith.constant 2 : index
    %c0_222 = arith.constant 0 : index
    %473 = vector.load %arg6[%c2_221, %c0_222] : memref<8x324xf32, #tpu.memory_space<vmem>>, vector<1x324xf32>
    %474 = vector.broadcast %13 : vector<8x1xf32> to vector<8x324xf32>
    %475 = vector.broadcast %473 : vector<1x324xf32> to vector<8x324xf32>
    %476 = arith.mulf %474, %475 : vector<8x324xf32>
    %c3_223 = arith.constant 3 : index
    %c0_224 = arith.constant 0 : index
    %477 = vector.load %arg6[%c3_223, %c0_224] : memref<8x324xf32, #tpu.memory_space<vmem>>, vector<1x324xf32>
    %478 = vector.broadcast %26 : vector<8x1xf32> to vector<8x324xf32>
    %479 = vector.broadcast %477 : vector<1x324xf32> to vector<8x324xf32>
    %480 = arith.mulf %478, %479 : vector<8x324xf32>
    %481 = arith.addf %476, %480 : vector<8x324xf32>
    %c1_225 = arith.constant 1 : index
    %c0_226 = arith.constant 0 : index
    %c19_227 = arith.constant 19 : index
    %482 = vector.load %arg5[%c1_225, %c0_226, %c19_227] : memref<4x8x384xf32, #tpu.memory_space<vmem>>, vector<1x8x324xf32>
    %483 = vector.shape_cast %482 : vector<1x8x324xf32> to vector<8x324xf32>
    %484 = vector.shape_cast %481 : vector<8x324xf32> to vector<1x8x324xf32>
    tpu.vector_store %arg5[%c1_225, %c0_226, %c19_227], %484 {strides = array<i32>} : memref<4x8x384xf32, #tpu.memory_space<vmem>>, vector<1x8x324xf32>,
    %c4_228 = arith.constant 4 : index
    %c0_229 = arith.constant 0 : index
    %485 = vector.load %arg6[%c4_228, %c0_229] : memref<8x324xf32, #tpu.memory_space<vmem>>, vector<1x324xf32>
    %486 = vector.broadcast %13 : vector<8x1xf32> to vector<8x324xf32>
    %487 = vector.broadcast %485 : vector<1x324xf32> to vector<8x324xf32>
    %488 = arith.mulf %486, %487 : vector<8x324xf32>
    %c5_230 = arith.constant 5 : index
    %c0_231 = arith.constant 0 : index
    %489 = vector.load %arg6[%c5_230, %c0_231] : memref<8x324xf32, #tpu.memory_space<vmem>>, vector<1x324xf32>
    %490 = vector.broadcast %26 : vector<8x1xf32> to vector<8x324xf32>
    %491 = vector.broadcast %489 : vector<1x324xf32> to vector<8x324xf32>
    %492 = arith.mulf %490, %491 : vector<8x324xf32>
    %493 = arith.addf %488, %492 : vector<8x324xf32>
    %c2_232 = arith.constant 2 : index
    %c0_233 = arith.constant 0 : index
    %c19_234 = arith.constant 19 : index
    %494 = vector.load %arg5[%c2_232, %c0_233, %c19_234] : memref<4x8x384xf32, #tpu.memory_space<vmem>>, vector<1x8x324xf32>
    %495 = vector.shape_cast %494 : vector<1x8x324xf32> to vector<8x324xf32>
    %496 = vector.shape_cast %493 : vector<8x324xf32> to vector<1x8x324xf32>
    tpu.vector_store %arg5[%c2_232, %c0_233, %c19_234], %496 {strides = array<i32>} : memref<4x8x384xf32, #tpu.memory_space<vmem>>, vector<1x8x324xf32>,
    %c6_235 = arith.constant 6 : index
    %c0_236 = arith.constant 0 : index
    %497 = vector.load %arg6[%c6_235, %c0_236] : memref<8x324xf32, #tpu.memory_space<vmem>>, vector<1x324xf32>
    %498 = vector.broadcast %13 : vector<8x1xf32> to vector<8x324xf32>
    %499 = vector.broadcast %497 : vector<1x324xf32> to vector<8x324xf32>
    %500 = arith.mulf %498, %499 : vector<8x324xf32>
    %c7_237 = arith.constant 7 : index
    %c0_238 = arith.constant 0 : index
    %501 = vector.load %arg6[%c7_237, %c0_238] : memref<8x324xf32, #tpu.memory_space<vmem>>, vector<1x324xf32>
    %502 = vector.broadcast %26 : vector<8x1xf32> to vector<8x324xf32>
    %503 = vector.broadcast %501 : vector<1x324xf32> to vector<8x324xf32>
    %504 = arith.mulf %502, %503 : vector<8x324xf32>
    %505 = arith.addf %500, %504 : vector<8x324xf32>
    %c3_239 = arith.constant 3 : index
    %c0_240 = arith.constant 0 : index
    %c19_241 = arith.constant 19 : index
    %506 = vector.load %arg5[%c3_239, %c0_240, %c19_241] : memref<4x8x384xf32, #tpu.memory_space<vmem>>, vector<1x8x324xf32>
    %507 = vector.shape_cast %506 : vector<1x8x324xf32> to vector<8x324xf32>
    %508 = vector.shape_cast %505 : vector<8x324xf32> to vector<1x8x324xf32>
    tpu.vector_store %arg5[%c3_239, %c0_240, %c19_241], %508 {strides = array<i32>} : memref<4x8x384xf32, #tpu.memory_space<vmem>>, vector<1x8x324xf32>,
    %cst_242 = arith.constant 0.000000e+00 : f32
    %509 = vector.broadcast %cst_242 : f32 to vector<8x324xf32>
    %c0_243 = arith.constant 0 : index
    %c0_244 = arith.constant 0 : index
    %c0_245 = arith.constant 0 : index
    %510 = vector.load %arg5[%c0_243, %c0_244, %c0_245] : memref<4x8x384xf32, #tpu.memory_space<vmem>>, vector<1x8x324xf32>
    %511 = vector.shape_cast %510 : vector<1x8x324xf32> to vector<8x324xf32>
    %c0_246 = arith.constant 0 : index
    %c0_247 = arith.constant 0 : index
    %512 = vector.load %arg3[%c0_246, %c0_247] : memref<8x128xf32, #tpu.memory_space<vmem>>, vector<8x1xf32>
    %513 = vector.broadcast %512 : vector<8x1xf32> to vector<8x324xf32>
    %514 = arith.mulf %513, %511 : vector<8x324xf32>
    %515 = arith.addf %509, %514 : vector<8x324xf32>
    %c0_248 = arith.constant 0 : index
    %c0_249 = arith.constant 0 : index
    %c1_250 = arith.constant 1 : index
    %516 = vector.load %arg5[%c0_248, %c0_249, %c1_250] : memref<4x8x384xf32, #tpu.memory_space<vmem>>, vector<1x8x324xf32>
    %517 = vector.shape_cast %516 : vector<1x8x324xf32> to vector<8x324xf32>
    %c0_251 = arith.constant 0 : index
    %c1_252 = arith.constant 1 : index
    %518 = vector.load %arg3[%c0_251, %c1_252] : memref<8x128xf32, #tpu.memory_space<vmem>>, vector<8x1xf32>
    %519 = vector.broadcast %518 : vector<8x1xf32> to vector<8x324xf32>
    %520 = arith.mulf %519, %517 : vector<8x324xf32>
    %521 = arith.addf %515, %520 : vector<8x324xf32>
    %c0_253 = arith.constant 0 : index
    %c0_254 = arith.constant 0 : index
    %c2_255 = arith.constant 2 : index
    %522 = vector.load %arg5[%c0_253, %c0_254, %c2_255] : memref<4x8x384xf32, #tpu.memory_space<vmem>>, vector<1x8x324xf32>
    %523 = vector.shape_cast %522 : vector<1x8x324xf32> to vector<8x324xf32>
    %c0_256 = arith.constant 0 : index
    %c2_257 = arith.constant 2 : index
    %524 = vector.load %arg3[%c0_256, %c2_257] : memref<8x128xf32, #tpu.memory_space<vmem>>, vector<8x1xf32>
    %525 = vector.broadcast %524 : vector<8x1xf32> to vector<8x324xf32>
    %526 = arith.mulf %525, %523 : vector<8x324xf32>
    %527 = arith.addf %521, %526 : vector<8x324xf32>
    %c0_258 = arith.constant 0 : index
    %c0_259 = arith.constant 0 : index
    %c18_260 = arith.constant 18 : index
    %528 = vector.load %arg5[%c0_258, %c0_259, %c18_260] : memref<4x8x384xf32, #tpu.memory_space<vmem>>, vector<1x8x324xf32>
    %529 = vector.shape_cast %528 : vector<1x8x324xf32> to vector<8x324xf32>
    %c0_261 = arith.constant 0 : index
    %c3_262 = arith.constant 3 : index
    %530 = vector.load %arg3[%c0_261, %c3_262] : memref<8x128xf32, #tpu.memory_space<vmem>>, vector<8x1xf32>
    %531 = vector.broadcast %530 : vector<8x1xf32> to vector<8x324xf32>
    %532 = arith.mulf %531, %529 : vector<8x324xf32>
    %533 = arith.addf %527, %532 : vector<8x324xf32>
    %c0_263 = arith.constant 0 : index
    %c0_264 = arith.constant 0 : index
    %c19_265 = arith.constant 19 : index
    %534 = vector.load %arg5[%c0_263, %c0_264, %c19_265] : memref<4x8x384xf32, #tpu.memory_space<vmem>>, vector<1x8x324xf32>
    %535 = vector.shape_cast %534 : vector<1x8x324xf32> to vector<8x324xf32>
    %c0_266 = arith.constant 0 : index
    %c4_267 = arith.constant 4 : index
    %536 = vector.load %arg3[%c0_266, %c4_267] : memref<8x128xf32, #tpu.memory_space<vmem>>, vector<8x1xf32>
    %537 = vector.broadcast %536 : vector<8x1xf32> to vector<8x324xf32>
    %538 = arith.mulf %537, %535 : vector<8x324xf32>
    %539 = arith.addf %533, %538 : vector<8x324xf32>
    %c0_268 = arith.constant 0 : index
    %c0_269 = arith.constant 0 : index
    %c20_270 = arith.constant 20 : index
    %540 = vector.load %arg5[%c0_268, %c0_269, %c20_270] : memref<4x8x384xf32, #tpu.memory_space<vmem>>, vector<1x8x324xf32>
    %541 = vector.shape_cast %540 : vector<1x8x324xf32> to vector<8x324xf32>
    %c0_271 = arith.constant 0 : index
    %c5_272 = arith.constant 5 : index
    %542 = vector.load %arg3[%c0_271, %c5_272] : memref<8x128xf32, #tpu.memory_space<vmem>>, vector<8x1xf32>
    %543 = vector.broadcast %542 : vector<8x1xf32> to vector<8x324xf32>
    %544 = arith.mulf %543, %541 : vector<8x324xf32>
    %545 = arith.addf %539, %544 : vector<8x324xf32>
    %c0_273 = arith.constant 0 : index
    %c0_274 = arith.constant 0 : index
    %c36_275 = arith.constant 36 : index
    %546 = vector.load %arg5[%c0_273, %c0_274, %c36_275] : memref<4x8x384xf32, #tpu.memory_space<vmem>>, vector<1x8x324xf32>
    %547 = vector.shape_cast %546 : vector<1x8x324xf32> to vector<8x324xf32>
    %c0_276 = arith.constant 0 : index
    %c6_277 = arith.constant 6 : index
    %548 = vector.load %arg3[%c0_276, %c6_277] : memref<8x128xf32, #tpu.memory_space<vmem>>, vector<8x1xf32>
    %549 = vector.broadcast %548 : vector<8x1xf32> to vector<8x324xf32>
    %550 = arith.mulf %549, %547 : vector<8x324xf32>
    %551 = arith.addf %545, %550 : vector<8x324xf32>
    %c0_278 = arith.constant 0 : index
    %c0_279 = arith.constant 0 : index
    %c37_280 = arith.constant 37 : index
    %552 = vector.load %arg5[%c0_278, %c0_279, %c37_280] : memref<4x8x384xf32, #tpu.memory_space<vmem>>, vector<1x8x324xf32>
    %553 = vector.shape_cast %552 : vector<1x8x324xf32> to vector<8x324xf32>
    %c0_281 = arith.constant 0 : index
    %c7_282 = arith.constant 7 : index
    %554 = vector.load %arg3[%c0_281, %c7_282] : memref<8x128xf32, #tpu.memory_space<vmem>>, vector<8x1xf32>
    %555 = vector.broadcast %554 : vector<8x1xf32> to vector<8x324xf32>
    %556 = arith.mulf %555, %553 : vector<8x324xf32>
    %557 = arith.addf %551, %556 : vector<8x324xf32>
    %c0_283 = arith.constant 0 : index
    %c0_284 = arith.constant 0 : index
    %c38_285 = arith.constant 38 : index
    %558 = vector.load %arg5[%c0_283, %c0_284, %c38_285] : memref<4x8x384xf32, #tpu.memory_space<vmem>>, vector<1x8x324xf32>
    %559 = vector.shape_cast %558 : vector<1x8x324xf32> to vector<8x324xf32>
    %c0_286 = arith.constant 0 : index
    %c8_287 = arith.constant 8 : index
    %560 = vector.load %arg3[%c0_286, %c8_287] : memref<8x128xf32, #tpu.memory_space<vmem>>, vector<8x1xf32>
    %561 = vector.broadcast %560 : vector<8x1xf32> to vector<8x324xf32>
    %562 = arith.mulf %561, %559 : vector<8x324xf32>
    %563 = arith.addf %557, %562 : vector<8x324xf32>
    %c1_288 = arith.constant 1 : index
    %c0_289 = arith.constant 0 : index
    %c0_290 = arith.constant 0 : index
    %564 = vector.load %arg5[%c1_288, %c0_289, %c0_290] : memref<4x8x384xf32, #tpu.memory_space<vmem>>, vector<1x8x324xf32>
    %565 = vector.shape_cast %564 : vector<1x8x324xf32> to vector<8x324xf32>
    %c0_291 = arith.constant 0 : index
    %c9_292 = arith.constant 9 : index
    %566 = vector.load %arg3[%c0_291, %c9_292] : memref<8x128xf32, #tpu.memory_space<vmem>>, vector<8x1xf32>
    %567 = vector.broadcast %566 : vector<8x1xf32> to vector<8x324xf32>
    %568 = arith.mulf %567, %565 : vector<8x324xf32>
    %569 = arith.addf %563, %568 : vector<8x324xf32>
    %c1_293 = arith.constant 1 : index
    %c0_294 = arith.constant 0 : index
    %c1_295 = arith.constant 1 : index
    %570 = vector.load %arg5[%c1_293, %c0_294, %c1_295] : memref<4x8x384xf32, #tpu.memory_space<vmem>>, vector<1x8x324xf32>
    %571 = vector.shape_cast %570 : vector<1x8x324xf32> to vector<8x324xf32>
    %c0_296 = arith.constant 0 : index
    %c10_297 = arith.constant 10 : index
    %572 = vector.load %arg3[%c0_296, %c10_297] : memref<8x128xf32, #tpu.memory_space<vmem>>, vector<8x1xf32>
    %573 = vector.broadcast %572 : vector<8x1xf32> to vector<8x324xf32>
    %574 = arith.mulf %573, %571 : vector<8x324xf32>
    %575 = arith.addf %569, %574 : vector<8x324xf32>
    %c1_298 = arith.constant 1 : index
    %c0_299 = arith.constant 0 : index
    %c2_300 = arith.constant 2 : index
    %576 = vector.load %arg5[%c1_298, %c0_299, %c2_300] : memref<4x8x384xf32, #tpu.memory_space<vmem>>, vector<1x8x324xf32>
    %577 = vector.shape_cast %576 : vector<1x8x324xf32> to vector<8x324xf32>
    %c0_301 = arith.constant 0 : index
    %c11_302 = arith.constant 11 : index
    %578 = vector.load %arg3[%c0_301, %c11_302] : memref<8x128xf32, #tpu.memory_space<vmem>>, vector<8x1xf32>
    %579 = vector.broadcast %578 : vector<8x1xf32> to vector<8x324xf32>
    %580 = arith.mulf %579, %577 : vector<8x324xf32>
    %581 = arith.addf %575, %580 : vector<8x324xf32>
    %c1_303 = arith.constant 1 : index
    %c0_304 = arith.constant 0 : index
    %c18_305 = arith.constant 18 : index
    %582 = vector.load %arg5[%c1_303, %c0_304, %c18_305] : memref<4x8x384xf32, #tpu.memory_space<vmem>>, vector<1x8x324xf32>
    %583 = vector.shape_cast %582 : vector<1x8x324xf32> to vector<8x324xf32>
    %c0_306 = arith.constant 0 : index
    %c12_307 = arith.constant 12 : index
    %584 = vector.load %arg3[%c0_306, %c12_307] : memref<8x128xf32, #tpu.memory_space<vmem>>, vector<8x1xf32>
    %585 = vector.broadcast %584 : vector<8x1xf32> to vector<8x324xf32>
    %586 = arith.mulf %585, %583 : vector<8x324xf32>
    %587 = arith.addf %581, %586 : vector<8x324xf32>
    %c1_308 = arith.constant 1 : index
    %c0_309 = arith.constant 0 : index
    %c19_310 = arith.constant 19 : index
    %588 = vector.load %arg5[%c1_308, %c0_309, %c19_310] : memref<4x8x384xf32, #tpu.memory_space<vmem>>, vector<1x8x324xf32>
    %589 = vector.shape_cast %588 : vector<1x8x324xf32> to vector<8x324xf32>
    %c0_311 = arith.constant 0 : index
    %c13_312 = arith.constant 13 : index
    %590 = vector.load %arg3[%c0_311, %c13_312] : memref<8x128xf32, #tpu.memory_space<vmem>>, vector<8x1xf32>
    %591 = vector.broadcast %590 : vector<8x1xf32> to vector<8x324xf32>
    %592 = arith.mulf %591, %589 : vector<8x324xf32>
    %593 = arith.addf %587, %592 : vector<8x324xf32>
    %c1_313 = arith.constant 1 : index
    %c0_314 = arith.constant 0 : index
    %c20_315 = arith.constant 20 : index
    %594 = vector.load %arg5[%c1_313, %c0_314, %c20_315] : memref<4x8x384xf32, #tpu.memory_space<vmem>>, vector<1x8x324xf32>
    %595 = vector.shape_cast %594 : vector<1x8x324xf32> to vector<8x324xf32>
    %c0_316 = arith.constant 0 : index
    %c14_317 = arith.constant 14 : index
    %596 = vector.load %arg3[%c0_316, %c14_317] : memref<8x128xf32, #tpu.memory_space<vmem>>, vector<8x1xf32>
    %597 = vector.broadcast %596 : vector<8x1xf32> to vector<8x324xf32>
    %598 = arith.mulf %597, %595 : vector<8x324xf32>
    %599 = arith.addf %593, %598 : vector<8x324xf32>
    %c1_318 = arith.constant 1 : index
    %c0_319 = arith.constant 0 : index
    %c36_320 = arith.constant 36 : index
    %600 = vector.load %arg5[%c1_318, %c0_319, %c36_320] : memref<4x8x384xf32, #tpu.memory_space<vmem>>, vector<1x8x324xf32>
    %601 = vector.shape_cast %600 : vector<1x8x324xf32> to vector<8x324xf32>
    %c0_321 = arith.constant 0 : index
    %c15_322 = arith.constant 15 : index
    %602 = vector.load %arg3[%c0_321, %c15_322] : memref<8x128xf32, #tpu.memory_space<vmem>>, vector<8x1xf32>
    %603 = vector.broadcast %602 : vector<8x1xf32> to vector<8x324xf32>
    %604 = arith.mulf %603, %601 : vector<8x324xf32>
    %605 = arith.addf %599, %604 : vector<8x324xf32>
    %c1_323 = arith.constant 1 : index
    %c0_324 = arith.constant 0 : index
    %c37_325 = arith.constant 37 : index
    %606 = vector.load %arg5[%c1_323, %c0_324, %c37_325] : memref<4x8x384xf32, #tpu.memory_space<vmem>>, vector<1x8x324xf32>
    %607 = vector.shape_cast %606 : vector<1x8x324xf32> to vector<8x324xf32>
    %c0_326 = arith.constant 0 : index
    %c16_327 = arith.constant 16 : index
    %608 = vector.load %arg3[%c0_326, %c16_327] : memref<8x128xf32, #tpu.memory_space<vmem>>, vector<8x1xf32>
    %609 = vector.broadcast %608 : vector<8x1xf32> to vector<8x324xf32>
    %610 = arith.mulf %609, %607 : vector<8x324xf32>
    %611 = arith.addf %605, %610 : vector<8x324xf32>
    %c1_328 = arith.constant 1 : index
    %c0_329 = arith.constant 0 : index
    %c38_330 = arith.constant 38 : index
    %612 = vector.load %arg5[%c1_328, %c0_329, %c38_330] : memref<4x8x384xf32, #tpu.memory_space<vmem>>, vector<1x8x324xf32>
    %613 = vector.shape_cast %612 : vector<1x8x324xf32> to vector<8x324xf32>
    %c0_331 = arith.constant 0 : index
    %c17_332 = arith.constant 17 : index
    %614 = vector.load %arg3[%c0_331, %c17_332] : memref<8x128xf32, #tpu.memory_space<vmem>>, vector<8x1xf32>
    %615 = vector.broadcast %614 : vector<8x1xf32> to vector<8x324xf32>
    %616 = arith.mulf %615, %613 : vector<8x324xf32>
    %617 = arith.addf %611, %616 : vector<8x324xf32>
    %c2_333 = arith.constant 2 : index
    %c0_334 = arith.constant 0 : index
    %c0_335 = arith.constant 0 : index
    %618 = vector.load %arg5[%c2_333, %c0_334, %c0_335] : memref<4x8x384xf32, #tpu.memory_space<vmem>>, vector<1x8x324xf32>
    %619 = vector.shape_cast %618 : vector<1x8x324xf32> to vector<8x324xf32>
    %c0_336 = arith.constant 0 : index
    %c18_337 = arith.constant 18 : index
    %620 = vector.load %arg3[%c0_336, %c18_337] : memref<8x128xf32, #tpu.memory_space<vmem>>, vector<8x1xf32>
    %621 = vector.broadcast %620 : vector<8x1xf32> to vector<8x324xf32>
    %622 = arith.mulf %621, %619 : vector<8x324xf32>
    %623 = arith.addf %617, %622 : vector<8x324xf32>
    %c2_338 = arith.constant 2 : index
    %c0_339 = arith.constant 0 : index
    %c1_340 = arith.constant 1 : index
    %624 = vector.load %arg5[%c2_338, %c0_339, %c1_340] : memref<4x8x384xf32, #tpu.memory_space<vmem>>, vector<1x8x324xf32>
    %625 = vector.shape_cast %624 : vector<1x8x324xf32> to vector<8x324xf32>
    %c0_341 = arith.constant 0 : index
    %c19_342 = arith.constant 19 : index
    %626 = vector.load %arg3[%c0_341, %c19_342] : memref<8x128xf32, #tpu.memory_space<vmem>>, vector<8x1xf32>
    %627 = vector.broadcast %626 : vector<8x1xf32> to vector<8x324xf32>
    %628 = arith.mulf %627, %625 : vector<8x324xf32>
    %629 = arith.addf %623, %628 : vector<8x324xf32>
    %c2_343 = arith.constant 2 : index
    %c0_344 = arith.constant 0 : index
    %c2_345 = arith.constant 2 : index
    %630 = vector.load %arg5[%c2_343, %c0_344, %c2_345] : memref<4x8x384xf32, #tpu.memory_space<vmem>>, vector<1x8x324xf32>
    %631 = vector.shape_cast %630 : vector<1x8x324xf32> to vector<8x324xf32>
    %c0_346 = arith.constant 0 : index
    %c20_347 = arith.constant 20 : index
    %632 = vector.load %arg3[%c0_346, %c20_347] : memref<8x128xf32, #tpu.memory_space<vmem>>, vector<8x1xf32>
    %633 = vector.broadcast %632 : vector<8x1xf32> to vector<8x324xf32>
    %634 = arith.mulf %633, %631 : vector<8x324xf32>
    %635 = arith.addf %629, %634 : vector<8x324xf32>
    %c2_348 = arith.constant 2 : index
    %c0_349 = arith.constant 0 : index
    %c18_350 = arith.constant 18 : index
    %636 = vector.load %arg5[%c2_348, %c0_349, %c18_350] : memref<4x8x384xf32, #tpu.memory_space<vmem>>, vector<1x8x324xf32>
    %637 = vector.shape_cast %636 : vector<1x8x324xf32> to vector<8x324xf32>
    %c0_351 = arith.constant 0 : index
    %c21_352 = arith.constant 21 : index
    %638 = vector.load %arg3[%c0_351, %c21_352] : memref<8x128xf32, #tpu.memory_space<vmem>>, vector<8x1xf32>
    %639 = vector.broadcast %638 : vector<8x1xf32> to vector<8x324xf32>
    %640 = arith.mulf %639, %637 : vector<8x324xf32>
    %641 = arith.addf %635, %640 : vector<8x324xf32>
    %c2_353 = arith.constant 2 : index
    %c0_354 = arith.constant 0 : index
    %c19_355 = arith.constant 19 : index
    %642 = vector.load %arg5[%c2_353, %c0_354, %c19_355] : memref<4x8x384xf32, #tpu.memory_space<vmem>>, vector<1x8x324xf32>
    %643 = vector.shape_cast %642 : vector<1x8x324xf32> to vector<8x324xf32>
    %c0_356 = arith.constant 0 : index
    %c22_357 = arith.constant 22 : index
    %644 = vector.load %arg3[%c0_356, %c22_357] : memref<8x128xf32, #tpu.memory_space<vmem>>, vector<8x1xf32>
    %645 = vector.broadcast %644 : vector<8x1xf32> to vector<8x324xf32>
    %646 = arith.mulf %645, %643 : vector<8x324xf32>
    %647 = arith.addf %641, %646 : vector<8x324xf32>
    %c2_358 = arith.constant 2 : index
    %c0_359 = arith.constant 0 : index
    %c20_360 = arith.constant 20 : index
    %648 = vector.load %arg5[%c2_358, %c0_359, %c20_360] : memref<4x8x384xf32, #tpu.memory_space<vmem>>, vector<1x8x324xf32>
    %649 = vector.shape_cast %648 : vector<1x8x324xf32> to vector<8x324xf32>
    %c0_361 = arith.constant 0 : index
    %c23_362 = arith.constant 23 : index
    %650 = vector.load %arg3[%c0_361, %c23_362] : memref<8x128xf32, #tpu.memory_space<vmem>>, vector<8x1xf32>
    %651 = vector.broadcast %650 : vector<8x1xf32> to vector<8x324xf32>
    %652 = arith.mulf %651, %649 : vector<8x324xf32>
    %653 = arith.addf %647, %652 : vector<8x324xf32>
    %c2_363 = arith.constant 2 : index
    %c0_364 = arith.constant 0 : index
    %c36_365 = arith.constant 36 : index
    %654 = vector.load %arg5[%c2_363, %c0_364, %c36_365] : memref<4x8x384xf32, #tpu.memory_space<vmem>>, vector<1x8x324xf32>
    %655 = vector.shape_cast %654 : vector<1x8x324xf32> to vector<8x324xf32>
    %c0_366 = arith.constant 0 : index
    %c24_367 = arith.constant 24 : index
    %656 = vector.load %arg3[%c0_366, %c24_367] : memref<8x128xf32, #tpu.memory_space<vmem>>, vector<8x1xf32>
    %657 = vector.broadcast %656 : vector<8x1xf32> to vector<8x324xf32>
    %658 = arith.mulf %657, %655 : vector<8x324xf32>
    %659 = arith.addf %653, %658 : vector<8x324xf32>
    %c2_368 = arith.constant 2 : index
    %c0_369 = arith.constant 0 : index
    %c37_370 = arith.constant 37 : index
    %660 = vector.load %arg5[%c2_368, %c0_369, %c37_370] : memref<4x8x384xf32, #tpu.memory_space<vmem>>, vector<1x8x324xf32>
    %661 = vector.shape_cast %660 : vector<1x8x324xf32> to vector<8x324xf32>
    %c0_371 = arith.constant 0 : index
    %c25_372 = arith.constant 25 : index
    %662 = vector.load %arg3[%c0_371, %c25_372] : memref<8x128xf32, #tpu.memory_space<vmem>>, vector<8x1xf32>
    %663 = vector.broadcast %662 : vector<8x1xf32> to vector<8x324xf32>
    %664 = arith.mulf %663, %661 : vector<8x324xf32>
    %665 = arith.addf %659, %664 : vector<8x324xf32>
    %c2_373 = arith.constant 2 : index
    %c0_374 = arith.constant 0 : index
    %c38_375 = arith.constant 38 : index
    %666 = vector.load %arg5[%c2_373, %c0_374, %c38_375] : memref<4x8x384xf32, #tpu.memory_space<vmem>>, vector<1x8x324xf32>
    %667 = vector.shape_cast %666 : vector<1x8x324xf32> to vector<8x324xf32>
    %c0_376 = arith.constant 0 : index
    %c26_377 = arith.constant 26 : index
    %668 = vector.load %arg3[%c0_376, %c26_377] : memref<8x128xf32, #tpu.memory_space<vmem>>, vector<8x1xf32>
    %669 = vector.broadcast %668 : vector<8x1xf32> to vector<8x324xf32>
    %670 = arith.mulf %669, %667 : vector<8x324xf32>
    %671 = arith.addf %665, %670 : vector<8x324xf32>
    %c3_378 = arith.constant 3 : index
    %c0_379 = arith.constant 0 : index
    %c0_380 = arith.constant 0 : index
    %672 = vector.load %arg5[%c3_378, %c0_379, %c0_380] : memref<4x8x384xf32, #tpu.memory_space<vmem>>, vector<1x8x324xf32>
    %673 = vector.shape_cast %672 : vector<1x8x324xf32> to vector<8x324xf32>
    %c0_381 = arith.constant 0 : index
    %c27_382 = arith.constant 27 : index
    %674 = vector.load %arg3[%c0_381, %c27_382] : memref<8x128xf32, #tpu.memory_space<vmem>>, vector<8x1xf32>
    %675 = vector.broadcast %674 : vector<8x1xf32> to vector<8x324xf32>
    %676 = arith.mulf %675, %673 : vector<8x324xf32>
    %677 = arith.addf %671, %676 : vector<8x324xf32>
    %c3_383 = arith.constant 3 : index
    %c0_384 = arith.constant 0 : index
    %c1_385 = arith.constant 1 : index
    %678 = vector.load %arg5[%c3_383, %c0_384, %c1_385] : memref<4x8x384xf32, #tpu.memory_space<vmem>>, vector<1x8x324xf32>
    %679 = vector.shape_cast %678 : vector<1x8x324xf32> to vector<8x324xf32>
    %c0_386 = arith.constant 0 : index
    %c28_387 = arith.constant 28 : index
    %680 = vector.load %arg3[%c0_386, %c28_387] : memref<8x128xf32, #tpu.memory_space<vmem>>, vector<8x1xf32>
    %681 = vector.broadcast %680 : vector<8x1xf32> to vector<8x324xf32>
    %682 = arith.mulf %681, %679 : vector<8x324xf32>
    %683 = arith.addf %677, %682 : vector<8x324xf32>
    %c3_388 = arith.constant 3 : index
    %c0_389 = arith.constant 0 : index
    %c2_390 = arith.constant 2 : index
    %684 = vector.load %arg5[%c3_388, %c0_389, %c2_390] : memref<4x8x384xf32, #tpu.memory_space<vmem>>, vector<1x8x324xf32>
    %685 = vector.shape_cast %684 : vector<1x8x324xf32> to vector<8x324xf32>
    %c0_391 = arith.constant 0 : index
    %c29_392 = arith.constant 29 : index
    %686 = vector.load %arg3[%c0_391, %c29_392] : memref<8x128xf32, #tpu.memory_space<vmem>>, vector<8x1xf32>
    %687 = vector.broadcast %686 : vector<8x1xf32> to vector<8x324xf32>
    %688 = arith.mulf %687, %685 : vector<8x324xf32>
    %689 = arith.addf %683, %688 : vector<8x324xf32>
    %c3_393 = arith.constant 3 : index
    %c0_394 = arith.constant 0 : index
    %c18_395 = arith.constant 18 : index
    %690 = vector.load %arg5[%c3_393, %c0_394, %c18_395] : memref<4x8x384xf32, #tpu.memory_space<vmem>>, vector<1x8x324xf32>
    %691 = vector.shape_cast %690 : vector<1x8x324xf32> to vector<8x324xf32>
    %c0_396 = arith.constant 0 : index
    %c30_397 = arith.constant 30 : index
    %692 = vector.load %arg3[%c0_396, %c30_397] : memref<8x128xf32, #tpu.memory_space<vmem>>, vector<8x1xf32>
    %693 = vector.broadcast %692 : vector<8x1xf32> to vector<8x324xf32>
    %694 = arith.mulf %693, %691 : vector<8x324xf32>
    %695 = arith.addf %689, %694 : vector<8x324xf32>
    %c3_398 = arith.constant 3 : index
    %c0_399 = arith.constant 0 : index
    %c19_400 = arith.constant 19 : index
    %696 = vector.load %arg5[%c3_398, %c0_399, %c19_400] : memref<4x8x384xf32, #tpu.memory_space<vmem>>, vector<1x8x324xf32>
    %697 = vector.shape_cast %696 : vector<1x8x324xf32> to vector<8x324xf32>
    %c0_401 = arith.constant 0 : index
    %c31_402 = arith.constant 31 : index
    %698 = vector.load %arg3[%c0_401, %c31_402] : memref<8x128xf32, #tpu.memory_space<vmem>>, vector<8x1xf32>
    %699 = vector.broadcast %698 : vector<8x1xf32> to vector<8x324xf32>
    %700 = arith.mulf %699, %697 : vector<8x324xf32>
    %701 = arith.addf %695, %700 : vector<8x324xf32>
    %c3_403 = arith.constant 3 : index
    %c0_404 = arith.constant 0 : index
    %c20_405 = arith.constant 20 : index
    %702 = vector.load %arg5[%c3_403, %c0_404, %c20_405] : memref<4x8x384xf32, #tpu.memory_space<vmem>>, vector<1x8x324xf32>
    %703 = vector.shape_cast %702 : vector<1x8x324xf32> to vector<8x324xf32>
    %c0_406 = arith.constant 0 : index
    %c32_407 = arith.constant 32 : index
    %704 = vector.load %arg3[%c0_406, %c32_407] : memref<8x128xf32, #tpu.memory_space<vmem>>, vector<8x1xf32>
    %705 = vector.broadcast %704 : vector<8x1xf32> to vector<8x324xf32>
    %706 = arith.mulf %705, %703 : vector<8x324xf32>
    %707 = arith.addf %701, %706 : vector<8x324xf32>
    %c3_408 = arith.constant 3 : index
    %c0_409 = arith.constant 0 : index
    %c36_410 = arith.constant 36 : index
    %708 = vector.load %arg5[%c3_408, %c0_409, %c36_410] : memref<4x8x384xf32, #tpu.memory_space<vmem>>, vector<1x8x324xf32>
    %709 = vector.shape_cast %708 : vector<1x8x324xf32> to vector<8x324xf32>
    %c0_411 = arith.constant 0 : index
    %c33_412 = arith.constant 33 : index
    %710 = vector.load %arg3[%c0_411, %c33_412] : memref<8x128xf32, #tpu.memory_space<vmem>>, vector<8x1xf32>
    %711 = vector.broadcast %710 : vector<8x1xf32> to vector<8x324xf32>
    %712 = arith.mulf %711, %709 : vector<8x324xf32>
    %713 = arith.addf %707, %712 : vector<8x324xf32>
    %c3_413 = arith.constant 3 : index
    %c0_414 = arith.constant 0 : index
    %c37_415 = arith.constant 37 : index
    %714 = vector.load %arg5[%c3_413, %c0_414, %c37_415] : memref<4x8x384xf32, #tpu.memory_space<vmem>>, vector<1x8x324xf32>
    %715 = vector.shape_cast %714 : vector<1x8x324xf32> to vector<8x324xf32>
    %c0_416 = arith.constant 0 : index
    %c34_417 = arith.constant 34 : index
    %716 = vector.load %arg3[%c0_416, %c34_417] : memref<8x128xf32, #tpu.memory_space<vmem>>, vector<8x1xf32>
    %717 = vector.broadcast %716 : vector<8x1xf32> to vector<8x324xf32>
    %718 = arith.mulf %717, %715 : vector<8x324xf32>
    %719 = arith.addf %713, %718 : vector<8x324xf32>
    %c3_418 = arith.constant 3 : index
    %c0_419 = arith.constant 0 : index
    %c38_420 = arith.constant 38 : index
    %720 = vector.load %arg5[%c3_418, %c0_419, %c38_420] : memref<4x8x384xf32, #tpu.memory_space<vmem>>, vector<1x8x324xf32>
    %721 = vector.shape_cast %720 : vector<1x8x324xf32> to vector<8x324xf32>
    %c0_421 = arith.constant 0 : index
    %c35_422 = arith.constant 35 : index
    %722 = vector.load %arg3[%c0_421, %c35_422] : memref<8x128xf32, #tpu.memory_space<vmem>>, vector<8x1xf32>
    %723 = vector.broadcast %722 : vector<8x1xf32> to vector<8x324xf32>
    %724 = arith.mulf %723, %721 : vector<8x324xf32>
    %725 = arith.addf %719, %724 : vector<8x324xf32>
    %c0_423 = arith.constant 0 : index
    %c36_424 = arith.constant 36 : index
    %726 = vector.load %arg3[%c0_423, %c36_424] : memref<8x128xf32, #tpu.memory_space<vmem>>, vector<8x1xf32>
    %c0_425 = arith.constant 0 : index
    %c37_426 = arith.constant 37 : index
    %727 = vector.load %arg3[%c0_425, %c37_426] : memref<8x128xf32, #tpu.memory_space<vmem>>, vector<8x1xf32>
    %cst_427 = arith.constant 0.000000e+00 : f32
    %728 = vector.broadcast %cst_427 : f32 to vector<8x324xf32>
    %729 = arith.select %76, %725, %728 : vector<8x324xi1>, vector<8x324xf32>
    %cst_428 = arith.constant dense<0.000000e+00> : vector<8xf32>
    %730 = vector.multi_reduction <add>, %729, %cst_428 [1] : vector<8x324xf32> to vector<8xf32>
    %731 = vector.shape_cast %730 : vector<8xf32> to vector<8x1xf32>
    %cst_429 = arith.constant 0.000000e+00 : f32
    %732 = vector.broadcast %cst_429 : f32 to vector<8x1xf32>
    %733 = arith.mulf %33, %731 : vector<8x1xf32>
    %734 = vector.shape_cast %733 : vector<8x1xf32> to vector<1x8x1xf32>
    %cst_430 = arith.constant dense<0.000000e+00> : vector<1xf32>
    %735 = vector.multi_reduction <add>, %734, %cst_430 [1, 2] : vector<1x8x1xf32> to vector<1xf32>
    %736 = vector.shape_cast %735 : vector<1xf32> to vector<1x1x1xf32>
    %737 = vector.extract %736[0, 0, 0] : f32 from vector<1x1x1xf32>
    %738 = vector.broadcast %737 : f32 to vector<1x1xf32>
    %cst_431 = arith.constant 0.001953125 : f32
    %739 = vector.broadcast %cst_431 : f32 to vector<1x1xf32>
    %740 = arith.mulf %738, %739 : vector<1x1xf32>
    %741 = vector.broadcast %740 : vector<1x1xf32> to vector<8x1xf32>
    %742 = arith.mulf %741, %33 : vector<8x1xf32>
    %743 = arith.addf %732, %742 : vector<8x1xf32>
    %744 = arith.mulf %40, %731 : vector<8x1xf32>
    %745 = vector.shape_cast %744 : vector<8x1xf32> to vector<1x8x1xf32>
    %cst_432 = arith.constant dense<0.000000e+00> : vector<1xf32>
    %746 = vector.multi_reduction <add>, %745, %cst_432 [1, 2] : vector<1x8x1xf32> to vector<1xf32>
    %747 = vector.shape_cast %746 : vector<1xf32> to vector<1x1x1xf32>
    %748 = vector.extract %747[0, 0, 0] : f32 from vector<1x1x1xf32>
    %749 = vector.broadcast %748 : f32 to vector<1x1xf32>
    %cst_433 = arith.constant 0.001953125 : f32
    %750 = vector.broadcast %cst_433 : f32 to vector<1x1xf32>
    %751 = arith.mulf %749, %750 : vector<1x1xf32>
    %752 = vector.broadcast %751 : vector<1x1xf32> to vector<8x1xf32>
    %753 = arith.mulf %752, %40 : vector<8x1xf32>
    %754 = arith.addf %743, %753 : vector<8x1xf32>
    %755 = arith.mulf %47, %731 : vector<8x1xf32>
    %756 = vector.shape_cast %755 : vector<8x1xf32> to vector<1x8x1xf32>
    %cst_434 = arith.constant dense<0.000000e+00> : vector<1xf32>
    %757 = vector.multi_reduction <add>, %756, %cst_434 [1, 2] : vector<1x8x1xf32> to vector<1xf32>
    %758 = vector.shape_cast %757 : vector<1xf32> to vector<1x1x1xf32>
    %759 = vector.extract %758[0, 0, 0] : f32 from vector<1x1x1xf32>
    %760 = vector.broadcast %759 : f32 to vector<1x1xf32>
    %cst_435 = arith.constant 0.001953125 : f32
    %761 = vector.broadcast %cst_435 : f32 to vector<1x1xf32>
    %762 = arith.mulf %760, %761 : vector<1x1xf32>
    %763 = vector.broadcast %762 : vector<1x1xf32> to vector<8x1xf32>
    %764 = arith.mulf %763, %47 : vector<8x1xf32>
    %765 = arith.addf %754, %764 : vector<8x1xf32>
    %766 = arith.mulf %54, %731 : vector<8x1xf32>
    %767 = vector.shape_cast %766 : vector<8x1xf32> to vector<1x8x1xf32>
    %cst_436 = arith.constant dense<0.000000e+00> : vector<1xf32>
    %768 = vector.multi_reduction <add>, %767, %cst_436 [1, 2] : vector<1x8x1xf32> to vector<1xf32>
    %769 = vector.shape_cast %768 : vector<1xf32> to vector<1x1x1xf32>
    %770 = vector.extract %769[0, 0, 0] : f32 from vector<1x1x1xf32>
    %771 = vector.broadcast %770 : f32 to vector<1x1xf32>
    %cst_437 = arith.constant 0.001953125 : f32
    %772 = vector.broadcast %cst_437 : f32 to vector<1x1xf32>
    %773 = arith.mulf %771, %772 : vector<1x1xf32>
    %774 = vector.broadcast %773 : vector<1x1xf32> to vector<8x1xf32>
    %775 = arith.mulf %774, %54 : vector<8x1xf32>
    %776 = arith.addf %765, %775 : vector<8x1xf32>
    %777 = vector.broadcast %776 : vector<8x1xf32> to vector<8x324xf32>
    %778 = arith.subf %725, %777 : vector<8x324xf32>
    %779 = arith.mulf %778, %778 : vector<8x324xf32>
    %cst_438 = arith.constant 0.000000e+00 : f32
    %780 = vector.broadcast %cst_438 : f32 to vector<8x324xf32>
    %781 = arith.select %76, %779, %780 : vector<8x324xi1>, vector<8x324xf32>
    %cst_439 = arith.constant dense<0.000000e+00> : vector<8xf32>
    %782 = vector.multi_reduction <add>, %781, %cst_439 [1] : vector<8x324xf32> to vector<8xf32>
    %783 = vector.shape_cast %782 : vector<8xf32> to vector<8x1xf32>
    %cst_440 = arith.constant 0.000000e+00 : f32
    %784 = vector.broadcast %cst_440 : f32 to vector<8x1xf32>
    %785 = arith.mulf %33, %783 : vector<8x1xf32>
    %786 = vector.shape_cast %785 : vector<8x1xf32> to vector<1x8x1xf32>
    %cst_441 = arith.constant dense<0.000000e+00> : vector<1xf32>
    %787 = vector.multi_reduction <add>, %786, %cst_441 [1, 2] : vector<1x8x1xf32> to vector<1xf32>
    %788 = vector.shape_cast %787 : vector<1xf32> to vector<1x1x1xf32>
    %789 = vector.extract %788[0, 0, 0] : f32 from vector<1x1x1xf32>
    %790 = vector.broadcast %789 : f32 to vector<1x1xf32>
    %cst_442 = arith.constant 0.001953125 : f32
    %791 = vector.broadcast %cst_442 : f32 to vector<1x1xf32>
    %792 = arith.mulf %790, %791 : vector<1x1xf32>
    %793 = vector.broadcast %792 : vector<1x1xf32> to vector<8x1xf32>
    %794 = arith.mulf %793, %33 : vector<8x1xf32>
    %795 = arith.addf %784, %794 : vector<8x1xf32>
    %796 = arith.mulf %40, %783 : vector<8x1xf32>
    %797 = vector.shape_cast %796 : vector<8x1xf32> to vector<1x8x1xf32>
    %cst_443 = arith.constant dense<0.000000e+00> : vector<1xf32>
    %798 = vector.multi_reduction <add>, %797, %cst_443 [1, 2] : vector<1x8x1xf32> to vector<1xf32>
    %799 = vector.shape_cast %798 : vector<1xf32> to vector<1x1x1xf32>
    %800 = vector.extract %799[0, 0, 0] : f32 from vector<1x1x1xf32>
    %801 = vector.broadcast %800 : f32 to vector<1x1xf32>
    %cst_444 = arith.constant 0.001953125 : f32
    %802 = vector.broadcast %cst_444 : f32 to vector<1x1xf32>
    %803 = arith.mulf %801, %802 : vector<1x1xf32>
    %804 = vector.broadcast %803 : vector<1x1xf32> to vector<8x1xf32>
    %805 = arith.mulf %804, %40 : vector<8x1xf32>
    %806 = arith.addf %795, %805 : vector<8x1xf32>
    %807 = arith.mulf %47, %783 : vector<8x1xf32>
    %808 = vector.shape_cast %807 : vector<8x1xf32> to vector<1x8x1xf32>
    %cst_445 = arith.constant dense<0.000000e+00> : vector<1xf32>
    %809 = vector.multi_reduction <add>, %808, %cst_445 [1, 2] : vector<1x8x1xf32> to vector<1xf32>
    %810 = vector.shape_cast %809 : vector<1xf32> to vector<1x1x1xf32>
    %811 = vector.extract %810[0, 0, 0] : f32 from vector<1x1x1xf32>
    %812 = vector.broadcast %811 : f32 to vector<1x1xf32>
    %cst_446 = arith.constant 0.001953125 : f32
    %813 = vector.broadcast %cst_446 : f32 to vector<1x1xf32>
    %814 = arith.mulf %812, %813 : vector<1x1xf32>
    %815 = vector.broadcast %814 : vector<1x1xf32> to vector<8x1xf32>
    %816 = arith.mulf %815, %47 : vector<8x1xf32>
    %817 = arith.addf %806, %816 : vector<8x1xf32>
    %818 = arith.mulf %54, %783 : vector<8x1xf32>
    %819 = vector.shape_cast %818 : vector<8x1xf32> to vector<1x8x1xf32>
    %cst_447 = arith.constant dense<0.000000e+00> : vector<1xf32>
    %820 = vector.multi_reduction <add>, %819, %cst_447 [1, 2] : vector<1x8x1xf32> to vector<1xf32>
    %821 = vector.shape_cast %820 : vector<1xf32> to vector<1x1x1xf32>
    %822 = vector.extract %821[0, 0, 0] : f32 from vector<1x1x1xf32>
    %823 = vector.broadcast %822 : f32 to vector<1x1xf32>
    %cst_448 = arith.constant 0.001953125 : f32
    %824 = vector.broadcast %cst_448 : f32 to vector<1x1xf32>
    %825 = arith.mulf %823, %824 : vector<1x1xf32>
    %826 = vector.broadcast %825 : vector<1x1xf32> to vector<8x1xf32>
    %827 = arith.mulf %826, %54 : vector<8x1xf32>
    %828 = arith.addf %817, %827 : vector<8x1xf32>
    %cst_449 = arith.constant 9.99999974E-6 : f32
    %829 = vector.broadcast %cst_449 : f32 to vector<8x1xf32>
    %830 = arith.addf %828, %829 : vector<8x1xf32>
    %831 = math.rsqrt %830 : vector<8x1xf32>
    %832 = arith.mulf %831, %726 : vector<8x1xf32>
    %833 = vector.broadcast %832 : vector<8x1xf32> to vector<8x324xf32>
    %834 = arith.mulf %778, %833 : vector<8x324xf32>
    %835 = vector.broadcast %727 : vector<8x1xf32> to vector<8x324xf32>
    %836 = arith.addf %834, %835 : vector<8x324xf32>
    %c0_450 = arith.constant 0 : index
    %c19_451 = arith.constant 19 : index
    %837 = vector.load %arg1[%c0_450, %c19_451] : memref<8x384xf32, #tpu.memory_space<vmem>>, vector<8x324xf32>
    %838 = arith.addf %837, %836 : vector<8x324xf32>
    %cst_452 = arith.constant 0.000000e+00 : f32
    %839 = vector.broadcast %cst_452 : f32 to vector<8x324xf32>
    %840 = arith.cmpf oge, %838, %839 : vector<8x324xf32>
    %cst_453 = arith.constant 0.00999999977 : f32
    %841 = vector.broadcast %cst_453 : f32 to vector<8x324xf32>
    %842 = arith.mulf %841, %838 : vector<8x324xf32>
    %843 = arith.select %840, %838, %842 : vector<8x324xi1>, vector<8x324xf32>
    %c0_454 = arith.constant 0 : index
    %c0_455 = arith.constant 0 : index
    %844 = vector.load %arg4[%c0_454, %c0_455] : memref<8x384xf32, #tpu.memory_space<vmem>>, vector<8x324xf32>
    tpu.vector_store %arg4[%c0_454, %c0_455], %843 {strides = array<i32>} : memref<8x384xf32, #tpu.memory_space<vmem>>, vector<8x324xf32>,
    %cst_456 = arith.constant 0.000000e+00 : f32
    %845 = vector.broadcast %cst_456 : f32 to vector<8x60xf32>
    %c0_457 = arith.constant 0 : index
    %c324 = arith.constant 324 : index
    %846 = vector.load %arg4[%c0_457, %c324] : memref<8x384xf32, #tpu.memory_space<vmem>>, vector<8x60xf32>
    tpu.vector_store %arg4[%c0_457, %c324], %845 {strides = array<i32>} : memref<8x384xf32, #tpu.memory_space<vmem>>, vector<8x60xf32>,
    return
  }
  func.func @transform_0(%arg0: i32) -> (i32, i32) {
    %c0_i32 = arith.constant 0 : i32
    %c0_i32_0 = arith.constant 0 : i32
    %c0_i32_1 = arith.constant 0 : i32
    return %c0_i32, %c0_i32_0 : i32, i32
  }
  func.func @transform_1(%arg0: i32) -> (i32, i32) {
    %c0_i32 = arith.constant 0 : i32
    %c0_i32_0 = arith.constant 0 : i32
    %c0_i32_1 = arith.constant 0 : i32
    return %c0_i32, %c0_i32_0 : i32, i32
  }
  func.func @transform_2(%arg0: i32) -> (i32, i32) {
    %c0_i32 = arith.constant 0 : i32
    %c0_i32_0 = arith.constant 0 : i32
    %c0_i32_1 = arith.constant 0 : i32
    return %c0_i32, %c0_i32_0 : i32, i32
  }
  func.func @transform_3(%arg0: i32) -> (i32, i32) {
    %c0_i32 = arith.constant 0 : i32
    %c0_i32_0 = arith.constant 0 : i32
    %c0_i32_1 = arith.constant 0 : i32
    return %c0_i32, %c0_i32_0 : i32, i32
  }
}

</mosaic_0001>

<bundles_post_ra>
// kernel: resblock_forward.1
= control target key start
LH: loop header
LB: loop body
LE: loop exit
PB: predicated region body
PF: predicated region fallthrough
CT: control target
= control target key end

     0   :  { %v4637_v0 = vmov 3   ;;  %v2634_v1 = vmov 1   ;;  %v4636_v3 = vmov 5   ;;  %v2636_v4 = vmov 2   ;;  %s2659_s18 = smov 127   ;;  %s2660_s19 = smov 110   ;;  %s4602_s1 = inlined_call_operand.vmem [shape: f32[8,128], index: 1, kind: input, shape index: {}]   ;;  %s4603_s0 = inlined_call_operand.vmem [shape: f32[8,384], index: 0, kind: input, shape index: {}]   ;;  %s4604_s2 = inlined_call_operand.vmem [shape: f32[8,128], index: 2, kind: input, shape index: {}]   ;;  %s4605_s3 = inlined_call_operand.vmem [shape: f32[8,384], index: 3, kind: output, shape index: {}]  }
   0x1   :  { %2552 = vset.pattern.permute.xlu1 %v4637_v0  ;;  %2550 = vset.pattern.permute.xlu0 %v2634_v1  ;;  %v2706_v2 = vld [vmem:[%s4602_s1] sm:$0xff]  ;;  %v4639_v5 = vmov 4   ;;  %v4638_v6 = vmov 6   ;;  %v4632_v7 = vmov 7   ;;  %v4629_v8 = vmov 10   ;;  %s2661_s20 = smov 108  }
   0x2   :  { %280 = vperm.xlu1 %2552, %v2706_v2   ;;  %230 = vperm.xlu0 %2550, %v2706_v2   ;;  %v4633_v9 = vmov 8   ;;  %v4630_v10 = vmov 11   ;;  %v4623_v11 = vmov 15   ;;  %v4634_v12 = vmov 12   ;;  %s2662_s25 = smov 126   ;;  %s2663_s26 = smov 91  }
   0x3   :  { %2554 = vset.pattern.permute.xlu2 %v4636_v3  ;;  %v4626_v13 = vmov 13   ;;  %v4617_v14 = vmov 0   ;;  %v4627_v15 = vmov 14   ;;  %v4624_v16 = vmov 16   ;;  %s2666_s27 = smov 90   ;;  %s2667_s28 = smov 109  }
   0x4   :  { %330 = vperm.xlu2 %2554, %v2706_v2   ;;  %v4628_v17 = vmov 22   ;;  %v4631_v18 = vmov 17   ;;  %v4619_v19 = vmov 19   ;;  %v4625_v20 = vmov 24   ;;  %s2668_s29 = smov 92   ;;  %s2680_s30 = smov 19  }
   0x5   :  { %v4622_v21 = vmov 20   ;;  %v4618_v22 = vmov 21   ;;  %v4616_v23 = vmov 23   ;;  %v4642_v24 = vlaneseq  ;;  %v92_v27 = vld [vmem:[%s4603_s0] ss:$8 sm:$0x7] }
   0x6   :  { %v4614_v26 = vmov 25   ;;  %v2457_v28 = vld [vmem:[%s4603_s0 + $0x1] ss:$8 sm:$0x7]  ;;  %v94_v29 = vperm.slane %v92_v27, 0  ;;  %v4640_v30 = vmov 0.0  }
   0x7   :  { %v2753_v25 = vshrl.u32 %v4642_v24, 7  ;;  %v106_v32 = vperm.slane %v2457_v28, 0  ;;  %v96_v33 = vperm.slane %v92_v27, 2  ;;  %v108_v34 = vperm.slane %v2457_v28, 2 }
   0x8   :  { %v4621_v42 = vmov 26   ;;  %v95_v43 = vperm.slane %v92_v27, 1  ;;  %v107_v44 = vperm.slane %v2457_v28, 1  ;;  %v2458_v59 = vld [vmem:[%s4603_s0 + $0x2] ss:$8 sm:$0x7] }
   0x9   :  { %4697 = vst [vmem:[#allocation4_spill] sm:$0xff] %v2753_v25  ;;  %vm4672_vm0 = vcmp.eq.s32.totalorder %v2753_v25, 0  ;;  %vm4675_vm1 = vcmp.eq.s32.totalorder %v2753_v25, 2  ;;  %vm4678_vm3 = vcmp.eq.s32.totalorder %v2753_v25, 4  ;;  %vm4673_vm4 = vcmp.eq.s32.totalorder %v2753_v25, 1 }
   0xa   :  { %2551 = vset.pattern.permute.xlu0 %v2636_v4  ;;  %2553 = vset.pattern.permute.xlu1 %v4639_v5  ;;  %vm18_vm2 = vmor %vm4672_vm0, %vm4675_vm1  ;;  %vm4676_vm5 = vcmp.eq.s32.totalorder %v2753_v25, 3  ;;  %vm4668_vm7 = vcmp.eq.s32.totalorder %v2753_v25, 6  ;;  %vm4679_vm8 = vcmp.eq.s32.totalorder %v2753_v25, 5  ;;  %vm4671_vm10 = vcmp.eq.s32.totalorder %v2753_v25, 7 }
   0xb   :  { %255 = vperm.xlu0 %2551, %v2706_v2   ;;  %305 = vperm.xlu1 %2553, %v2706_v2   ;;  %vm20_vm6 = vmor %vm18_vm2, %vm4678_vm3  ;;  %v2459_v60 = vld [vmem:[%s4603_s0 + $0x3] ss:$8 sm:$0x7]  ;;  %v126_v61 = vperm.slane %v2458_v59, 2  ;;  %vm4667_vm14 = vcmask 1039360   ;;  %vm4670_vm15 = vcmask 1031168  }
   0xc   :  { %2555 = vset.pattern.permute.xlu2 %v4638_v6  ;;  %vm22_vm9 = vmor %vm20_vm6, %vm4668_vm7  ;;  %v138_v62 = vperm.slane %v2459_v60, 2  ;;  %vm4669_vm2 = vcmask 900096   ;;  %vm4674_vm6 = vcmask 891904  }
   0xd   :  { %355 = vperm.xlu2 %2555, %v2706_v2   ;;  %v2780_v31 = vsel %vm22_vm9, 1.0, %v4640_v30  ;;  %vm27_vm11 = vmor %vm4673_vm4, %vm4676_vm5  ;;  %vm4677_vm9 = vcmask 883712  }
   0xe   :  { %4698 = vst [vmem:[#allocation5_spill] sm:$0xff] %v2780_v31  ;;  %vm29_vm12 = vmor %vm27_vm11, %vm4679_vm8  ;;  %v100_v35 = vmul.f32 %v2780_v31, %v94_v29  ;;  %v102_v37 = vmul.f32 %v2780_v31, %v96_v33  ;;  %v101_v45 = vmul.f32 %v2780_v31, %v95_v43  ;;  %v132_v63 = vmul.f32 %v2780_v31, %v126_v61 }
   0xf   :  { %vm31_vm13 = vmor %vm29_vm12, %vm4671_vm10  ;;  %v124_v43 = vperm.slane %v2458_v59, 0  ;;  %v125_v61 = vperm.slane %v2458_v59, 1  ;;  %vm4680_vm11 = vcmask 752640   ;;  %vm395_vm12 = vcmask 744448  }
  0x10   :  { %v2792_v36 = vsel %vm31_vm13, 1.0, %v4640_v30  ;;  %vm420_vm13 = vcmask 736256  }
  0x11   :  { %4699 = vst [vmem:[#allocation6_spill] sm:$0xff] %v2792_v36  ;;  %v112_v38 = vmul.f32 %v2792_v36, %v106_v32  ;;  %v114_v39 = vmul.f32 %v2792_v36, %v108_v34  ;;  %v113_v46 = vmul.f32 %v2792_v36, %v107_v44  ;;  %v144_v27 = vmul.f32 %v2792_v36, %v138_v62 }
  0x12   :  { %v136_v44 = vperm.slane %v2459_v60, 0  ;;  %v137_v62 = vperm.slane %v2459_v60, 1 }
  0x13   :  { %2556 = vset.pattern.permute.xlu1 %v4632_v7  ;;  %2558 = vset.pattern.permute.xlu0 %v4629_v8  ;;  %v2797_v40 = vadd.f32 %v112_v38, %v100_v35  ;;  %v2799_v41 = vadd.f32 %v114_v39, %v102_v37  ;;  %v2806_v47 = vadd.f32 %v113_v46, %v101_v45  ;;  %v4607_v45 = vmov 9  }
  0x14   :  { %380 = vperm.xlu1 %2556, %v2706_v2   ;;  %443 = vperm.xlu0 %2558, %v2706_v2   ;;  %v2833_v29 = vadd.f32 %v144_v27, %v132_v63  ;;  %v4612_v46 = vmov 28  }
  0x15   :  { %2557 = vset.pattern.permute.xlu2 %v4633_v9  ;;  %118 = vst [vmem:[#allocation2] sm:$0xff] %v2797_v40 }
  0x16   :  { %405 = vperm.xlu2 %2557, %v2706_v2   ;;  %120 = vst [vmem:[#allocation2 + $0x10] sm:$0xff] %v2799_v41 }
  0x17   :  { %151 = vst [vmem:[#allocation2 + $0x28] sm:$0xff] %v2833_v29 }
  0x1c   :  { %2559 = vset.pattern.permute.xlu1 %v4630_v10  ;;  %2563 = vset.pattern.permute.xlu0 %v4623_v11 }
  0x1d   :  { %467 = vperm.xlu1 %2559, %v2706_v2   ;;  %563 = vperm.xlu0 %2563, %v2706_v2  }
  0x1e   :  { %2560 = vset.pattern.permute.xlu2 %v4634_v12 }
  0x1f   :  { %491 = vperm.xlu2 %2560, %v2706_v2  }
  0x25   :  { %2561 = vset.pattern.permute.xlu1 %v4626_v13  ;;  %2568 = vset.pattern.permute.xlu0 %v4617_v14 }
  0x26   :  { %515 = vperm.xlu1 %2561, %v2706_v2   ;;  %220 = vperm.xlu0 %2568, %v2706_v2  }
  0x27   :  { %2562 = vset.pattern.permute.xlu2 %v4627_v15 }
  0x28   :  { %539 = vperm.xlu2 %2562, %v2706_v2  }
  0x2e   :  { %2564 = vset.pattern.permute.xlu1 %v4624_v16  ;;  %2570 = vset.pattern.permute.xlu0 %v4628_v17  ;;  %v2462_v16 = vld [vmem:[%s4603_s0 + $0x6] ss:$8 sm:$0x7] }
  0x2f   :  { %587 = vperm.xlu1 %2564, %v2706_v2   ;;  %720 = vperm.xlu0 %2570, %v2706_v2   ;;  %v188_v15 = vperm.slane %v2462_v16, 2 }
  0x30   :  { %2565 = vset.pattern.permute.xlu2 %v4631_v18 }
  0x31   :  { %611 = vperm.xlu2 %2565, %v2706_v2   ;;  %v194_v18 = vmul.f32 %v2780_v31, %v188_v15 }
  0x37   :  { %2566 = vset.pattern.permute.xlu1 %v4619_v19  ;;  %2572 = vset.pattern.permute.xlu0 %v4625_v20  ;;  %v186_v20 = vperm.slane %v2462_v16, 0 }
  0x38   :  { %648 = vperm.xlu1 %2566, %v2706_v2   ;;  %768 = vperm.xlu0 %2572, %v2706_v2  }
  0x39   :  { %2567 = vset.pattern.permute.xlu2 %v4622_v21  ;;  %v192_v8 = vmul.f32 %v2780_v31, %v186_v20 }
  0x3a   :  { %672 = vperm.xlu2 %2567, %v2706_v2  }
  0x40   :  { %2569 = vset.pattern.permute.xlu1 %v4618_v22  ;;  %2574 = vset.pattern.permute.xlu0 %v4621_v42 }
  0x41   :  { %696 = vperm.xlu1 %2569, %v2706_v2  }
  0x42   :  { %2571 = vset.pattern.permute.xlu2 %v4616_v23 }
  0x43   :  { %744 = vperm.xlu2 %2571, %v2706_v2  }
  0x4b   :  { %2573 = vset.pattern.permute.xlu2 %v4614_v26 }
  0x4c   :  { %792 = vperm.xlu2 %2573, %v2706_v2  }
  0x54   :  { %2575 = vset.pattern.permute.xlu2 %v4612_v46 }
  0x5e   :  { %v2814_v53 = vpop.permute.xlu2 %330 }
  0x5f   :  { %v333_v54 = vmul.f32 %v2814_v53, %v2797_v40  ;;  %v334_v59 = vmul.f32 %v2814_v53, %v2806_v47 }
  0x67   :  { %v2831_v28 = vpop.permute.xlu2 %355 }
  0x70   :  { %v2847_v39 = vpop.permute.xlu2 %405 }
  0x74   :  { %v281_v48 = vpop.permute.xlu1 %280  ;;  %v231_v49 = vpop.permute.xlu0 %230 }
  0x75   :  { %v234_v50 = vmul.f32 %v231_v49, %v2806_v47  ;;  %v283_v51 = vmul.f32 %v281_v48, %v2797_v40  ;;  %v233_v52 = vmul.f32 %v231_v49, %v2797_v40  ;;  %v235_v56 = vmul.f32 %v231_v49, %v2799_v41 }
  0x76   :  { %v285_v37 = vmul.f32 %v281_v48, %v2799_v41  ;;  %v284_v38 = vmul.f32 %v281_v48, %v2806_v47  ;;  %v130_v49 = vmul.f32 %v2780_v31, %v124_v43  ;;  %v142_v48 = vmul.f32 %v2792_v36, %v136_v44 }
  0x77   :  { %241 = vrot.lane.b32.xlu1 %v234_v50, %s2659_s18  ;;  %289 = vrot.lane.b32.xlu0 %v283_v51, %s2660_s19  ;;  %v408_v50 = vmul.f32 %v2847_v39, %v2797_v40  ;;  %v4615_v44 = vmov 29  }
  0x78   :  { %239 = vrot.lane.b32.xlu2 %v233_v52, %s2659_s18  ;;  %2577 = vset.pattern.permute.xlu1 %v4615_v44 }
  0x7d   :  { %v256_v55 = vpop.permute.xlu0 %255  ;;  %v306_v58 = vpop.permute.xlu1 %305 }
  0x7e   :  { %v258_v57 = vmul.f32 %v256_v55, %v2797_v40  ;;  %v259_v32 = vmul.f32 %v256_v55, %v2806_v47  ;;  %v260_v33 = vmul.f32 %v256_v55, %v2799_v41  ;;  %v309_v51 = vmul.f32 %v306_v58, %v2806_v47  ;;  %v2862_v55 = vpop.permute.xlu2 %491 }
  0x7f   :  { %339 = vrot.lane.b32.xlu0 %v333_v54, %s2661_s20  ;;  %v308_v52 = vmul.f32 %v306_v58, %v2797_v40  ;;  %v2860_v54 = vadd.f32 %v142_v48, %v130_v49  ;;  %v358_v48 = vmul.f32 %v2831_v28, %v2797_v40 }
  0x80   :  { %243 = vrot.lane.b32.xlu2 %v235_v56, %s2659_s18  ;;  %264 = vrot.lane.b32.xlu1 %v258_v57, %s2662_s25  ;;  %v335_v56 = vmul.f32 %v2814_v53, %v2799_v41  ;;  %v310_v57 = vmul.f32 %v306_v58, %v2799_v41  ;;  %v359_v58 = vmul.f32 %v2831_v28, %v2806_v47 }
  0x81   :  { %149 = vst [vmem:[#allocation2 + $0x18] sm:$0xff] %v2860_v54 }
  0x86   :  { %v2841_v34 = vpop.permute.xlu1 %380  ;;  %v2874_v63 = vpop.permute.xlu0 %443 }
  0x87   :  { %816 = vperm.xlu0 %2574, %v2706_v2   ;;  %v384_v35 = vmul.f32 %v2841_v34, %v2806_v47  ;;  %v2876_v27 = vpop.permute.xlu2 %539  ;;  %v383_v49 = vmul.f32 %v2841_v34, %v2797_v40 }
  0x88   :  { %266 = vrot.lane.b32.xlu2 %v259_v32, %s2662_s25  ;;  %268 = vrot.lane.b32.xlu1 %v260_v33, %s2662_s25  ;;  %v448_v32 = vmul.f32 %v2874_v63, %v2833_v29  ;;  %v131_v33 = vmul.f32 %v2780_v31, %v125_v61 }
  0x8f   :  { %391 = vrot.lane.b32.xlu0 %v384_v35, %s2663_s26  ;;  %v143_v35 = vmul.f32 %v2792_v36, %v137_v62  ;;  %v2894_v43 = vpop.permute.xlu2 %611 }
  0x90   :  { %293 = vrot.lane.b32.xlu2 %v285_v37, %s2660_s19  ;;  %291 = vrot.lane.b32.xlu1 %v284_v38, %s2660_s19  ;;  %v2891_v37 = vpop.permute.xlu1 %467  ;;  %v4606_v38 = vmov 33  }
  0x91   :  { %2576 = vset.pattern.permute.xlu0 %v4607_v45  ;;  %v2887_v60 = vadd.f32 %v143_v35, %v131_v33  ;;  %v360_v33 = vmul.f32 %v2831_v28, %v2799_v41 }
  0x93   :  { %v471_v53 = vmul.f32 %v2891_v37, %v2887_v60 }
  0x97   :  { %414 = vrot.lane.b32.xlu0 %v408_v50, %s2666_s27  ;;  %v494_v50 = vmul.f32 %v2862_v55, %v2860_v54 }
  0x98   :  { %316 = vrot.lane.b32.xlu2 %v309_v51, %s2667_s28  ;;  %314 = vrot.lane.b32.xlu1 %v308_v52, %s2667_s28  ;;  %v2908_v51 = vpop.permute.xlu2 %672  ;;  %v2460_v52 = vld [vmem:[%s4603_s0 + $0x4] ss:$8 sm:$0x7] }
  0x99   :  { %v157_v62 = vperm.slane %v2460_v52, 2  ;;  %v156_v35 = vperm.slane %v2460_v52, 1 }
  0x9f   :  { %433 = vperm.xlu0 %2576, %v2706_v2  }
  0xa0   :  { %343 = vrot.lane.b32.xlu2 %v335_v56, %s2661_s20  ;;  %318 = vrot.lane.b32.xlu1 %v310_v57, %s2667_s28  ;;  %v2461_v56 = vld [vmem:[%s4603_s0 + $0x5] ss:$8 sm:$0x7]  ;;  %v155_v57 = vperm.slane %v2460_v52, 0  ;;  %v410_v52 = vmul.f32 %v2847_v39, %v2799_v41 }
  0xa1   :  { %v167_v61 = vperm.slane %v2461_v56, 0 }
  0xa7   :  { %456 = vrot.lane.b32.xlu0 %v448_v32, %s2659_s18  ;;  %v169_v32 = vperm.slane %v2461_v56, 2 }
  0xa8   :  { %366 = vrot.lane.b32.xlu2 %v359_v58, %s2668_s29  ;;  %341 = vrot.lane.b32.xlu1 %v334_v59, %s2661_s20  ;;  %v168_v58 = vperm.slane %v2461_v56, 1  ;;  %v161_v59 = vmul.f32 %v2780_v31, %v155_v57  ;;  %v385_v57 = vmul.f32 %v2841_v34, %v2799_v41 }
  0xa9   :  { %2581 = vset.pattern.permute.xlu0 %v4606_v38  ;;  %v162_v38 = vmul.f32 %v2780_v31, %v156_v35  ;;  %v4608_v35 = vmov 35  }
  0xaf   :  { %478 = vrot.lane.b32.xlu0 %v471_v53, %s2662_s25  ;;  %v173_v53 = vmul.f32 %v2792_v36, %v167_v61  ;;  %v2939_v61 = vpop.permute.xlu2 %744 }
  0xb0   :  { %389 = vrot.lane.b32.xlu2 %v383_v49, %s2663_s26  ;;  %364 = vrot.lane.b32.xlu1 %v358_v48, %s2668_s29  ;;  %v163_v49 = vmul.f32 %v2780_v31, %v157_v62  ;;  %v175_v48 = vmul.f32 %v2792_v36, %v169_v32  ;;  %v4611_v62 = vmov 30   ;;  %v2945_v32 = vpop.permute.xlu1 %515 }
  0xb1   :  { %v2926_v45 = vadd.f32 %v173_v53, %v161_v59  ;;  %v447_v59 = vmul.f32 %v2874_v63, %v2887_v60  ;;  %v518_v26 = vmul.f32 %v2945_v32, %v2860_v54  ;;  %v520_v23 = vmul.f32 %v2945_v32, %v2833_v29 }
  0xb2   :  { %v2928_v28 = vadd.f32 %v175_v48, %v163_v49  ;;  %v446_v49 = vmul.f32 %v2874_v63, %v2860_v54 }
  0xb3   :  { %4700 = vst [vmem:[#allocation7_spill] sm:$0xff] %v2926_v45 }
  0xb4   :  { %4701 = vst [vmem:[#allocation8_spill] sm:$0xff] %v2928_v28 }
  0xb5   :  { %180 = vst [vmem:[#allocation2 + $0x30] sm:$0xff] %v2926_v45 }
  0xb6   :  { %182 = vst [vmem:[#allocation2 + $0x40] sm:$0xff] %v2928_v28 }
  0xb7   :  { %500 = vrot.lane.b32.xlu0 %v494_v50, %s2660_s19  ;;  %v174_v50 = vmul.f32 %v2792_v36, %v168_v58  ;;  %v2954_v34 = vpop.permute.xlu2 %792 }
  0xb8   :  { %853 = vperm.xlu2 %2575, %v2706_v2   ;;  %368 = vrot.lane.b32.xlu1 %v360_v33, %s2668_s29  ;;  %v409_v33 = vmul.f32 %v2847_v39, %v2806_v47  ;;  %v2957_v58 = vpop.permute.xlu1 %587  ;;  %v4610_v39 = vmov 32   ;;  %v795_v11 = vmul.f32 %v2954_v34, %v2926_v45 }
  0xb9   :  { %v2935_v56 = vadd.f32 %v174_v50, %v162_v38  ;;  %v542_v38 = vmul.f32 %v2876_v27, %v2860_v54  ;;  %v591_v48 = vmul.f32 %v2957_v58, %v2887_v60 }
  0xbb   :  { %4702 = vst [vmem:[#allocation9_spill] sm:$0xff] %v2935_v56 }
  0xbf   :  { %973 = vperm.xlu0 %2581, %v2706_v2  }
  0xc0   :  { %418 = vrot.lane.b32.xlu2 %v410_v52, %s2666_s27  ;;  %393 = vrot.lane.b32.xlu1 %v385_v57, %s2663_s26  ;;  %v2971_v50 = vpop.permute.xlu1 %648  ;;  %v470_v52 = vmul.f32 %v2891_v37, %v2860_v54  ;;  %v2978_v57 = vpop.permute.xlu0 %563 }
  0xc1   :  { %2578 = vset.pattern.permute.xlu2 %v4611_v62  ;;  %v567_v19 = vmul.f32 %v2978_v57, %v2887_v60  ;;  %v566_v21 = vmul.f32 %v2978_v57, %v2860_v54 }
  0xc7   :  { %548 = vrot.lane.b32.xlu0 %v542_v38, %s2661_s20  ;;  %v4609_v38 = vmov 31  }
  0xc8   :  { %901 = vperm.xlu2 %2578, %v2706_v2   ;;  %416 = vrot.lane.b32.xlu1 %v409_v33, %s2666_s27  ;;  %v615_v33 = vmul.f32 %v2894_v43, %v2887_v60 }
  0xc9   :  { %2583 = vset.pattern.permute.xlu0 %v4608_v35  ;;  %v496_v35 = vmul.f32 %v2862_v55, %v2833_v29 }
  0xcf   :  { %1021 = vperm.xlu0 %2583, %v2706_v2  }
  0xd0   :  { %454 = vrot.lane.b32.xlu2 %v447_v59, %s2659_s18  ;;  %877 = vperm.xlu1 %2577, %v2706_v2   ;;  %v2986_v59 = vpop.permute.xlu1 %696 }
  0xd1   :  { %2580 = vset.pattern.permute.xlu2 %v4610_v39  ;;  %v4613_v39 = vmov 34  }
  0xd2   :  { %v2965_v53 = vpop.permute.xlu2 %239 }
  0xd7   :  { %598 = vrot.lane.b32.xlu0 %v591_v48, %s2663_s26 }
  0xd8   :  { %476 = vrot.lane.b32.xlu2 %v470_v52, %s2662_s25  ;;  %452 = vrot.lane.b32.xlu1 %v446_v49, %s2659_s18  ;;  %v2992_v49 = vpop.permute.xlu0 %220  ;;  %v651_v52 = vmul.f32 %v2971_v50, %v2926_v45 }
  0xd9   :  { %2579 = vset.pattern.permute.xlu1 %v4609_v38  ;;  %v472_v38 = vmul.f32 %v2891_v37, %v2833_v29  ;;  %v675_v37 = vmul.f32 %v2908_v51, %v2926_v45 }
  0xda   :  { %v2981_v63 = vpop.permute.xlu2 %243 }
  0xdf   :  { %622 = vrot.lane.b32.xlu0 %v615_v33, %s2666_s27 }
  0xe0   :  { %949 = vperm.xlu2 %2580, %v2706_v2   ;;  %925 = vperm.xlu1 %2579, %v2706_v2   ;;  %v3009_v46 = vpop.permute.xlu0 %720 }
  0xe1   :  { %v725_v5 = vmul.f32 %v3009_v46, %v2928_v28 }
  0xe2   :  { %v2990_v48 = vpop.permute.xlu2 %266 }
  0xe7   :  { %657 = vrot.lane.b32.xlu0 %v651_v52, %s2659_s18  ;;  %v519_v52 = vmul.f32 %v2945_v32, %v2887_v60  ;;  %v747_v32 = vmul.f32 %v2939_v61, %v2926_v45 }
  0xe8   :  { %504 = vrot.lane.b32.xlu2 %v496_v35, %s2660_s19  ;;  %480 = vrot.lane.b32.xlu1 %v472_v38, %s2662_s25  ;;  %v495_v35 = vmul.f32 %v2862_v55, %v2887_v60  ;;  %v3028_v44 = vpop.permute.xlu0 %768 }
  0xe9   :  { %v3003_v33 = vpop.permute.xlu1 %241  ;;  %2582 = vset.pattern.permute.xlu2 %v4613_v39  ;;  %2588 = vset.pattern.permute.xlu1 %v2636_v4  ;;  %v699_v39 = vmul.f32 %v2986_v59, %v2926_v45  ;;  %v771_v42 = vmul.f32 %v3028_v44, %v2926_v45  ;;  %v772_v24 = vmul.f32 %v3028_v44, %v2935_v56 }
  0xea   :  { %v3007_v62 = vpop.permute.xlu2 %293 }
  0xef   :  { %681 = vrot.lane.b32.xlu0 %v675_v37, %s2662_s25 }
  0xf0   :  { %526 = vrot.lane.b32.xlu2 %v519_v52, %s2667_s28  ;;  %502 = vrot.lane.b32.xlu1 %v495_v35, %s2660_s19  ;;  %v723_v52 = vmul.f32 %v3009_v46, %v2926_v45  ;;  %v544_v35 = vmul.f32 %v2876_v27, %v2833_v29 }
  0xf2   :  { %v3020_v4 = vpop.permute.xlu2 %316  ;;  %v3022_v38 = vpop.permute.xlu1 %264 }
  0xf7   :  { %705 = vrot.lane.b32.xlu0 %v699_v39, %s2660_s19  ;;  %v4620_v39 = vmov 18  }
  0xf8   :  { %997 = vperm.xlu2 %2582, %v2706_v2   ;;  %524 = vrot.lane.b32.xlu1 %v518_v26, %s2667_s28  ;;  %v3046_v26 = vpop.permute.xlu0 %289 }
  0xfa   :  { %v3033_v55 = vpop.permute.xlu2 %343  ;;  %v3035_v37 = vpop.permute.xlu1 %268 }
  0xff   :  { %729 = vrot.lane.b32.xlu0 %v723_v52, %s2667_s28  ;;  %v543_v52 = vmul.f32 %v2876_v27, %v2887_v60  ;;  %v590_v27 = vmul.f32 %v2957_v58, %v2860_v54 }
 0x100   :  { %552 = vrot.lane.b32.xlu2 %v544_v35, %s2661_s20  ;;  %528 = vrot.lane.b32.xlu1 %v520_v23, %s2667_s28 }
 0x101   :  { %2584 = vset.pattern.permute.xlu2 %v4620_v39  ;;  %v3066_v39 = vpop.permute.xlu0 %339 }
 0x102   :  { %v3049_v14 = vpop.permute.xlu2 %366  ;;  %v3051_v22 = vpop.permute.xlu1 %291 }
 0x107   :  { %753 = vrot.lane.b32.xlu0 %v747_v32, %s2661_s20 }
 0x108   :  { %574 = vrot.lane.b32.xlu2 %v567_v19, %s2668_s29  ;;  %550 = vrot.lane.b32.xlu1 %v543_v52, %s2661_s20 }
 0x109   :  { %v3081_v52 = vpop.permute.xlu0 %816 }
 0x10a   :  { %v3062_v23 = vpop.permute.xlu2 %389  ;;  %v3064_v35 = vpop.permute.xlu1 %314 }
 0x10f   :  { %777 = vrot.lane.b32.xlu0 %v771_v42, %s2668_s29  ;;  %v2463_v42 = vld [vmem:[%s4603_s0 + $0x7] ss:$8 sm:$0x7] }
 0x110   :  { %596 = vrot.lane.b32.xlu2 %v590_v27, %s2663_s26  ;;  %572 = vrot.lane.b32.xlu1 %v566_v21, %s2668_s29  ;;  %v614_v21 = vmul.f32 %v2894_v43, %v2860_v54  ;;  %v568_v27 = vmul.f32 %v2978_v57, %v2833_v29  ;;  %v198_v13 = vperm.slane %v2463_v42, 0  ;;  %v200_v17 = vperm.slane %v2463_v42, 2 }
 0x111   :  { %v3117_v15 = vpop.permute.xlu0 %391 }
 0x112   :  { %v3077_v19 = vpop.permute.xlu2 %853  ;;  %v3079_v32 = vpop.permute.xlu1 %318  ;;  %v204_v10 = vmul.f32 %v2792_v36, %v198_v13  ;;  %v206_v7 = vmul.f32 %v2792_v36, %v200_v17  ;;  %v592_v13 = vmul.f32 %v2957_v58, %v2833_v29  ;;  %v616_v17 = vmul.f32 %v2894_v43, %v2833_v29 }
 0x113   :  { %v652_v43 = vmul.f32 %v2971_v50, %v2935_v56 }
 0x114   :  { %v3108_v12 = vadd.f32 %v204_v10, %v192_v8  ;;  %v653_v10 = vmul.f32 %v2971_v50, %v2928_v28  ;;  %v187_v50 = vperm.slane %v2462_v16, 1 }
 0x116   :  { %4703 = vst [vmem:[#allocation10_spill] sm:$0xff] %v3108_v12  ;;  %v193_v0 = vmul.f32 %v2780_v31, %v187_v50  ;;  %v749_v50 = vmul.f32 %v2939_v61, %v2928_v28 }
 0x117   :  { %801 = vrot.lane.b32.xlu0 %v795_v11, %s2663_s26  ;;  %v819_v11 = vmul.f32 %v3081_v52, %v2926_v45  ;;  %211 = vst [vmem:[#allocation2 + $0x48] sm:$0xff] %v3108_v12 }
 0x118   :  { %620 = vrot.lane.b32.xlu2 %v614_v21, %s2666_s27  ;;  %576 = vrot.lane.b32.xlu1 %v568_v27, %s2668_s29  ;;  %v3110_v21 = vadd.f32 %v206_v7, %v194_v18  ;;  %v4635_v27 = vmov 27  }
 0x119   :  { %2585 = vset.pattern.permute.xlu0 %v4635_v27  ;;  %v3133_v18 = vpop.permute.xlu0 %414 }
 0x11a   :  { %v3102_v9 = vpop.permute.xlu2 %418  ;;  %v3104_v57 = vpop.permute.xlu1 %341  ;;  %4704 = vst [vmem:[#allocation11_spill] sm:$0xff] %v3110_v21 }
 0x11b   :  { %213 = vst [vmem:[#allocation2 + $0x58] sm:$0xff] %v3110_v21 }
 0x11f   :  { %825 = vrot.lane.b32.xlu0 %v819_v11, %s2666_s27  ;;  %v677_v11 = vmul.f32 %v2908_v51, %v2928_v28 }
 0x120   :  { %638 = vperm.xlu2 %2584, %v2706_v2   ;;  %600 = vrot.lane.b32.xlu1 %v592_v13, %s2663_s26 }
 0x122   :  { %v3122_v7 = vpop.permute.xlu2 %901  ;;  %v3124_v8 = vpop.permute.xlu1 %364 }
 0x127   :  { %843 = vperm.xlu0 %2585, %v2706_v2  }
 0x128   :  { %661 = vrot.lane.b32.xlu2 %v653_v10, %s2659_s18  ;;  %624 = vrot.lane.b32.xlu1 %v616_v17, %s2666_s27  ;;  %v3150_v10 = vpop.permute.xlu0 %433  ;;  %v676_v17 = vmul.f32 %v2908_v51, %v2935_v56  ;;  %v700_v51 = vmul.f32 %v2986_v59, %v2935_v56 }
 0x129   :  { %2587 = vset.pattern.permute.xlu2 %v2634_v1  ;;  %v701_v1 = vmul.f32 %v2986_v59, %v2928_v28  ;;  %v724_v59 = vmul.f32 %v3009_v46, %v2935_v56  ;;  %v748_v46 = vmul.f32 %v2939_v61, %v2935_v56 }
 0x12a   :  { %v3136_v20 = vpop.permute.xlu2 %454  ;;  %v3138_v58 = vpop.permute.xlu1 %368 }
 0x130   :  { %685 = vrot.lane.b32.xlu2 %v677_v11, %s2662_s25  ;;  %659 = vrot.lane.b32.xlu1 %v652_v43, %s2659_s18  ;;  %v199_v11 = vperm.slane %v2463_v42, 1  ;;  %v3162_v3 = vpop.permute.xlu0 %456 }
 0x132   :  { %v3146_v2 = vpop.permute.xlu2 %476  ;;  %v3148_v13 = vpop.permute.xlu1 %393  ;;  %v205_v6 = vmul.f32 %v2792_v36, %v199_v11 }
 0x134   :  { %v3172_v16 = vadd.f32 %v205_v6, %v193_v0 }
 0x136   :  { %4705 = vst [vmem:[#allocation12_spill] sm:$0xff] %v3172_v16  ;;  %v905_v0 = vmul.f32 %v3122_v7, %v3172_v16 }
 0x138   :  { %709 = vrot.lane.b32.xlu2 %v701_v1, %s2660_s19  ;;  %683 = vrot.lane.b32.xlu1 %v676_v17, %s2662_s25 }
 0x13a   :  { %v3158_v27 = vpop.permute.xlu2 %949  ;;  %v3160_v43 = vpop.permute.xlu1 %416 }
 0x13b   :  { %v953_v61 = vmul.f32 %v3158_v27, %v3172_v16 }
 0x140   :  { %733 = vrot.lane.b32.xlu2 %v725_v5, %s2667_s28  ;;  %707 = vrot.lane.b32.xlu1 %v700_v51, %s2660_s19  ;;  %v3185_v5 = vpop.permute.xlu0 %478  ;;  %v773_v51 = vmul.f32 %v3028_v44, %v2928_v28  ;;  %v796_v44 = vmul.f32 %v2954_v34, %v2935_v56 }
 0x142   :  { %v3174_v42 = vpop.permute.xlu2 %504  ;;  %v3176_v1 = vpop.permute.xlu1 %877 }
 0x143   :  { %v881_v17 = vmul.f32 %v3176_v1, %v3172_v16 }
 0x145   :  { %888 = vrot.lane.b32.xlu0 %v881_v17, %s2662_s25 }
 0x148   :  { %757 = vrot.lane.b32.xlu2 %v749_v50, %s2661_s20  ;;  %731 = vrot.lane.b32.xlu1 %v724_v59, %s2667_s28  ;;  %v3202_v17 = vpop.permute.xlu0 %500 }
 0x14a   :  { %v3191_v6 = vpop.permute.xlu2 %526  ;;  %v3193_v11 = vpop.permute.xlu1 %452 }
 0x14d   :  { %912 = vrot.lane.b32.xlu0 %v905_v0, %s2660_s19  ;;  %v797_v0 = vmul.f32 %v2954_v34, %v2928_v28  ;;  %v820_v34 = vmul.f32 %v3081_v52, %v2935_v56 }
 0x150   :  { %781 = vrot.lane.b32.xlu2 %v773_v51, %s2668_s29  ;;  %755 = vrot.lane.b32.xlu1 %v748_v46, %s2661_s20  ;;  %v974_v36 = vpop.permute.xlu0 %973 }
 0x152   :  { %v3204_v50 = vpop.permute.xlu2 %997  ;;  %v926_v59 = vpop.permute.xlu1 %925 }
 0x153   :  { %v929_v30 = vmul.f32 %v926_v59, %v3172_v16 }
 0x155   :  { %936 = vrot.lane.b32.xlu0 %v929_v30, %s2667_s28  ;;  %v821_v30 = vmul.f32 %v3081_v52, %v2928_v28  ;;  %v856_v28 = vmul.f32 %v3077_v19, %v3108_v12 }
 0x158   :  { %805 = vrot.lane.b32.xlu2 %v797_v0, %s2663_s26  ;;  %779 = vrot.lane.b32.xlu1 %v772_v24, %s2668_s29  ;;  %v977_v24 = vmul.f32 %v974_v36, %v3172_v16  ;;  %v3233_v25 = vpop.permute.xlu0 %548 }
 0x15a   :  { %v3216_v51 = vpop.permute.xlu2 %552  ;;  %v3218_v46 = vpop.permute.xlu1 %480 }
 0x15b   :  { %4706 = vst [vmem:[#allocation13_spill] sm:$0xff] %v3216_v51 }
 0x15d   :  { %960 = vrot.lane.b32.xlu0 %v953_v61, %s2661_s20  ;;  %v857_v61 = vmul.f32 %v3077_v19, %v3172_v16 }
 0x160   :  { %829 = vrot.lane.b32.xlu2 %v821_v30, %s2666_s27  ;;  %803 = vrot.lane.b32.xlu1 %v796_v44, %s2663_s26  ;;  %v1001_v30 = vmul.f32 %v3204_v50, %v3172_v16  ;;  %v1022_v52 = vpop.permute.xlu0 %1021 }
 0x162   :  { %v3228_v0 = vpop.permute.xlu2 %574  ;;  %v3230_v31 = vpop.permute.xlu1 %502 }
 0x165   :  { %984 = vrot.lane.b32.xlu0 %v977_v24, %s2668_s29  ;;  %v880_v24 = vmul.f32 %v3176_v1, %v3108_v12 }
 0x168   :  { %864 = vrot.lane.b32.xlu2 %v857_v61, %s2659_s18  ;;  %827 = vrot.lane.b32.xlu1 %v820_v34, %s2666_s27  ;;  %v1025_v61 = vmul.f32 %v1022_v52, %v3172_v16 }
 0x16a   :  { %v3243_v44 = vpop.permute.xlu2 %596  ;;  %v3245_v45 = vpop.permute.xlu1 %524 }
 0x16b   :  { %4707 = vst [vmem:[#allocation14_spill] sm:$0xff] %v3243_v44  ;;  %v858_v44 = vmul.f32 %v3077_v19, %v3110_v21 }
 0x16d   :  { %1008 = vrot.lane.b32.xlu0 %v1001_v30, %s2663_s26  ;;  %v904_v30 = vmul.f32 %v3122_v7, %v3108_v12 }
 0x170   :  { %886 = vrot.lane.b32.xlu2 %v880_v24, %s2662_s25  ;;  %862 = vrot.lane.b32.xlu1 %v856_v28, %s2659_s18  ;;  %v3266_v24 = vpop.permute.xlu0 %598 }
 0x171   :  { %4709 = vst [vmem:[#allocation16_spill] sm:$0xff] %v3266_v24  ;;  %v952_v24 = vmul.f32 %v3158_v27, %v3108_v12 }
 0x172   :  { %v3255_v34 = vpop.permute.xlu2 %620  ;;  %v3257_v56 = vpop.permute.xlu1 %528 }
 0x173   :  { %4708 = vst [vmem:[#allocation15_spill] sm:$0xff] %v3255_v34  ;;  %v928_v34 = vmul.f32 %v926_v59, %v3108_v12 }
 0x175   :  { %1032 = vrot.lane.b32.xlu0 %v1025_v61, %s2666_s27  ;;  %v882_v61 = vmul.f32 %v3176_v1, %v3110_v21 }
 0x178   :  { %910 = vrot.lane.b32.xlu2 %v904_v30, %s2660_s19  ;;  %866 = vrot.lane.b32.xlu1 %v858_v44, %s2659_s18  ;;  %v3279_v30 = vpop.permute.xlu0 %622 }
 0x179   :  { %4711 = vst [vmem:[#allocation18_spill] sm:$0xff] %v3279_v30  ;;  %v930_v30 = vmul.f32 %v926_v59, %v3110_v21 }
 0x17a   :  { %v3268_v28 = vpop.permute.xlu1 %550  ;;  %v3270_v16 = vpop.permute.xlu2 %638 }
 0x17b   :  { %4710 = vst [vmem:[#allocation17_spill] sm:$0xff] %v3270_v16  ;;  %v906_v16 = vmul.f32 %v3122_v7, %v3110_v21  ;;  %v1000_v7 = vmul.f32 %v3204_v50, %v3108_v12 }
 0x180   :  { %934 = vrot.lane.b32.xlu2 %v928_v34, %s2667_s28  ;;  %890 = vrot.lane.b32.xlu1 %v882_v61, %s2662_s25  ;;  %v3291_v34 = vpop.permute.xlu0 %657  ;;  %v976_v61 = vmul.f32 %v974_v36, %v3108_v12 }
 0x181   :  { %4713 = vst [vmem:[#allocation20_spill] sm:$0xff] %v3291_v34 }
 0x182   :  { %v3277_v19 = vpop.permute.xlu1 %572  ;;  %v3281_v44 = vpop.permute.xlu2 %661 }
 0x183   :  { %4712 = vst [vmem:[#allocation19_spill] sm:$0xff] %v3281_v44 }
 0x188   :  { %958 = vrot.lane.b32.xlu2 %v952_v24, %s2661_s20  ;;  %914 = vrot.lane.b32.xlu1 %v906_v16, %s2660_s19  ;;  %v954_v16 = vmul.f32 %v3158_v27, %v3110_v21  ;;  %v3305_v24 = vpop.permute.xlu0 %681 }
 0x189   :  { %4715 = vst [vmem:[#allocation22_spill] sm:$0xff] %v3305_v24 }
 0x18a   :  { %v3289_v1 = vpop.permute.xlu1 %576  ;;  %v3295_v51 = vpop.permute.xlu2 %685 }
 0x18b   :  { %4714 = vst [vmem:[#allocation21_spill] sm:$0xff] %v3295_v51 }
 0x190   :  { %982 = vrot.lane.b32.xlu2 %v976_v61, %s2668_s29  ;;  %938 = vrot.lane.b32.xlu1 %v930_v30, %s2667_s28  ;;  %v1024_v30 = vmul.f32 %v1022_v52, %v3108_v12  ;;  %v978_v61 = vmul.f32 %v974_v36, %v3110_v21  ;;  %v3317_v34 = vpop.permute.xlu0 %705 }
 0x191   :  { %4717 = vst [vmem:[#allocation24_spill] sm:$0xff] %v3317_v34 }
 0x192   :  { %v3299_v44 = vpop.permute.xlu1 %600  ;;  %v3309_v59 = vpop.permute.xlu2 %709 }
 0x193   :  { %4716 = vst [vmem:[#allocation23_spill] sm:$0xff] %v3309_v59 }
 0x198   :  { %1006 = vrot.lane.b32.xlu2 %v1000_v7, %s2663_s26  ;;  %962 = vrot.lane.b32.xlu1 %v954_v16, %s2661_s20  ;;  %v1002_v7 = vmul.f32 %v3204_v50, %v3110_v21  ;;  %v3328_v12 = vpop.permute.xlu0 %729  ;;  %v225_v50 = vmul.f32 %v2992_v49, %v2799_v41  ;;  %v271_v41 = vsel %vm4670_vm15, %v3022_v38, %v2990_v48 }
 0x199   :  { %4719 = vst [vmem:[#allocation26_spill] sm:$0xff] %v3328_v12 }
 0x19a   :  { %v3311_v51 = vpop.permute.xlu1 %624  ;;  %v3321_v24 = vpop.permute.xlu2 %733 }
 0x19b   :  { %4718 = vst [vmem:[#allocation25_spill] sm:$0xff] %v3321_v24 }
 0x1a0   :  { %1030 = vrot.lane.b32.xlu2 %v1024_v30, %s2666_s27  ;;  %986 = vrot.lane.b32.xlu1 %v978_v61, %s2668_s29  ;;  %v1026_v30 = vmul.f32 %v1022_v52, %v3110_v21  ;;  %v3336_v59 = vpop.permute.xlu0 %753  ;;  %v223_v52 = vmul.f32 %v2992_v49, %v2797_v40 }
 0x1a1   :  { %4721 = vst [vmem:[#allocation28_spill] sm:$0xff] %v3336_v59 }
 0x1a2   :  { %v3319_v27 = vpop.permute.xlu1 %659  ;;  %v3330_v36 = vpop.permute.xlu2 %757 }
 0x1a3   :  { %4720 = vst [vmem:[#allocation27_spill] sm:$0xff] %v3330_v36 }
 0x1a8   :  { %1010 = vrot.lane.b32.xlu1 %v1002_v7, %s2663_s26  ;;  %v253_v7 = vadd.f32 %v2981_v63, %v225_v50  ;;  %v3345_v12 = vpop.permute.xlu0 %777 }
 0x1a9   :  { %4723 = vst [vmem:[#allocation30_spill] sm:$0xff] %v3345_v12 }
 0x1aa   :  { %v3326_v16 = vpop.permute.xlu1 %683  ;;  %v3338_v24 = vpop.permute.xlu2 %781 }
 0x1ab   :  { %4722 = vst [vmem:[#allocation29_spill] sm:$0xff] %v3338_v24  ;;  %v246_v24 = vsel %vm4667_vm14, %v2965_v53, %v3003_v33  ;;  %v321_v53 = vsel %vm4674_vm6, %v3064_v35, %v3020_v4 }
 0x1ac   :  { %v251_v50 = vadd.f32 %v246_v24, %v223_v52  ;;  %v346_v24 = vsel %vm4677_vm9, %v3066_v39, %v3104_v57 }
 0x1b0   :  { %1034 = vrot.lane.b32.xlu1 %v1026_v30, %s2666_s27  ;;  %v278_v30 = vadd.f32 %v3035_v37, %v253_v7  ;;  %v296_v7 = vsel %vm4669_vm2, %v3046_v26, %v3051_v22 }
 0x1b2   :  { %v3334_v61 = vpop.permute.xlu1 %707  ;;  %v3350_v21 = vpop.permute.xlu2 %805  ;;  %v303_v40 = vadd.f32 %v3007_v62, %v278_v30 }
 0x1b3   :  { %4724 = vst [vmem:[#allocation31_spill] sm:$0xff] %v3350_v21  ;;  %v276_v21 = vadd.f32 %v271_v41, %v251_v50  ;;  %v371_v41 = vsel %vm4680_vm11, %v3124_v8, %v3049_v14  ;;  %v421_v8 = vsel %vm420_vm13, %v3133_v18, %v3160_v43 }
 0x1b4   :  { %v328_v12 = vadd.f32 %v3079_v32, %v303_v40 }
 0x1b5   :  { %v301_v59 = vadd.f32 %v296_v7, %v276_v21 }
 0x1b6   :  { %v353_v26 = vadd.f32 %v3033_v55, %v328_v12  ;;  %v396_v12 = vsel %vm395_vm12, %v3062_v23, %v3117_v15  ;;  %v436_v23 = vmul.f32 %v3150_v10, %v2860_v54 }
 0x1b7   :  { %v326_v52 = vadd.f32 %v321_v53, %v301_v59  ;;  %v224_v59 = vmul.f32 %v2992_v49, %v2806_v47  ;;  %v438_v53 = vmul.f32 %v3150_v10, %v2833_v29  ;;  %v272_v47 = vsel %vm4670_vm15, %v2990_v48, %v3035_v37 }
 0x1b8   :  { %v378_v21 = vadd.f32 %v3138_v58, %v353_v26  ;;  %v247_v26 = vsel %vm4667_vm14, %v3003_v33, %v2981_v63  ;;  %v297_v29 = vsel %vm4669_vm2, %v3051_v22, %v3007_v62  ;;  %v458_v63 = vsel %vm4667_vm14, %v3193_v11, %v3136_v20 }
 0x1b9   :  { %v351_v35 = vadd.f32 %v346_v24, %v326_v52  ;;  %v252_v49 = vadd.f32 %v247_v26, %v224_v59  ;;  %v347_v22 = vsel %vm4677_vm9, %v3104_v57, %v3033_v55  ;;  %v397_v55 = vsel %vm395_vm12, %v3117_v15, %v3148_v13 }
 0x1ba   :  { %v3340_v34 = vpop.permute.xlu1 %731  ;;  %v3376_v30 = vpop.permute.xlu2 %829  ;;  %v403_v40 = vadd.f32 %v3148_v13, %v378_v21  ;;  %v554_v26 = vsel %vm4677_vm9, %v3233_v25, %v3268_v28 }
 0x1bb   :  { %v376_v50 = vadd.f32 %v371_v41, %v351_v35  ;;  %v277_v33 = vadd.f32 %v272_v47, %v252_v49 }
 0x1bc   :  { %v428_v52 = vadd.f32 %v3102_v9, %v403_v40 }
 0x1bd   :  { %v401_v24 = vadd.f32 %v396_v12, %v376_v50  ;;  %v322_v50 = vsel %vm4674_vm6, %v3020_v4, %v3079_v32  ;;  %v302_v40 = vadd.f32 %v297_v29, %v277_v33  ;;  %v482_v4 = vsel %vm4670_vm15, %v3146_v2, %v3185_v5 }
 0x1be   :  { %v441_v18 = vadd.f32 %v438_v53, %v428_v52  ;;  %v506_v32 = vsel %vm4669_vm2, %v3202_v17, %v3230_v31  ;;  %v422_v17 = vsel %vm420_vm13, %v3160_v43, %v3102_v9  ;;  %v4726_v43 = vld [vmem:[#allocation13_spill] sm:$0xff] }
 0x1bf   :  { %v426_v41 = vadd.f32 %v421_v8, %v401_v24  ;;  %v327_v62 = vadd.f32 %v322_v50, %v302_v40  ;;  %v372_v8 = vsel %vm4680_vm11, %v3049_v14, %v3138_v58  ;;  %v530_v14 = vsel %vm4674_vm6, %v3245_v45, %v3191_v6  ;;  %v4727_v50 = vld [vmem:[#allocation16_spill] sm:$0xff]  ;;  %v4728_v40 = vld [vmem:[#allocation14_spill] sm:$0xff] }
 0x1c0   :  { %v465_v37 = vadd.f32 %v3162_v3, %v441_v18  ;;  %v578_v45 = vsel %vm4680_vm11, %v3277_v19, %v3228_v0  ;;  %v602_v19 = vsel %vm395_vm12, %v4728_v40, %v4727_v50 }
 0x1c1   :  { %v439_v21 = vadd.f32 %v436_v23, %v426_v41  ;;  %v352_v59 = vadd.f32 %v347_v22, %v327_v62  ;;  %v437_v41 = vmul.f32 %v3150_v10, %v2887_v60  ;;  %v459_v10 = vsel %vm4667_vm14, %v3136_v20, %v3162_v3  ;;  %v4729_v62 = vld [vmem:[#allocation8_spill] sm:$0xff]  ;;  %v4733_v3 = vld [vmem:[#allocation7_spill] sm:$0xff] }
 0x1c2   :  { %v3352_v36 = vpop.permute.xlu1 %755  ;;  %v3403_v35 = vpop.permute.xlu2 %864  ;;  %v489_v11 = vadd.f32 %v3218_v46, %v465_v37  ;;  %v483_v37 = vsel %vm4670_vm15, %v3185_v5, %v3218_v46  ;;  %v531_v46 = vsel %vm4674_vm6, %v3191_v6, %v3257_v56  ;;  %v4735_v6 = vld [vmem:[#allocation22_spill] sm:$0xff] }
 0x1c3   :  { %4725 = vst [vmem:[#allocation32_spill] sm:$0xff] %v3352_v36  ;;  %v3368_v36 = vpop.permute.xlu0 %801  ;;  %v463_v48 = vadd.f32 %v458_v63, %v439_v21  ;;  %v377_v57 = vadd.f32 %v372_v8, %v352_v59  ;;  %v4731_v59 = vld [vmem:[#allocation18_spill] sm:$0xff] }
 0x1c4   :  { %v513_v2 = vadd.f32 %v3174_v42, %v489_v11  ;;  %v4730_v11 = vld [vmem:[#allocation17_spill] sm:$0xff] }
 0x1c5   :  { %v487_v53 = vadd.f32 %v482_v4, %v463_v48  ;;  %v402_v23 = vadd.f32 %v397_v55, %v377_v57  ;;  %v643_v8 = vmul.f32 %v4730_v11, %v4729_v62  ;;  %v641_v20 = vmul.f32 %v4730_v11, %v4733_v3 }
 0x1c6   :  { %v537_v13 = vadd.f32 %v3257_v56, %v513_v2  ;;  %v579_v56 = vsel %vm4680_vm11, %v3228_v0, %v3289_v1  ;;  %v627_v0 = vsel %vm420_vm13, %v4731_v59, %v3311_v51 }
 0x1c7   :  { %v511_v58 = vadd.f32 %v506_v32, %v487_v53  ;;  %v427_v47 = vadd.f32 %v422_v17, %v402_v23  ;;  %v507_v32 = vsel %vm4669_vm2, %v3230_v31, %v3174_v42  ;;  %v4732_v53 = vld [vmem:[#allocation15_spill] sm:$0xff]  ;;  %v555_v31 = vsel %vm4677_vm9, %v3268_v28, %v4726_v43  ;;  %v4734_v42 = vld [vmem:[#allocation20_spill] sm:$0xff] }
 0x1c8   :  { %v561_v29 = vadd.f32 %v4726_v43, %v537_v13  ;;  %v626_v55 = vsel %vm420_vm13, %v4732_v53, %v4731_v59  ;;  %v4737_v43 = vld [vmem:[#allocation24_spill] sm:$0xff] }
 0x1c9   :  { %v535_v15 = vadd.f32 %v530_v14, %v511_v58  ;;  %v440_v63 = vadd.f32 %v437_v41, %v427_v47  ;;  %v4736_v47 = vld [vmem:[#allocation19_spill] sm:$0xff] }
 0x1ca   :  { %v3370_v38 = vpop.permute.xlu1 %779  ;;  %v3435_v24 = vpop.permute.xlu2 %886  ;;  %v585_v25 = vadd.f32 %v3289_v1, %v561_v29  ;;  %v711_v29 = vsel %vm4669_vm2, %v4737_v43, %v3334_v61  ;;  %v4738_v1 = vld [vmem:[#allocation26_spill] sm:$0xff]  ;;  %v4741_v62 = vld [vmem:[#allocation32_spill] sm:$0xff] }
 0x1cb   :  { %v3383_v7 = vpop.permute.xlu0 %825  ;;  %v559_v49 = vadd.f32 %v554_v26, %v535_v15  ;;  %v464_v22 = vadd.f32 %v459_v10, %v440_v63  ;;  %v663_v26 = vsel %vm4667_vm14, %v4734_v42, %v3319_v27  ;;  %v735_v40 = vsel %vm4674_vm6, %v4738_v1, %v3340_v34 }
 0x1cc   :  { %v609_v60 = vadd.f32 %v3299_v44, %v585_v25 }
 0x1cd   :  { %v583_v9 = vadd.f32 %v578_v45, %v559_v49  ;;  %v488_v14 = vadd.f32 %v483_v37, %v464_v22  ;;  %v687_v45 = vsel %vm4670_vm15, %v4735_v6, %v3326_v16 }
 0x1ce   :  { %v633_v4 = vadd.f32 %v3311_v51, %v609_v60  ;;  %v4743_v51 = vld [vmem:[#allocation9_spill] sm:$0xff] }
 0x1cf   :  { %v607_v48 = vadd.f32 %v602_v19, %v583_v9  ;;  %v512_v58 = vadd.f32 %v507_v32, %v488_v14  ;;  %v603_v9 = vsel %vm395_vm12, %v4727_v50, %v3299_v44  ;;  %v4740_v50 = vlaneseq  ;;  %v4744_v14 = vld [vmem:[#allocation30_spill] sm:$0xff] }
 0x1d0   :  { %v646_v2 = vadd.f32 %v643_v8, %v633_v4  ;;  %v4742_v8 = vld [vmem:[#allocation28_spill] sm:$0xff]  ;;  %v642_v32 = vmul.f32 %v4730_v11, %v4743_v51  ;;  %v783_v3 = vsel %vm4680_vm11, %v4744_v14, %v3370_v38  ;;  %v664_v11 = vsel %vm4667_vm14, %v3319_v27, %v4736_v47 }
 0x1d1   :  { %v631_v57 = vadd.f32 %v626_v55, %v607_v48  ;;  %v536_v23 = vadd.f32 %v531_v46, %v512_v58  ;;  %v4739_v48 = vld [vmem:[#allocation21_spill] sm:$0xff]  ;;  %v3527_v22 = vand.u32 127, %v4740_v50  ;;  %v759_v4 = vsel %vm4677_vm9, %v4742_v8, %v4741_v62 }
 0x1d2   :  { %v3385_v39 = vpop.permute.xlu1 %803  ;;  %v3462_v33 = vpop.permute.xlu2 %910  ;;  %v670_v49 = vadd.f32 %v4736_v47, %v646_v2 }
 0x1d3   :  { %v3420_v12 = vpop.permute.xlu0 %843  ;;  %v644_v15 = vadd.f32 %v641_v20, %v631_v57  ;;  %v560_v41 = vadd.f32 %v555_v31, %v536_v23  ;;  %v3535_v55 = vadd.s32 256, %v3527_v22  ;;  %v3541_v20 = vadd.s32 128, %v3527_v22  ;;  %v4745_v57 = vld [vmem:[#allocation23_spill] sm:$0xff] }
 0x1d4   :  { %v694_v60 = vadd.f32 %v4739_v48, %v670_v49  ;;  %v807_v31 = vsel %vm395_vm12, %v3368_v36, %v3385_v39  ;;  %v50_v42 = vcvt.s32.f32 %v3527_v22 }
 0x1d5   :  { %v668_v28 = vadd.f32 %v663_v26, %v644_v15  ;;  %v584_v63 = vadd.f32 %v579_v56, %v560_v41  ;;  %v52_v15 = vcvt.s32.f32 %v3535_v55  ;;  %v688_v56 = vsel %vm4670_vm15, %v3326_v16, %v4739_v48 }
 0x1d6   :  { %v718_v46 = vadd.f32 %v4745_v57, %v694_v60  ;;  %v51_v27 = vcvt.s32.f32 %v3541_v20  ;;  %v53_v43 = vadd.f32 0.5, %v50_v42 }
 0x1d7   :  { %v692_v25 = vadd.f32 %v687_v45, %v668_v28  ;;  %v608_v19 = vadd.f32 %v603_v9, %v584_v63  ;;  %v4746_v45 = vld [vmem:[#allocation25_spill] sm:$0xff]  ;;  %v712_v9 = vsel %vm4669_vm2, %v3334_v61, %v4745_v57 }
 0x1d8   :  { %v742_v41 = vadd.f32 %v4746_v45, %v718_v46  ;;  %v54_v1 = vadd.f32 0.5, %v51_v27 }
 0x1d9   :  { %v716_v10 = vadd.f32 %v711_v29, %v692_v25  ;;  %v632_v59 = vadd.f32 %v627_v0, %v608_v19  ;;  %v4747_v29 = vld [vmem:[#allocation10_spill] sm:$0xff]  ;;  %v55_v25 = vadd.f32 0.5, %v52_v15  ;;  %v736_v0 = vsel %vm4674_vm6, %v3340_v34, %v4746_v45  ;;  %v4751_v15 = vld [vmem:[#allocation11_spill] sm:$0xff] }
 0x1da   :  { %v3414_v54 = vpop.permute.xlu1 %827  ;;  %v3500_v13 = vpop.permute.xlu2 %934  ;;  %v846_v63 = vmul.f32 %v3420_v12, %v4747_v29 }
 0x1db   :  { %v3458_v18 = vpop.permute.xlu0 %888  ;;  %v740_v53 = vadd.f32 %v735_v40, %v716_v10  ;;  %v645_v26 = vadd.f32 %v642_v32, %v632_v59  ;;  %v831_v6 = vsel %vm420_vm13, %v3383_v7, %v3414_v54  ;;  %v4748_v40 = vld [vmem:[#allocation27_spill] sm:$0xff]  ;;  %v56_v10 = vmul.f32 0.055555556, %v53_v43  ;;  %v4749_v32 = vld [vmem:[#allocation29_spill] sm:$0xff] }
 0x1dc   :  { %v766_v19 = vadd.f32 %v4748_v40, %v742_v41  ;;  %v760_v60 = vsel %vm4677_vm9, %v4741_v62, %v4748_v40  ;;  %v58_v51 = vmul.f32 0.055555556, %v55_v25  ;;  %v784_v34 = vsel %vm4680_vm11, %v3370_v38, %v4749_v32  ;;  %v4752_v41 = vld [vmem:[#allocation12_spill] sm:$0xff] }
 0x1dd   :  { %v764_v58 = vadd.f32 %v759_v4, %v740_v53  ;;  %v669_v47 = vadd.f32 %v664_v11, %v645_v26  ;;  %v57_v59 = vmul.f32 0.055555556, %v54_v1  ;;  %v892_v38 = vsel %vm4670_vm15, %v3435_v24, %v3458_v18 }
 0x1de   :  { %v790_v53 = vadd.f32 %v4749_v32, %v766_v19  ;;  %v61_v42 = vfloor.f32 %v58_v51  ;;  %v832_v26 = vsel %vm420_vm13, %v3414_v54, %v3376_v30 }
 0x1df   :  { %v788_v23 = vadd.f32 %v783_v3, %v764_v58  ;;  %v693_v16 = vadd.f32 %v688_v56, %v669_v47  ;;  %v59_v58 = vfloor.f32 %v56_v10  ;;  %v848_v56 = vmul.f32 %v3420_v12, %v4751_v15 }
 0x1e0   :  { %v847_v47 = vmul.f32 %v3420_v12, %v4752_v41  ;;  %v4761_v15 = vmov 0 }
 0x1e1   :  { %v812_v36 = vadd.f32 %v807_v31, %v788_v23  ;;  %v717_v48 = vadd.f32 %v712_v9, %v693_v16  ;;  %v60_v23 = vfloor.f32 %v57_v59  ;;  %v2465_v45 = vcvt.f32.s32 %v59_v58 }
 0x1e2   :  { %v3444_v52 = vpop.permute.xlu1 %862  ;;  %v3544_v2 = vpop.permute.xlu2 %958  ;;  %v2469_v9 = vcvt.f32.s32 %v61_v42  ;;  %v4755_v58 = vmov 0 }
 0x1e3   :  { %v3487_v5 = vpop.permute.xlu0 %912  ;;  %v836_v7 = vadd.f32 %v831_v6, %v812_v36  ;;  %v868_v61 = vsel %vm4667_vm14, %v3444_v52, %v3403_v35  ;;  %v741_v50 = vadd.f32 %v736_v0, %v717_v48  ;;  %v4750_v52 = vld [vmem:[#allocation31_spill] sm:$0xff]  ;;  %v2467_v43 = vcvt.f32.s32 %v60_v23 }
 0x1e4   :  { %v808_v46 = vsel %vm395_vm12, %v3385_v39, %v4750_v52  ;;  %v814_v11 = vadd.f32 %v4750_v52, %v790_v53  ;;  %v916_v24 = vsel %vm4669_vm2, %v3462_v33, %v3487_v5  ;;  %v67_v1 = vmul.u32 18, %v2469_v9 }
 0x1e5   :  { %v849_v8 = vadd.f32 %v846_v63, %v836_v7  ;;  %v765_v14 = vadd.f32 %v760_v60, %v741_v50  ;;  %v65_v7 = vmul.u32 18, %v2465_v45  ;;  %v66_v19 = vmul.u32 18, %v2467_v43 }
 0x1e6   :  { %v838_v6 = vadd.f32 %v3376_v30, %v814_v11  ;;  %vm74_vm7 = vcmp.le.s32.totalorder %v2465_v45, 16  ;;  %v70_v50 = vsub.s32 %v3535_v55, %v67_v1  ;;  %vm72_vm10 = vcmp.ge.s32.totalorder %v2467_v43, 1 }
 0x1e7   :  { %v873_v3 = vadd.f32 %v868_v61, %v849_v8  ;;  %v789_v31 = vadd.f32 %v784_v34, %v765_v14  ;;  %v69_v8 = vsub.s32 %v3541_v20, %v66_v19  ;;  %vm75_vm0 = vcmp.le.s32.totalorder %v2467_v43, 16  ;;  %v3725_v19 = vld [vmem:[%s4602_s1] sm:$0xff] }
 0x1e8   :  { %v851_v16 = vadd.f32 %v848_v56, %v838_v6  ;;  %vm82_vm5 = vcmp.ge.s32.totalorder %v70_v50, 1 }
 0x1e9   :  { %v813_v39 = vadd.f32 %v808_v46, %v789_v31  ;;  %v897_v27 = vadd.f32 %v892_v38, %v873_v3  ;;  %v4758_v38 = vmov 0 }
 0x1ea   :  { %v3464_v21 = vpop.permute.xlu1 %866  ;;  %v3581_v4 = vpop.permute.xlu2 %982 }
 0x1eb   :  { %v3522_v37 = vpop.permute.xlu0 %936  ;;  %v837_v36 = vadd.f32 %v832_v26, %v813_v39  ;;  %v921_v54 = vadd.f32 %v916_v24, %v897_v27  ;;  %v869_v30 = vsel %vm4667_vm14, %v3403_v35, %v3464_v21  ;;  %v875_v0 = vadd.f32 %v3464_v21, %v851_v16 }
 0x1ec   :  { %v940_v40 = vsel %vm4674_vm6, %v3500_v13, %v3522_v37  ;;  %v68_v21 = vsub.s32 %v3527_v22, %v65_v7  ;;  %vm71_vm14 = vcmp.ge.s32.totalorder %v2465_v45, 1  ;;  %v4771_v24 = vmov 0.0  }
 0x1ed   :  { %v850_v25 = vadd.f32 %v847_v47, %v837_v36  ;;  %v945_v48 = vadd.f32 %v940_v40, %v921_v54  ;;  %vm3639_vm4 = vmand %vm71_vm14, %vm74_vm7  ;;  %vm81_vm14 = vcmp.ge.s32.totalorder %v69_v8, 1  ;;  %v4681_v36 = vmov 37  }
 0x1ee   :  { %vm78_vm7 = vmand %vm72_vm10, %vm75_vm0  ;;  %vm86_vm3 = vcmp.le.s32.totalorder %v68_v21, 16  ;;  %2586 = vset.pattern.permute.xlu0 %v4681_v36 }
 0x1ef   :  { %v874_v60 = vadd.f32 %v869_v30, %v850_v25  ;;  %vm84_vm8 = vmand %vm78_vm7, %vm81_vm14 }
 0x1f2   :  { %v3492_v17 = vpop.permute.xlu1 %890  ;;  %v1007_v29 = vpop.permute.xlu2 %1006 }
 0x1f3   :  { %v3562_v49 = vpop.permute.xlu0 %960  ;;  %v893_v33 = vsel %vm4670_vm15, %v3458_v18, %v3492_v17  ;;  %v899_v61 = vadd.f32 %v3492_v17, %v875_v0  ;;  %vm76_vm15 = vcmp.le.s32.totalorder %v2469_v9, 16 }
 0x1f4   :  { %v964_v13 = vsel %vm4677_vm9, %v3544_v2, %v3562_v49  ;;  %v898_v10 = vadd.f32 %v893_v33, %v874_v60  ;;  %v3732_v60 = vld [vmem:[%s4604_s2] sm:$0xff] }
 0x1fa   :  { %v3524_v44 = vpop.permute.xlu1 %914  ;;  %v1031_v32 = vpop.permute.xlu2 %1030 }
 0x1fb   :  { %v3587_v62 = vpop.permute.xlu0 %984  ;;  %v917_v35 = vsel %vm4669_vm2, %v3487_v5, %v3524_v44  ;;  %v923_v18 = vadd.f32 %v3524_v44, %v899_v61  ;;  %vm73_vm2 = vcmp.ge.s32.totalorder %v2469_v9, 1  ;;  %v969_v5 = vadd.f32 %v964_v13, %v945_v48  ;;  %v4764_v9 = vld [vmem:[#allocation4_spill] sm:$0xff] }
 0x1fc   :  { %v922_v22 = vadd.f32 %v917_v35, %v898_v10  ;;  %vm79_vm1 = vmand %vm73_vm2, %vm76_vm15  ;;  %vm88_vm2 = vcmp.le.s32.totalorder %v70_v50, 16  ;;  %vm4769_vm7 = vcmp.eq.s32.totalorder %v4764_v9, 1  ;;  %vm4770_vm14 = vcmp.eq.s32.totalorder %v4764_v9, 0 }
 0x1fd   :  { %vm85_vm15 = vmand %vm79_vm1, %vm82_vm5  ;;  %vm4765_vm5 = vcmp.eq.s32.totalorder %v4764_v9, 5  ;;  %v4778_v48 = vmov 4   ;;  %v4779_v61 = vmov 6   ;;  %v4780_v35 = vmov 3  }
 0x1fe   :  { %v4782_v13 = vmov 12   ;;  %v4783_v10 = vmov 8   ;;  %v4785_v50 = vmov 17  }
 0x202   :  { %v3564_v28 = vpop.permute.xlu1 %938 }
 0x203   :  { %v1009_v12 = vpop.permute.xlu0 %1008  ;;  %v941_v17 = vsel %vm4674_vm6, %v3522_v37, %v3564_v28  ;;  %v947_v2 = vadd.f32 %v3564_v28, %v923_v18  ;;  %vm80_vm6 = vcmp.ge.s32.totalorder %v68_v21, 1  ;;  %v988_v37 = vsel %vm4680_vm11, %v3581_v4, %v3587_v62 }
 0x204   :  { %v946_v34 = vadd.f32 %v941_v17, %v922_v22  ;;  %v1012_v28 = vsel %vm395_vm12, %v1007_v29, %v1009_v12  ;;  %v993_v53 = vadd.f32 %v988_v37, %v969_v5  ;;  %v4781_v21 = vmov 5  }
 0x205   :  { %v4784_v18 = vmov 7   ;;  %v4786_v17 = vmov 11  }
 0x20a   :  { %v3589_v57 = vpop.permute.xlu1 %962 }
 0x20b   :  { %v965_v44 = vsel %vm4677_vm9, %v3562_v49, %v3589_v57  ;;  %v1033_v20 = vpop.permute.xlu0 %1032  ;;  %v971_v49 = vadd.f32 %v3589_v57, %v947_v2  ;;  %vm83_vm9 = vmand %vm3639_vm4, %vm80_vm6  ;;  %v1017_v57 = vadd.f32 %v1012_v28, %v993_v53  ;;  %vm4767_vm6 = vcmp.eq.s32.totalorder %v4764_v9, 3 }
 0x20c   :  { %v970_v14 = vadd.f32 %v965_v44, %v946_v34  ;;  %v1036_v4 = vsel %vm420_vm13, %v1031_v32, %v1033_v20  ;;  %vm3656_vm0 = vmand %vm83_vm9, %vm86_vm3  ;;  %vm1048_vm3 = vcmask 556032   ;;  %vm4768_vm9 = vcmp.eq.s32.totalorder %v4764_v9, 2 }
 0x20d   :  { %v4756_v58 = vsel %vm3656_vm0, 4294967295, %v4755_v58  ;;  %v3660_v11 = vadd.f32 %v1036_v4, %v1017_v57  ;;  %vm3662_vm4 = vmand %vm85_vm15, %vm88_vm2  ;;  %vm1054_vm2 = vcmask 7168   ;;  %v4788_v34 = vmov 22  }
 0x20e   :  { %4757 = vst [vmem:[#allocation13_spill] sm:$0xff] %v4756_v58  ;;  %v4759_v38 = vsel %vm3662_vm4, 4294967295, %v4758_v38  ;;  %vm34_vm15 = vmor %vm4770_vm14, %vm4769_vm7  ;;  %v4789_v28 = vmov 14  }
 0x20f   :  { %4760 = vst [vmem:[#allocation16_spill] sm:$0xff] %v4759_v38  ;;  %v1044_v39 = vsel %vm3656_vm0, %v3660_v11, 0.0  ;;  %v3705_v16 = vsel %vm34_vm15, 1.0, %v4771_v24 }
 0x210   :  { %4774 = vst [vmem:[#allocation18_spill] sm:$0xff] %v3705_v16 }
 0x212   :  { %v987_v63 = vpop.permute.xlu1 %986 }
 0x213   :  { %v989_v59 = vsel %vm4680_vm11, %v3587_v62, %v987_v63  ;;  %v995_v3 = vadd.f32 %v987_v63, %v971_v49  ;;  %vm87_vm11 = vcmp.le.s32.totalorder %v69_v8, 16  ;;  %v4787_v8 = vmov 10  }
 0x214   :  { %v994_v46 = vadd.f32 %v989_v59, %v970_v14  ;;  %vm3669_vm1 = vmand %vm84_vm8, %vm87_vm11  ;;  %vm4766_vm8 = vcmp.eq.s32.totalorder %v4764_v9, 4  ;;  %v4790_v14 = vmov 13  }
 0x215   :  { %v4762_v15 = vsel %vm3669_vm1, 4294967295, %v4761_v15  ;;  %vm40_vm10 = vmor %vm4766_vm8, %vm4765_vm5  ;;  %vm4775_vm5 = vcmp.eq.s32.totalorder %v4764_v9, 7  ;;  %vm4776_vm8 = vcmp.eq.s32.totalorder %v4764_v9, 6 }
 0x216   :  { %4763 = vst [vmem:[#allocation14_spill] sm:$0xff] %v4762_v15  ;;  %vm37_vm11 = vmor %vm4768_vm9, %vm4767_vm6  ;;  %v3699_v43 = vsel %vm40_vm10, 1.0, %v4771_v24 }
 0x217   :  { %4772 = vst [vmem:[#allocation8_spill] sm:$0xff] %v3699_v43  ;;  %v3702_v54 = vsel %vm37_vm11, 1.0, %v4771_v24  ;;  %vm43_vm10 = vmor %vm4776_vm8, %vm4775_vm5  ;;  %vm1271_vm5 = vcmask 1047704   ;;  %vm1265_vm8 = vcmask 154624  }
 0x218   :  { %4773 = vst [vmem:[#allocation17_spill] sm:$0xff] %v3702_v54  ;;  %v3718_v1 = vsel %vm43_vm10, 1.0, %v4771_v24  ;;  %vm1274_vm10 = vcmask 711680  }
 0x219   :  { %4777 = vst [vmem:[#allocation15_spill] sm:$0xff] %v3718_v1 }
 0x21a   :  { %v1011_v51 = vpop.permute.xlu1 %1010 }
 0x21b   :  { %v1013_v52 = vsel %vm395_vm12, %v1009_v12, %v1011_v51  ;;  %v1019_v62 = vadd.f32 %v1011_v51, %v995_v3 }
 0x21c   :  { %v1018_v31 = vadd.f32 %v1013_v52, %v994_v46 }
 0x222   :  { %v1035_v42 = vpop.permute.xlu1 %1034 }
 0x223   :  { %v1037_v26 = vsel %vm420_vm13, %v1033_v20, %v1035_v42  ;;  %v3667_v23 = vadd.f32 %v1035_v42, %v1019_v62 }
 0x224   :  { %v3673_v56 = vadd.f32 %v1037_v26, %v1018_v31 }
 0x225   :  { %v1046_v6 = vsel %vm3662_vm4, %v3667_v23, 0.0 }
 0x226   :  { %v1045_v27 = vsel %vm3669_vm1, %v3673_v56, 0.0  ;;  %v1049_v41 = vsel %vm1048_vm3, %v1046_v6, 0.0 }
 0x227   :  { %v1047_v45 = vadd.f32 %v1045_v27, %v1044_v39 }
 0x229   :  { %v1050_v47 = vadd.f32 %v1049_v41, %v1047_v45  ;;  %v4791_v41 = vmov 24  }
 0x22b   :  { %1051 = vadd.xlane.f32.xlu2 %v1050_v47  ;;  %v4792_v47 = vmov 16  }
 0x29e   :  { %v1052_v29 = vpop.xlane.xlu2 %1051 }
 0x29f   :  { %v1084_v63 = vmul.f32 %v3699_v43, %v1052_v29  ;;  %v1069_v30 = vmul.f32 %v3702_v54, %v1052_v29  ;;  %v1053_v7 = vmul.f32 %v3705_v16, %v1052_v29  ;;  %v1099_v40 = vmul.f32 %v3718_v1, %v1052_v29 }
 0x2a0   :  { %v4793_v29 = vmov 15  }
 0x2a1   :  { %v1085_v25 = vsel %vm1054_vm2, %v1084_v63, 0.0  ;;  %v1070_v0 = vsel %vm1054_vm2, %v1069_v30, 0.0  ;;  %v1055_v12 = vsel %vm1054_vm2, %v1053_v7, 0.0  ;;  %v1100_v33 = vsel %vm1054_vm2, %v1099_v40, 0.0 }
 0x2a2   :  { %1086 = vadd.xlane.f32.xlu2 %v1085_v25  ;;  %1071 = vadd.xlane.f32.xlu1 %v1070_v0  ;;  %v4794_v7 = vmov 20   ;;  %v4795_v25 = vmov 26   ;;  %v4796_v0 = vmov 19   ;;  %v4798_v40 = vmov 0  }
 0x2a3   :  { %1056 = vadd.xlane.f32.xlu0 %v1055_v12  ;;  %v4797_v12 = vmov 21  }
 0x2aa   :  { %1101 = vadd.xlane.f32.xlu2 %v1100_v33  ;;  %v4799_v33 = vmov 23  }
 0x2b7   :  { %1209 = vperm.xlu0 %2586, %v3725_v19  }
 0x2bb   :  { %1448 = vperm.xlu1 %2588, %v3732_v60  }
 0x2bf   :  { %2590 = vset.pattern.permute.xlu0 %v4778_v48  ;;  %v4800_v48 = vmov 29  }
 0x2c0   :  { %1496 = vperm.xlu0 %2590, %v3732_v60  }
 0x2c2   :  { %1424 = vperm.xlu2 %2587, %v3732_v60  }
 0x2c3   :  { %2591 = vset.pattern.permute.xlu1 %v4781_v21 }
 0x2c4   :  { %1520 = vperm.xlu1 %2591, %v3732_v60  }
 0x2c8   :  { %2592 = vset.pattern.permute.xlu0 %v4779_v61  ;;  %v4801_v61 = vmov 25  }
 0x2c9   :  { %1544 = vperm.xlu0 %2592, %v3732_v60  }
 0x2ca   :  { %2589 = vset.pattern.permute.xlu2 %v4780_v35  ;;  %v4802_v35 = vmov 28  }
 0x2cb   :  { %1472 = vperm.xlu2 %2589, %v3732_v60  }
 0x2cc   :  { %2593 = vset.pattern.permute.xlu1 %v4784_v18 }
 0x2cd   :  { %1568 = vperm.xlu1 %2593, %v3732_v60  }
 0x2d1   :  { %2597 = vset.pattern.permute.xlu0 %v4782_v13 }
 0x2d2   :  { %1677 = vperm.xlu0 %2597, %v3732_v60  }
 0x2d3   :  { %2594 = vset.pattern.permute.xlu2 %v4783_v10 }
 0x2d4   :  { %1592 = vperm.xlu2 %2594, %v3732_v60  }
 0x2d5   :  { %2595 = vset.pattern.permute.xlu1 %v4787_v8  ;;  %v4803_v8 = vmov 30  }
 0x2d6   :  { %1629 = vperm.xlu1 %2595, %v3732_v60  }
 0x2da   :  { %2602 = vset.pattern.permute.xlu0 %v4785_v50 }
 0x2db   :  { %1797 = vperm.xlu0 %2602, %v3732_v60  }
 0x2dc   :  { %2596 = vset.pattern.permute.xlu2 %v4786_v17 }
 0x2dd   :  { %1653 = vperm.xlu2 %2596, %v3732_v60  }
 0x2de   :  { %2598 = vset.pattern.permute.xlu1 %v4790_v14 }
 0x2df   :  { %1701 = vperm.xlu1 %2598, %v3732_v60  }
 0x2e3   :  { %2607 = vset.pattern.permute.xlu0 %v4788_v34 }
 0x2e4   :  { %1906 = vperm.xlu0 %2607, %v3732_v60  }
 0x2e5   :  { %2599 = vset.pattern.permute.xlu2 %v4789_v28 }
 0x2e6   :  { %1725 = vperm.xlu2 %2599, %v3732_v60  }
 0x2e7   :  { %2600 = vset.pattern.permute.xlu1 %v4793_v29 }
 0x2e8   :  { %1749 = vperm.xlu1 %2600, %v3732_v60  }
 0x2ec   :  { %2609 = vset.pattern.permute.xlu0 %v4791_v41 }
 0x2ed   :  { %1954 = vperm.xlu0 %2609, %v3732_v60  }
 0x2ee   :  { %2601 = vset.pattern.permute.xlu2 %v4792_v47 }
 0x2ef   :  { %1773 = vperm.xlu2 %2601, %v3732_v60  }
 0x2f0   :  { %2603 = vset.pattern.permute.xlu1 %v4796_v0  ;;  %v4805_v0 = vmov 33  }
 0x2f1   :  { %1834 = vperm.xlu1 %2603, %v3732_v60  }
 0x2f5   :  { %2611 = vset.pattern.permute.xlu0 %v4795_v25 }
 0x2f7   :  { %2604 = vset.pattern.permute.xlu2 %v4794_v7 }
 0x2f8   :  { %1858 = vperm.xlu2 %2604, %v3732_v60  }
 0x2f9   :  { %2605 = vset.pattern.permute.xlu1 %v4798_v40  ;;  %v4807_v40 = vmov 31  }
 0x2fa   :  { %1414 = vperm.xlu1 %2605, %v3732_v60  }
 0x300   :  { %2606 = vset.pattern.permute.xlu2 %v4797_v12  ;;  %v4806_v12 = vmov 32  }
 0x301   :  { %1882 = vperm.xlu2 %2606, %v3732_v60  }
 0x302   :  { %2614 = vset.pattern.permute.xlu1 %v4800_v48  ;;  %v4808_v48 = vmov 35  }
 0x309   :  { %2608 = vset.pattern.permute.xlu2 %v4799_v33 }
 0x30a   :  { %1930 = vperm.xlu2 %2608, %v3732_v60  }
 0x312   :  { %2610 = vset.pattern.permute.xlu2 %v4801_v61 }
 0x313   :  { %1978 = vperm.xlu2 %2610, %v3732_v60  }
 0x315   :  { %v1087_v5 = vpop.xlane.xlu2 %1086  ;;  %v1072_v22 = vpop.xlane.xlu1 %1071 }
 0x316   :  { %v1088_v51 = vrot.slane %v1087_v5, 4  ;;  %v1073_v2 = vrot.slane %v1072_v22, 4  ;;  %v1057_v44 = vpop.xlane.xlu0 %1056 }
 0x317   :  { %v1058_v55 = vrot.slane %v1057_v44, 4 }
 0x318   :  { %v1089_v37 = vadd.f32 %v1088_v51, %v1087_v5  ;;  %v1074_v20 = vadd.f32 %v1073_v2, %v1072_v22 }
 0x319   :  { %v1059_v32 = vadd.f32 %v1058_v55, %v1057_v44 }
 0x31a   :  { %v1075_v49 = vrot.slane %v1074_v20, 2  ;;  %v1090_v59 = vrot.slane %v1089_v37, 2 }
 0x31b   :  { %v1060_v53 = vrot.slane %v1059_v32, 2  ;;  %2612 = vset.pattern.permute.xlu2 %v4802_v35  ;;  %v4809_v35 = vmov 34  }
 0x31c   :  { %v1076_v4 = vadd.f32 %v1075_v49, %v1074_v20  ;;  %v1091_v3 = vadd.f32 %v1090_v59, %v1089_v37  ;;  %2039 = vperm.xlu2 %2612, %v3732_v60  }
 0x31d   :  { %v1102_v52 = vpop.xlane.xlu2 %1101  ;;  %v1061_v57 = vadd.f32 %v1060_v53, %v1059_v32 }
 0x31e   :  { %v1103_v46 = vrot.slane %v1102_v52, 4  ;;  %v1077_v62 = vrot.slane %v1076_v4, 1  ;;  %v1092_v31 = vrot.slane %v1091_v3, 1 }
 0x31f   :  { %v1062_v42 = vrot.slane %v1061_v57, 1 }
 0x320   :  { %v1104_v26 = vadd.f32 %v1103_v46, %v1102_v52  ;;  %v1078_v6 = vadd.f32 %v1077_v62, %v1076_v4  ;;  %v1093_v27 = vadd.f32 %v1092_v31, %v1091_v3 }
 0x321   :  { %v1063_v39 = vadd.f32 %v1062_v42, %v1061_v57  ;;  %v4804_v57 = vmov 9  }
 0x322   :  { %v1105_v45 = vrot.slane %v1104_v26, 2 }
 0x323   :  { %2470 = vpush %v1063_v39 }
 0x324   :  { %2472 = vpush %v1078_v6  ;;  %v1106_v9 = vadd.f32 %v1105_v45, %v1104_v26  ;;  %2615 = vset.pattern.permute.xlu2 %v4803_v8 }
 0x325   :  { %2474 = vpush %v1093_v27 }
 0x326   :  { %v1107_v63 = vrot.slane %v1106_v9, 1 }
 0x328   :  { %v1108_v30 = vadd.f32 %v1107_v63, %v1106_v9 }
 0x329   :  { %v3812_v46 = vpop.permute.xlu0 %1209 }
 0x32a   :  { %2476 = vpush %v1108_v30  ;;  %v3832_v30 = vpop.permute.xlu2 %1424 }
 0x32d   :  { %v3850_v61 = vpop.permute.xlu1 %1448 }
 0x332   :  { %v3814_v62 = vpop.permute.xlu0 %1496  ;;  %v3834_v7 = vpop.permute.xlu2 %1472 }
 0x33a   :  { %v3838_v25 = vpop.permute.xlu2 %1592 }
 0x33b   :  { %v3816_v31 = vpop.permute.xlu0 %1544 }
 0x342   :  { %v3847_v33 = vpop.permute.xlu2 %1653 }
 0x344   :  { %v3818_v42 = vpop.permute.xlu0 %1677 }
 0x34d   :  { %v3820_v26 = vpop.permute.xlu0 %1797 }
 0x354   :  { %s2471_s1 = spop %2470 }
 0x355   :  { %v1065_v21 = vstv %s2471_s1  ;;  %s2473_s15 = spop %2472 }
 0x356   :  { %v1066_v13 = vmul.f32 0.001953125, %v1065_v21  ;;  %v1080_v10 = vstv %s2473_s15  ;;  %s2475_s16 = spop %2474  ;;  %v3822_v6 = vpop.permute.xlu0 %1906  ;;  %v3856_v21 = vpop.permute.xlu2 %1725 }
 0x357   :  { %v1081_v18 = vmul.f32 0.001953125, %v1080_v10  ;;  %v1095_v50 = vstv %s2475_s16  ;;  %v3860_v10 = vpop.permute.xlu1 %1520 }
 0x358   :  { %v1067_v17 = vmul.f32 %v3705_v16, %v1066_v13  ;;  %v1096_v22 = vmul.f32 0.001953125, %v1095_v50  ;;  %v4810_v13 = vmov 27  }
 0x359   :  { %v1082_v5 = vmul.f32 %v3702_v54, %v1081_v18  ;;  %v4811_v18 = vmov 18  }
 0x35a   :  { %v1097_v44 = vmul.f32 %v3699_v43, %v1096_v22 }
 0x35b   :  { %v1083_v51 = vadd.f32 %v1082_v5, %v1067_v17  ;;  %s2477_s17 = spop %2476 }
 0x35c   :  { %v1110_v2 = vstv %s2477_s17 }
 0x35d   :  { %v1111_v55 = vmul.f32 0.001953125, %v1110_v2  ;;  %v1098_v37 = vadd.f32 %v1097_v44, %v1083_v51 }
 0x35e   :  { %v3864_v50 = vpop.permute.xlu2 %1773 }
 0x35f   :  { %v1112_v20 = vmul.f32 %v3718_v1, %v1111_v55  ;;  %v3824_v39 = vpop.permute.xlu0 %1954  ;;  %v3866_v17 = vpop.permute.xlu1 %1568 }
 0x361   :  { %v1113_v32 = vadd.f32 %v1112_v20, %v1098_v37 }
 0x363   :  { %v3789_v34 = vsub.f32 %v3660_v11, %v1113_v32  ;;  %v3792_v28 = vsub.f32 %v3673_v56, %v1113_v32  ;;  %v3795_v49 = vsub.f32 %v3667_v23, %v1113_v32 }
 0x365   :  { %v1117_v59 = vmul.f32 %v3789_v34, %v3789_v34  ;;  %v1118_v53 = vmul.f32 %v3792_v28, %v3792_v28  ;;  %v1119_v14 = vmul.f32 %v3795_v49, %v3795_v49 }
 0x366   :  { %v3868_v8 = vpop.permute.xlu2 %1858 }
 0x367   :  { %v1120_v4 = vsel %vm3656_vm0, %v1117_v59, 0.0  ;;  %v1121_v11 = vsel %vm3669_vm1, %v1118_v53, 0.0  ;;  %v1122_v56 = vsel %vm3662_vm4, %v1119_v14, 0.0  ;;  %v3870_v5 = vpop.permute.xlu1 %1629 }
 0x368   :  { %v1123_v23 = vadd.f32 %v1121_v11, %v1120_v4  ;;  %v1124_v3 = vsel %vm1048_vm3, %v1122_v56, 0.0 }
 0x36a   :  { %v1125_v52 = vadd.f32 %v1124_v3, %v1123_v23 }
 0x36c   :  { %1126 = vadd.xlane.f32.xlu0 %v1125_v52 }
 0x36e   :  { %v3873_v51 = vpop.permute.xlu2 %1882 }
 0x36f   :  { %v3876_v44 = vpop.permute.xlu1 %1701 }
 0x376   :  { %v3878_v55 = vpop.permute.xlu2 %1930 }
 0x37e   :  { %v3882_v37 = vpop.permute.xlu2 %1978 }
 0x380   :  { %2002 = vperm.xlu0 %2611, %v3732_v60  }
 0x386   :  { %v3886_v32 = vpop.permute.xlu2 %2039 }
 0x388   :  { %2613 = vset.pattern.permute.xlu0 %v4804_v57 }
 0x3df   :  { %v1127_v27 = vpop.xlane.xlu0 %1126 }
 0x3e0   :  { %v1158_v45 = vmul.f32 %v3699_v43, %v1127_v27  ;;  %v1143_v41 = vmul.f32 %v3702_v54, %v1127_v27  ;;  %v1128_v47 = vmul.f32 %v3705_v16, %v1127_v27  ;;  %v1173_v22 = vmul.f32 %v3718_v1, %v1127_v27 }
 0x3e2   :  { %v1159_v9 = vsel %vm1054_vm2, %v1158_v45, 0.0  ;;  %v1144_v29 = vsel %vm1054_vm2, %v1143_v41, 0.0  ;;  %v1129_v63 = vsel %vm1054_vm2, %v1128_v47, 0.0  ;;  %v1174_v2 = vsel %vm1054_vm2, %v1173_v22, 0.0 }
 0x3e3   :  { %1160 = vadd.xlane.f32.xlu0 %v1159_v9  ;;  %1145 = vadd.xlane.f32.xlu2 %v1144_v29 }
 0x3e4   :  { %1130 = vadd.xlane.f32.xlu1 %v1129_v63 }
 0x3f2   :  { %v3888_v59 = vpop.permute.xlu0 %2002 }
 0x3f7   :  { %1619 = vperm.xlu0 %2613, %v3732_v60  }
 0x3fb   :  { %2087 = vperm.xlu2 %2615, %v3732_v60  }
 0x3fd   :  { %2063 = vperm.xlu1 %2614, %v3732_v60  }
 0x3ff   :  { %2618 = vset.pattern.permute.xlu0 %v4805_v0 }
 0x400   :  { %2159 = vperm.xlu0 %2618, %v3732_v60  }
 0x403   :  { %2617 = vset.pattern.permute.xlu2 %v4806_v12 }
 0x404   :  { %2135 = vperm.xlu2 %2617, %v3732_v60  }
 0x405   :  { %2616 = vset.pattern.permute.xlu1 %v4807_v40 }
 0x406   :  { %2111 = vperm.xlu1 %2616, %v3732_v60  }
 0x408   :  { %2620 = vset.pattern.permute.xlu0 %v4808_v48 }
 0x409   :  { %2207 = vperm.xlu0 %2620, %v3732_v60  }
 0x40c   :  { %2619 = vset.pattern.permute.xlu2 %v4809_v35 }
 0x40d   :  { %2183 = vperm.xlu2 %2619, %v3732_v60  }
 0x40e   :  { %2625 = vset.pattern.permute.xlu1 %v4681_v36 }
 0x411   :  { %2622 = vset.pattern.permute.xlu0 %v4810_v13 }
 0x412   :  { %2029 = vperm.xlu0 %2622, %v3732_v60  }
 0x415   :  { %2621 = vset.pattern.permute.xlu2 %v4811_v18 }
 0x416   :  { %1824 = vperm.xlu2 %2621, %v3732_v60   ;;  %v3880_v60 = vpop.permute.xlu1 %1749 }
 0x41e   :  { %v3884_v20 = vpop.permute.xlu1 %1834 }
 0x426   :  { %v3890_v53 = vpop.permute.xlu1 %1414 }
 0x430   :  { %1175 = vadd.xlane.f32.xlu1 %v1174_v2 }
 0x456   :  { %v1146_v14 = vpop.xlane.xlu2 %1145  ;;  %v1161_v4 = vpop.xlane.xlu0 %1160 }
 0x457   :  { %v1147_v11 = vrot.slane %v1146_v14, 4  ;;  %v1131_v56 = vpop.xlane.xlu1 %1130  ;;  %v1162_v23 = vrot.slane %v1161_v4, 4 }
 0x458   :  { %v1132_v3 = vrot.slane %v1131_v56, 4 }
 0x459   :  { %v1148_v52 = vadd.f32 %v1147_v11, %v1146_v14  ;;  %v1163_v57 = vadd.f32 %v1162_v23, %v1161_v4 }
 0x45a   :  { %v1133_v27 = vadd.f32 %v1132_v3, %v1131_v56 }
 0x45b   :  { %v1164_v45 = vrot.slane %v1163_v57, 2  ;;  %v1149_v41 = vrot.slane %v1148_v52, 2 }
 0x45c   :  { %v1134_v47 = vrot.slane %v1133_v27, 2 }
 0x45d   :  { %v1150_v9 = vadd.f32 %v1149_v41, %v1148_v52  ;;  %v1165_v29 = vadd.f32 %v1164_v45, %v1163_v57  ;;  %v2679_v41 = vmov 36  }
 0x45e   :  { %v1135_v63 = vadd.f32 %v1134_v47, %v1133_v27  ;;  %2623 = vset.pattern.permute.xlu2 %v2679_v41  ;;  %2624 = vset.pattern.permute.xlu0 %v2679_v41 }
 0x45f   :  { %v1151_v0 = vrot.slane %v1150_v9, 1  ;;  %v1166_v12 = vrot.slane %v1165_v29, 1 }
 0x460   :  { %v1136_v40 = vrot.slane %v1135_v63, 1 }
 0x461   :  { %v1152_v48 = vadd.f32 %v1151_v0, %v1150_v9  ;;  %v1167_v13 = vadd.f32 %v1166_v12, %v1165_v29 }
 0x462   :  { %v1137_v35 = vadd.f32 %v1136_v40, %v1135_v63 }
 0x464   :  { %2478 = vpush %v1137_v35 }
 0x465   :  { %2480 = vpush %v1152_v48 }
 0x466   :  { %2482 = vpush %v1167_v13 }
 0x46f   :  { %v3892_v18 = vpop.permute.xlu1 %2063 }
 0x478   :  { %v3894_v22 = vpop.permute.xlu1 %2111 }
 0x495   :  { %s2479_s21 = spop %2478 }
 0x496   :  { %s2481_s22 = spop %2480  ;;  %v1139_v52 = vstv %s2479_s21 }
 0x497   :  { %v1154_v57 = vstv %s2481_s22  ;;  %v1140_v27 = vmul.f32 0.001953125, %v1139_v52  ;;  %s2483_s23 = spop %2482 }
 0x498   :  { %v1155_v45 = vmul.f32 0.001953125, %v1154_v57  ;;  %v1169_v47 = vstv %s2483_s23 }
 0x499   :  { %v1141_v9 = vmul.f32 %v3705_v16, %v1140_v27  ;;  %v1170_v63 = vmul.f32 0.001953125, %v1169_v47 }
 0x49a   :  { %v1156_v29 = vmul.f32 %v3702_v54, %v1155_v45  ;;  %v3901_v45 = vpop.permute.xlu2 %2087 }
 0x49b   :  { %v1171_v40 = vmul.f32 %v3699_v43, %v1170_v63 }
 0x49c   :  { %v1157_v0 = vadd.f32 %v1156_v29, %v1141_v9 }
 0x49e   :  { %v1172_v35 = vadd.f32 %v1171_v40, %v1157_v0 }
 0x4a2   :  { %v3903_v41 = vpop.permute.xlu2 %2135 }
 0x4a3   :  { %v1176_v2 = vpop.xlane.xlu1 %1175 }
 0x4a4   :  { %v1177_v14 = vrot.slane %v1176_v2, 4 }
 0x4a6   :  { %v1178_v4 = vadd.f32 %v1177_v14, %v1176_v2 }
 0x4a8   :  { %v1179_v11 = vrot.slane %v1178_v4, 2 }
 0x4aa   :  { %v1180_v56 = vadd.f32 %v1179_v11, %v1178_v4  ;;  %v3905_v47 = vpop.permute.xlu2 %2183 }
 0x4ac   :  { %v1181_v23 = vrot.slane %v1180_v56, 1 }
 0x4ae   :  { %v1182_v3 = vadd.f32 %v1181_v23, %v1180_v56 }
 0x4b0   :  { %2484 = vpush %v1182_v3 }
 0x4b2   :  { %v3907_v9 = vpop.permute.xlu2 %1824 }
 0x4e1   :  { %s2485_s24 = spop %2484 }
 0x4e2   :  { %v1184_v12 = vstv %s2485_s24 }
 0x4e3   :  { %v1185_v48 = vmul.f32 0.001953125, %v1184_v12 }
 0x4e5   :  { %v1186_v13 = vmul.f32 %v3718_v1, %v1185_v48 }
 0x4e7   :  { %v1187_v2 = vadd.f32 %v1186_v13, %v1172_v35 }
 0x4e9   :  { %v1188_v14 = vadd.f32 1e-05, %v1187_v2 }
 0x4eb   :  { %2627 = vrsqrt.f32 %v1188_v14  ;;  %vm1195_vm9 = vweird.f32 %v1188_v14 }
 0x4f1   :  { %v2628_v4 = vpop.eup %2627 }
 0x4f2   :  { %v1190_v11 = vmul.f32 %v2628_v4, %v1188_v14  ;;  %vm1196_vm6 = vweird.f32 %v2628_v4 }
 0x4f3   :  { %vm1197_vm11 = vmor %vm1195_vm9, %vm1196_vm6  ;;  %vm4819_vm6 = vcmask 1031168   ;;  %vm4820_vm9 = vcmask 1039360  }
 0x4f4   :  { %v1191_v56 = vmul.f32 %v2628_v4, %v1190_v11 }
 0x4f6   :  { %v1192_v23 = vmul.f32 0.5, %v1191_v56 }
 0x4f8   :  { %v1193_v3 = vsub.f32 1.5, %v1192_v23 }
 0x4fa   :  { %v1194_v52 = vmul.f32 %v2628_v4, %v1193_v3 }
 0x4fc   :  { %v1198_v57 = vsel %vm1197_vm11, %v2628_v4, %v1194_v52  ;;  %vm4821_vm11 = vmmov %vm4820_vm9 }
 0x4fd   :  { %v1199_v27 = vmul.f32 %v3725_v19, %v1198_v57 }
 0x4ff   :  { %1202 = vperm.xlu2 %2623, %v1199_v27  }
 0x559   :  { %v1203_v29 = vpop.permute.xlu2 %1202 }
 0x55a   :  { %v1205_v63 = vmul.f32 %v1203_v29, %v3789_v34  ;;  %v1206_v0 = vmul.f32 %v1203_v29, %v3792_v28  ;;  %v1207_v12 = vmul.f32 %v1203_v29, %v3795_v49 }
 0x55c   :  { %v1212_v40 = vadd.f32 %v3812_v46, %v1205_v63  ;;  %v1213_v19 = vadd.f32 %v3812_v46, %v1206_v0  ;;  %v1214_v48 = vadd.f32 %v3812_v46, %v1207_v12  ;;  %v4812_v63 = vld [vmem:[#allocation5_spill] sm:$0xff]  ;;  %v4813_v12 = vld [vmem:[#allocation6_spill] sm:$0xff] }
 0x55e   :  { %vm1215_vm7 = vcmp.ge.f32.partialorder %v1212_v40, 0.0  ;;  %vm1216_vm14 = vcmp.ge.f32.partialorder %v1213_v19, 0.0  ;;  %vm1217_vm15 = vcmp.ge.f32.partialorder %v1214_v48, 0.0  ;;  %v1218_v35 = vmul.f32 0.01, %v1212_v40 }
 0x55f   :  { %v1219_v13 = vmul.f32 0.01, %v1213_v19  ;;  %v1220_v2 = vmul.f32 0.01, %v1214_v48 }
 0x560   :  { %v1221_v14 = vsel %vm1215_vm7, %v1212_v40, %v1218_v35  ;;  %vm4822_vm7 = vmmov %vm4819_vm6 }
 0x561   :  { %v1222_v4 = vsel %vm1216_vm14, %v1213_v19, %v1219_v13  ;;  %v1223_v11 = vsel %vm1217_vm15, %v1214_v48, %v1220_v2  ;;  %v1224_v34 = vsel %vm3656_vm0, %v1221_v14, 0.0  ;;  %vm4823_vm14 = vcmask 891904  }
 0x562   :  { %v1225_v28 = vsel %vm3669_vm1, %v1222_v4, 0.0  ;;  %v1226_v49 = vsel %vm3662_vm4, %v1223_v11, 0.0  ;;  %1227 = vst [vmem:[#allocation3] sm:$0xff] %v1224_v34  ;;  %vm4824_vm15 = vcmask 900096  }
 0x563   :  { %1228 = vst [vmem:[#allocation3 + $0x8] sm:$0xff] %v1225_v28 }
 0x564   :  { %1229 = vst.msk [vmem:[#allocation3 + $0x10] sm:$0xff] %vm1048_vm3, %v1226_v49 }
 0x56b   :  { %v3922_v46 = vld [vmem:[#allocation3 + $0x4] ss:$8 sm:$0x7]  ;;  %v3924_v56 = vld [vmem:[#allocation3 + $0x5] ss:$8 sm:$0x7] }
 0x56c   :  { %v1325_v23 = vperm.slane %v3922_v46, 2  ;;  %v1337_v3 = vperm.slane %v3924_v56, 2  ;;  %v1230_v52 = vld [vmem:[#allocation3] ss:$8 sm:$0x7] }
 0x56d   :  { %v1233_v57 = vperm.slane %v1230_v52, 1  ;;  %v1242_v27 = vld [vmem:[#allocation3 + $0x1] ss:$8 sm:$0x7]  ;;  %v1232_v29 = vperm.slane %v1230_v52, 0  ;;  %v1234_v24 = vperm.slane %v1230_v52, 2 }
 0x56e   :  { %v1331_v0 = vmul.f32 %v4812_v63, %v1325_v23  ;;  %v1343_v40 = vmul.f32 %v4813_v12, %v1337_v3  ;;  %v1245_v19 = vperm.slane %v1242_v27, 1  ;;  %v1244_v48 = vperm.slane %v1242_v27, 0  ;;  %v3930_v35 = vld [vmem:[#allocation3 + $0x6] ss:$8 sm:$0x7] }
 0x56f   :  { %v1239_v13 = vmul.f32 %v4812_v63, %v1233_v57  ;;  %v1238_v2 = vmul.f32 %v4812_v63, %v1232_v29  ;;  %v1367_v14 = vperm.slane %v3930_v35, 0  ;;  %v1377_v4 = vld [vmem:[#allocation3 + $0x7] ss:$8 sm:$0x7]  ;;  %v1246_v29 = vperm.slane %v1242_v27, 2 }
 0x570   :  { %v1346_v11 = vadd.f32 %v1343_v40, %v1331_v0  ;;  %v1251_v34 = vmul.f32 %v4813_v12, %v1245_v19  ;;  %v1250_v28 = vmul.f32 %v4813_v12, %v1244_v48  ;;  %v1379_v49 = vperm.slane %v1377_v4, 0  ;;  %v1277_v23 = vld [vmem:[#allocation3 + $0x2] ss:$8 sm:$0x7] }
 0x571   :  { %v1279_v36 = vperm.slane %v1277_v23, 0  ;;  %v1289_v3 = vld [vmem:[#allocation3 + $0x3] ss:$8 sm:$0x7]  ;;  %v1373_v0 = vmul.f32 %v4812_v63, %v1367_v14  ;;  %v1240_v52 = vmul.f32 %v4812_v63, %v1234_v24 }
 0x572   :  { %1354 = vrot.lane.b32.xlu0 %v1346_v11, %s2680_s30  ;;  %v1254_v1 = vadd.f32 %v1251_v34, %v1239_v13  ;;  %v1253_v57 = vadd.f32 %v1250_v28, %v1238_v2  ;;  %v1291_v16 = vperm.slane %v1289_v3, 0  ;;  %v1385_v40 = vmul.f32 %v4813_v12, %v1379_v49 }
 0x573   :  { %v1285_v19 = vmul.f32 %v4812_v63, %v1279_v36  ;;  %v1252_v11 = vmul.f32 %v4813_v12, %v1246_v29  ;;  %v1281_v2 = vperm.slane %v1277_v23, 2  ;;  %v1293_v34 = vperm.slane %v1289_v3, 2 }
 0x574   :  { %1261 = vrot.lane.b32.xlu2 %v1254_v1, %s2680_s30  ;;  %1259 = vrot.lane.b32.xlu1 %v1253_v57, %s2680_s30  ;;  %v1297_v48 = vmul.f32 %v4813_v12, %v1291_v16  ;;  %v1388_v13 = vadd.f32 %v1385_v40, %v1373_v0  ;;  %v1280_v28 = vperm.slane %v1277_v23, 1  ;;  %v1292_v57 = vperm.slane %v1289_v3, 1 }
 0x575   :  { %v1255_v27 = vadd.f32 %v1252_v11, %v1240_v52  ;;  %v1287_v36 = vmul.f32 %v4812_v63, %v1281_v2  ;;  %v1299_v16 = vmul.f32 %v4813_v12, %v1293_v34  ;;  %v1324_v49 = vperm.slane %v3922_v46, 1 }
 0x576   :  { %v1300_v1 = vadd.f32 %v1297_v48, %v1285_v19  ;;  %v1286_v24 = vmul.f32 %v4812_v63, %v1280_v28  ;;  %v1298_v14 = vmul.f32 %v4813_v12, %v1292_v57  ;;  %v1336_v29 = vperm.slane %v3924_v56, 1 }
 0x577   :  { %v1302_v0 = vadd.f32 %v1299_v16, %v1287_v36  ;;  %v1323_v23 = vperm.slane %v3922_v46, 0  ;;  %v1335_v3 = vperm.slane %v3924_v56, 0  ;;  %v1330_v19 = vmul.f32 %v4812_v63, %v1324_v49 }
 0x578   :  { %v1301_v40 = vadd.f32 %v1298_v14, %v1286_v24  ;;  %v1342_v48 = vmul.f32 %v4813_v12, %v1336_v29  ;;  %v1381_v2 = vperm.slane %v1377_v4, 2  ;;  %v1368_v46 = vperm.slane %v3930_v35, 1 }
 0x579   :  { %v1329_v52 = vmul.f32 %v4812_v63, %v1323_v23  ;;  %v1341_v11 = vmul.f32 %v4813_v12, %v1335_v3  ;;  %v1380_v56 = vperm.slane %v1377_v4, 1 }
 0x57a   :  { %1394 = vrot.lane.b32.xlu0 %v1388_v13, %s2680_s30  ;;  %v1369_v13 = vperm.slane %v3930_v35, 2  ;;  %v1345_v34 = vadd.f32 %v1342_v48, %v1330_v19  ;;  %v1387_v28 = vmul.f32 %v4813_v12, %v1381_v2  ;;  %v1374_v57 = vmul.f32 %v4812_v63, %v1368_v46  ;;  %v3973_v35 = vpop.permute.xlu0 %1619 }
 0x57b   :  { %v1386_v36 = vmul.f32 %v4813_v12, %v1380_v56 }
 0x57c   :  { %1306 = vrot.lane.b32.xlu2 %v1300_v1, %s2680_s30  ;;  %1263 = vrot.lane.b32.xlu1 %v1255_v27, %s2680_s30  ;;  %v1344_v1 = vadd.f32 %v1341_v11, %v1329_v52  ;;  %v1375_v27 = vmul.f32 %v4812_v63, %v1369_v13 }
 0x57d   :  { %v1389_v24 = vadd.f32 %v1386_v36, %v1374_v57 }
 0x57e   :  { %v1390_v16 = vadd.f32 %v1387_v28, %v1375_v27 }
 0x582   :  { %v3975_v4 = vpop.permute.xlu0 %2159 }
 0x584   :  { %1310 = vrot.lane.b32.xlu2 %v1302_v0, %s2680_s30  ;;  %1308 = vrot.lane.b32.xlu1 %v1301_v40, %s2680_s30 }
 0x58a   :  { %v3977_v49 = vpop.permute.xlu0 %2207 }
 0x58c   :  { %1352 = vrot.lane.b32.xlu2 %v1345_v34, %s2680_s30  ;;  %1350 = vrot.lane.b32.xlu1 %v1344_v1, %s2680_s30 }
 0x592   :  { %v3980_v63 = vpop.permute.xlu0 %2029 }
 0x594   :  { %1398 = vrot.lane.b32.xlu2 %v1390_v16, %s2680_s30  ;;  %1396 = vrot.lane.b32.xlu1 %v1389_v24, %s2680_s30 }
 0x5ce   :  { %v1262_v14 = vpop.permute.xlu2 %1261 }
 0x5d6   :  { %v1307_v29 = vpop.permute.xlu2 %1306 }
 0x5d7   :  { %1317 = vst.msk [vmem:[#allocation2 + $0x18] sm:$0xff] %vm1271_vm5, %v1307_v29 }
 0x5de   :  { %v1311_v12 = vpop.permute.xlu2 %1310  ;;  %v4002_v46 = vld [vmem:[#allocation2 + $0x18] sm:$0xff] }
 0x5df   :  { %v1656_v28 = vmul.f32 %v3847_v33, %v4002_v46 }
 0x5e4   :  { %v1355_v0 = vpop.permute.xlu0 %1354 }
 0x5e6   :  { %v1353_v40 = vpop.permute.xlu2 %1352  ;;  %v1260_v23 = vpop.permute.xlu1 %1259 }
 0x5e7   :  { %v3983_v3 = vsel %vm1265_vm8, %v1260_v23, %v1262_v14  ;;  %1272 = vst.msk [vmem:[#allocation2] sm:$0xff] %vm1271_vm5, %v1260_v23  ;;  %v1357_v19 = vsel %vm1265_vm8, %v1353_v40, %v1355_v0  ;;  %v1776_v0 = vmul.f32 %v3864_v50, %v4002_v46 }
 0x5e8   :  { %1363 = vst.msk [vmem:[#allocation2 + $0x40] sm:$0xff] %vm1274_vm10, %v1357_v19 }
 0x5ec   :  { %v1395_v48 = vpop.permute.xlu0 %1394 }
 0x5ed   :  { %1405 = vst.msk [vmem:[#allocation2 + $0x48] sm:$0xff] %vm1271_vm5, %v1395_v48 }
 0x5ee   :  { %v1264_v52 = vpop.permute.xlu1 %1263  ;;  %v3989_v11 = vld [vmem:[#allocation2] sm:$0xff] }
 0x5ef   :  { %v1267_v13 = vsel %vm1265_vm8, %v1262_v14, %v1264_v52  ;;  %v1571_v2 = vmul.f32 %v3866_v17, %v3989_v11  ;;  %v1451_v34 = vmul.f32 %v3850_v61, %v3989_v11  ;;  %v1427_v1 = vmul.f32 %v3832_v30, %v3989_v11  ;;  %v1399_v52 = vpop.permute.xlu2 %1398 }
 0x5f0   :  { %1275 = vst.msk [vmem:[#allocation2 + $0x10] sm:$0xff] %vm1274_vm10, %v1267_v13  ;;  %v1499_v16 = vmul.f32 %v3814_v62, %v3989_v11  ;;  %v1475_v14 = vmul.f32 %v3834_v7, %v3989_v11  ;;  %v1547_v23 = vmul.f32 %v3816_v31, %v3989_v11  ;;  %v1523_v19 = vmul.f32 %v3860_v10, %v3989_v11 }
 0x5f1   :  { %1577 = vrot.lane.b32.xlu2 %v1571_v2, %s2663_s26  ;;  %1457 = vrot.lane.b32.xlu1 %v1451_v34, %s2662_s25  ;;  %v1800_v34 = vmul.f32 %v3820_v26, %v4002_v46 }
 0x5f2   :  { %1433 = vrot.lane.b32.xlu0 %v1427_v1, %s2659_s18  ;;  %v1632_v1 = vmul.f32 %v3870_v5, %v4002_v46 }
 0x5f4   :  { %v4004_v56 = vld [vmem:[#allocation2 + $0x48] sm:$0xff] }
 0x5f5   :  { %v4016_v24 = vmul.f32 %v3980_v63, %v4004_v56 }
 0x5f6   :  { %v1309_v27 = vpop.permute.xlu1 %1308 }
 0x5f7   :  { %v4009_v57 = vsel %vm1265_vm8, %v1307_v29, %v1309_v27  ;;  %v1313_v36 = vsel %vm1265_vm8, %v1309_v27, %v1311_v12  ;;  %v1595_v27 = vmul.f32 %v3838_v25, %v3989_v11 }
 0x5f8   :  { %1319 = vst.msk [vmem:[#allocation2 + $0x28] sm:$0xff] %vm1274_vm10, %v1313_v36  ;;  %v2066_v36 = vmul.f32 %v3892_v18, %v4004_v56 }
 0x5f9   :  { %1662 = vrot.lane.b32.xlu2 %v1656_v28, %s2662_s25  ;;  %1505 = vrot.lane.b32.xlu1 %v1499_v16, %s2667_s28  ;;  %v1704_v28 = vmul.f32 %v3876_v44, %v4002_v46  ;;  %v1680_v16 = vmul.f32 %v3818_v42, %v4002_v46 }
 0x5fa   :  { %1481 = vrot.lane.b32.xlu0 %v1475_v14, %s2660_s19 }
 0x5fe   :  { %v1351_v29 = vpop.permute.xlu1 %1350 }
 0x5ff   :  { %v4025_v12 = vsel %vm1265_vm8, %v1351_v29, %v1353_v40  ;;  %1361 = vst.msk [vmem:[#allocation2 + $0x30] sm:$0xff] %vm1271_vm5, %v1351_v29  ;;  %vm4825_vm5 = vmmov %vm4824_vm15 }
 0x601   :  { %1782 = vrot.lane.b32.xlu2 %v1776_v0, %s2663_s26  ;;  %1553 = vrot.lane.b32.xlu1 %v1547_v23, %s2668_s29  ;;  %v1752_v0 = vmul.f32 %v3880_v60, %v4002_v46  ;;  %v2090_v23 = vmul.f32 %v3901_v45, %v4004_v56 }
 0x602   :  { %1529 = vrot.lane.b32.xlu0 %v1523_v19, %s2661_s20  ;;  %v1728_v19 = vmul.f32 %v3856_v21, %v4002_v46 }
 0x606   :  { %v1397_v40 = vpop.permute.xlu1 %1396 }
 0x607   :  { %v4038_v13 = vsel %vm1265_vm8, %v1395_v48, %v1397_v40  ;;  %v1401_v2 = vsel %vm1265_vm8, %v1397_v40, %v1399_v52  ;;  %v4079_v52 = vld [vmem:[#allocation2 + $0x30] sm:$0xff]  ;;  %v2042_v40 = vmul.f32 %v3886_v32, %v4004_v56 }
 0x608   :  { %1407 = vst.msk [vmem:[#allocation2 + $0x58] sm:$0xff] %vm1274_vm10, %v1401_v2  ;;  %v4053_v48 = vmul.f32 %v3980_v63, %v4038_v13  ;;  %v1837_v2 = vmul.f32 %v3884_v20, %v4079_v52  ;;  %v2067_v43 = vmul.f32 %v3892_v18, %v4038_v13  ;;  %v2091_v58 = vmul.f32 %v3901_v45, %v4038_v13  ;;  %vm4826_vm10 = vmmov %vm4823_vm14 }
 0x609   :  { %1806 = vrot.lane.b32.xlu2 %v1800_v34, %s2666_s27  ;;  %1638 = vrot.lane.b32.xlu1 %v1632_v1, %s2659_s18  ;;  %v2138_v34 = vmul.f32 %v3903_v41, %v4004_v56  ;;  %v1428_v1 = vmul.f32 %v3832_v30, %v3983_v3 }
 0x60a   :  { %1601 = vrot.lane.b32.xlu0 %v1595_v27, %s2666_s27  ;;  %v1861_v27 = vmul.f32 %v3868_v8, %v4079_v52 }
 0x60f   :  { %v4061_v14 = vld [vmem:[#allocation2 + $0x58] sm:$0xff] }
 0x610   :  { %v4068_v29 = vmul.f32 %v3980_v63, %v4061_v14  ;;  %v2114_v63 = vmul.f32 %v3894_v22, %v4004_v56 }
 0x611   :  { %1710 = vrot.lane.b32.xlu1 %v1704_v28, %s2667_s28  ;;  %2072 = vrot.lane.b32.xlu2 %v2066_v36, %s2662_s25  ;;  %v4099_v28 = vld [vmem:[#allocation2 + $0x10] sm:$0xff]  ;;  %v2162_v36 = vmul.f32 %v3975_v4, %v4004_v56 }
 0x612   :  { %1686 = vrot.lane.b32.xlu0 %v1680_v16, %s2660_s19  ;;  %v1453_v16 = vmul.f32 %v3850_v61, %v4099_v28 }
 0x619   :  { %1758 = vrot.lane.b32.xlu1 %v1752_v0, %s2668_s29  ;;  %2096 = vrot.lane.b32.xlu2 %v2090_v23, %s2660_s19  ;;  %v1885_v0 = vmul.f32 %v3873_v51, %v4079_v52  ;;  %v1429_v23 = vmul.f32 %v3832_v30, %v4099_v28  ;;  %v1933_v30 = vmul.f32 %v3878_v55, %v4079_v52 }
 0x61a   :  { %1734 = vrot.lane.b32.xlu0 %v1728_v19, %s2661_s20  ;;  %v1476_v19 = vmul.f32 %v3834_v7, %v3983_v3 }
 0x621   :  { %2120 = vrot.lane.b32.xlu2 %v2114_v63, %s2667_s28  ;;  %2048 = vrot.lane.b32.xlu1 %v2042_v40, %s2659_s18  ;;  %v1909_v63 = vmul.f32 %v3822_v6, %v4079_v52  ;;  %v1452_v40 = vmul.f32 %v3850_v61, %v3983_v3  ;;  %v1957_v61 = vmul.f32 %v3824_v39, %v4079_v52 }
 0x622   :  { %1843 = vrot.lane.b32.xlu0 %v1837_v2, %s2659_s18  ;;  %v1501_v2 = vmul.f32 %v3814_v62, %v4099_v28 }
 0x629   :  { %2144 = vrot.lane.b32.xlu2 %v2138_v34, %s2661_s20  ;;  %1435 = vrot.lane.b32.xlu1 %v1428_v1, %s2659_s18  ;;  %v1477_v34 = vmul.f32 %v3834_v7, %v4099_v28  ;;  %v1524_v1 = vmul.f32 %v3860_v10, %v3983_v3  ;;  %v1549_v7 = vmul.f32 %v3816_v31, %v4099_v28 }
 0x62a   :  { %1867 = vrot.lane.b32.xlu0 %v1861_v27, %s2662_s25 }
 0x631   :  { %2168 = vrot.lane.b32.xlu2 %v2162_v36, %s2668_s29  ;;  %1461 = vrot.lane.b32.xlu1 %v1453_v16, %s2662_s25  ;;  %v1500_v36 = vmul.f32 %v3814_v62, %v3983_v3  ;;  %v1981_v16 = vmul.f32 %v3882_v37, %v4079_v52  ;;  %v1573_v62 = vmul.f32 %v3866_v17, %v4099_v28 }
 0x632   :  { %1891 = vrot.lane.b32.xlu0 %v1885_v0, %s2660_s19 }
 0x639   :  { %1437 = vrot.lane.b32.xlu2 %v1429_v23, %s2659_s18  ;;  %1483 = vrot.lane.b32.xlu1 %v1476_v19, %s2660_s19  ;;  %v1525_v23 = vmul.f32 %v3860_v10, %v4099_v28  ;;  %v2005_v19 = vmul.f32 %v3888_v59, %v4079_v52  ;;  %v1596_v10 = vmul.f32 %v3838_v25, %v3983_v3 }
 0x63a   :  { %1915 = vrot.lane.b32.xlu0 %v1909_v63, %s2667_s28 }
 0x641   :  { %1459 = vrot.lane.b32.xlu2 %v1452_v40, %s2662_s25  ;;  %1509 = vrot.lane.b32.xlu1 %v1501_v2, %s2667_s28  ;;  %v1548_v40 = vmul.f32 %v3816_v31, %v3983_v3  ;;  %v1572_v2 = vmul.f32 %v3866_v17, %v3983_v3  ;;  %v1597_v31 = vmul.f32 %v3838_v25, %v4099_v28 }
 0x642   :  { %1939 = vrot.lane.b32.xlu0 %v1933_v30, %s2661_s20  ;;  %v1633_v25 = vmul.f32 %v3870_v5, %v4009_v57 }
 0x649   :  { %1485 = vrot.lane.b32.xlu2 %v1477_v34, %s2660_s19  ;;  %1531 = vrot.lane.b32.xlu1 %v1524_v1, %s2661_s20 }
 0x64a   :  { %1963 = vrot.lane.b32.xlu0 %v1957_v61, %s2668_s29  ;;  %v4176_v61 = vld [vmem:[#allocation2 + $0x28] sm:$0xff] }
 0x64b   :  { %v4137_v27 = vpop.permute.xlu2 %1577  ;;  %v1658_v17 = vmul.f32 %v3847_v33, %v4176_v61  ;;  %v1754_v54 = vmul.f32 %v3880_v60, %v4176_v61  ;;  %v1778_v15 = vmul.f32 %v3864_v50, %v4176_v61 }
 0x651   :  { %1507 = vrot.lane.b32.xlu2 %v1500_v36, %s2667_s28  ;;  %1557 = vrot.lane.b32.xlu1 %v1549_v7, %s2668_s29  ;;  %v1634_v36 = vmul.f32 %v3870_v5, %v4176_v61  ;;  %v1682_v5 = vmul.f32 %v3818_v42, %v4176_v61 }
 0x652   :  { %1987 = vrot.lane.b32.xlu0 %v1981_v16, %s2663_s26 }
 0x653   :  { %v4148_v0 = vpop.permute.xlu2 %1662 }
 0x659   :  { %1533 = vrot.lane.b32.xlu2 %v1525_v23, %s2661_s20  ;;  %1581 = vrot.lane.b32.xlu1 %v1573_v62, %s2663_s26  ;;  %v1681_v62 = vmul.f32 %v3818_v42, %v4009_v57  ;;  %v1705_v42 = vmul.f32 %v3876_v44, %v4009_v57 }
 0x65a   :  { %2011 = vrot.lane.b32.xlu0 %v2005_v19, %s2666_s27  ;;  %v1657_v19 = vmul.f32 %v3847_v33, %v4009_v57  ;;  %v1777_v33 = vmul.f32 %v3864_v50, %v4009_v57 }
 0x65b   :  { %v4159_v63 = vpop.permute.xlu2 %1782 }
 0x661   :  { %1555 = vrot.lane.b32.xlu2 %v1548_v40, %s2668_s29  ;;  %1603 = vrot.lane.b32.xlu1 %v1596_v10, %s2666_s27 }
 0x662   :  { %1579 = vrot.lane.b32.xlu0 %v1572_v2, %s2663_s26 }
 0x663   :  { %v4170_v30 = vpop.permute.xlu2 %1806  ;;  %v4172_v34 = vpop.permute.xlu1 %1457 }
 0x664   :  { %v4174_v1 = vpop.permute.xlu0 %1433 }
 0x669   :  { %1605 = vrot.lane.b32.xlu2 %v1597_v31, %s2666_s27  ;;  %1666 = vrot.lane.b32.xlu1 %v1658_v17, %s2662_s25  ;;  %v1706_v31 = vmul.f32 %v3876_v44, %v4176_v61  ;;  %v1730_v44 = vmul.f32 %v3856_v21, %v4176_v61 }
 0x66a   :  { %1642 = vrot.lane.b32.xlu0 %v1634_v36, %s2659_s18 }
 0x66b   :  { %v4187_v7 = vpop.permute.xlu1 %1505  ;;  %v4189_v16 = vpop.permute.xlu2 %2072 }
 0x66c   :  { %4814 = vst [vmem:[#allocation7_spill] sm:$0xff] %v4189_v16  ;;  %v4191_v23 = vpop.permute.xlu0 %1481 }
 0x671   :  { %1640 = vrot.lane.b32.xlu2 %v1633_v25, %s2659_s18  ;;  %1688 = vrot.lane.b32.xlu1 %v1681_v62, %s2660_s19  ;;  %v1729_v62 = vmul.f32 %v3856_v21, %v4009_v57  ;;  %v1753_v21 = vmul.f32 %v3880_v60, %v4009_v57 }
 0x672   :  { %1664 = vrot.lane.b32.xlu0 %v1657_v19, %s2662_s25  ;;  %v1801_v19 = vmul.f32 %v3820_v26, %v4009_v57 }
 0x673   :  { %v4202_v40 = vpop.permute.xlu1 %1553  ;;  %v4204_v10 = vpop.permute.xlu2 %2096 }
 0x674   :  { %4815 = vst [vmem:[#allocation20_spill] sm:$0xff] %v4204_v10  ;;  %v4206_v2 = vpop.permute.xlu0 %1529 }
 0x679   :  { %1690 = vrot.lane.b32.xlu2 %v1682_v5, %s2660_s19  ;;  %1714 = vrot.lane.b32.xlu1 %v1706_v31, %s2667_s28 }
 0x67a   :  { %1784 = vrot.lane.b32.xlu0 %v1777_v33, %s2663_s26 }
 0x67b   :  { %v4217_v17 = vpop.permute.xlu1 %1638  ;;  %v4219_v36 = vpop.permute.xlu2 %2120 }
 0x67c   :  { %4816 = vst [vmem:[#allocation22_spill] sm:$0xff] %v4219_v36  ;;  %v4221_v25 = vpop.permute.xlu0 %1601 }
 0x681   :  { %1712 = vrot.lane.b32.xlu2 %v1705_v42, %s2667_s28  ;;  %1736 = vrot.lane.b32.xlu1 %v1729_v62, %s2661_s20 }
 0x682   :  { %1808 = vrot.lane.b32.xlu0 %v1801_v19, %s2666_s27 }
 0x683   :  { %v4232_v5 = vpop.permute.xlu1 %1710  ;;  %v4234_v31 = vpop.permute.xlu2 %2144 }
 0x684   :  { %4817 = vst [vmem:[#allocation19_spill] sm:$0xff] %v4234_v31  ;;  %v4236_v33 = vpop.permute.xlu0 %1686 }
 0x689   :  { %1738 = vrot.lane.b32.xlu2 %v1730_v44, %s2661_s20  ;;  %1762 = vrot.lane.b32.xlu1 %v1754_v54, %s2668_s29 }
 0x68a   :  { %2074 = vrot.lane.b32.xlu0 %v2067_v43, %s2662_s25  ;;  %v1419_v43 = vmul.f32 %v3890_v53, %v4099_v28  ;;  %v1417_v28 = vmul.f32 %v3890_v53, %v3989_v11  ;;  %v1838_v11 = vmul.f32 %v3884_v20, %v4025_v12 }
 0x68b   :  { %v4247_v42 = vpop.permute.xlu1 %1758  ;;  %v4249_v62 = vpop.permute.xlu2 %2168 }
 0x68c   :  { %4818 = vst [vmem:[#allocation24_spill] sm:$0xff] %v4249_v62  ;;  %v4251_v19 = vpop.permute.xlu0 %1734  ;;  %v4268_v62 = vld [vmem:[#allocation2 + $0x40] sm:$0xff] }
 0x68d   :  { %v1839_v50 = vmul.f32 %v3884_v20, %v4268_v62  ;;  %v1863_v16 = vmul.f32 %v3868_v8, %v4268_v62  ;;  %v1887_v20 = vmul.f32 %v3873_v51, %v4268_v62 }
 0x691   :  { %1760 = vrot.lane.b32.xlu2 %v1753_v21, %s2668_s29  ;;  %1786 = vrot.lane.b32.xlu1 %v1778_v15, %s2663_s26  ;;  %v1802_v21 = vmul.f32 %v3820_v26, %v4176_v61 }
 0x692   :  { %2098 = vrot.lane.b32.xlu0 %v2091_v58, %s2660_s19  ;;  %v2115_v58 = vmul.f32 %v3894_v22, %v4038_v13 }
 0x693   :  { %v1438_v54 = vpop.permute.xlu2 %1437  ;;  %v4264_v44 = vpop.permute.xlu1 %2048 }
 0x694   :  { %v1446_v38 = vadd.f32 %v1438_v54, %v1419_v43  ;;  %v4266_v60 = vpop.permute.xlu0 %1843  ;;  %v1418_v43 = vmul.f32 %v3890_v53, %v3983_v3  ;;  %v2139_v3 = vmul.f32 %v3903_v41, %v4038_v13 }
 0x699   :  { %1847 = vrot.lane.b32.xlu2 %v1839_v50, %s2659_s18  ;;  %1810 = vrot.lane.b32.xlu1 %v1802_v21, %s2666_s27 }
 0x69a   :  { %2122 = vrot.lane.b32.xlu0 %v2115_v58, %s2667_s28 }
 0x69b   :  { %v1460_v15 = vpop.permute.xlu2 %1459  ;;  %v1436_v31 = vpop.permute.xlu1 %1435 }
 0x69c   :  { %v1463_v26 = vsel %vm4819_vm6, %v4172_v34, %v1460_v15  ;;  %v1439_v36 = vsel %vm4820_vm9, %v4174_v1, %v1436_v31  ;;  %v1440_v50 = vsel %vm4821_vm11, %v1436_v31, %v1438_v54  ;;  %v4288_v10 = vpop.permute.xlu0 %1867  ;;  %vm4827_vm6 = vcmask 883712  }
 0x69d   :  { %v1444_v21 = vadd.f32 %v1439_v36, %v1417_v28  ;;  %v1445_v58 = vadd.f32 %v1440_v50, %v1418_v43  ;;  %vm4828_vm9 = vmmov %vm4827_vm6  ;;  %vm4829_vm11 = vcmask 752640  }
 0x69f   :  { %v1468_v53 = vadd.f32 %v1463_v26, %v1444_v21  ;;  %v1862_v26 = vmul.f32 %v3868_v8, %v4025_v12 }
 0x6a1   :  { %1871 = vrot.lane.b32.xlu2 %v1863_v16, %s2662_s25  ;;  %1845 = vrot.lane.b32.xlu1 %v1838_v11, %s2659_s18  ;;  %v2163_v16 = vmul.f32 %v3975_v4, %v4038_v13 }
 0x6a2   :  { %2146 = vrot.lane.b32.xlu0 %v2139_v3, %s2661_s20 }
 0x6a3   :  { %v1486_v34 = vpop.permute.xlu2 %1485  ;;  %v1462_v1 = vpop.permute.xlu1 %1461 }
 0x6a4   :  { %v1464_v36 = vsel %vm4822_vm7, %v1460_v15, %v1462_v1  ;;  %v1470_v31 = vadd.f32 %v1462_v1, %v1446_v38  ;;  %v4300_v54 = vpop.permute.xlu0 %1891  ;;  %v1911_v1 = vmul.f32 %v3822_v6, %v4268_v62  ;;  %vm4830_vm7 = vmmov %vm4829_vm11 }
 0x6a5   :  { %v1469_v28 = vadd.f32 %v1464_v36, %v1445_v58  ;;  %v1886_v36 = vmul.f32 %v3873_v51, %v4025_v12  ;;  %v1935_v51 = vmul.f32 %v3878_v55, %v4268_v62 }
 0x6a6   :  { %v1494_v43 = vadd.f32 %v1486_v34, %v1470_v31 }
 0x6a9   :  { %1895 = vrot.lane.b32.xlu2 %v1887_v20, %s2660_s19  ;;  %1869 = vrot.lane.b32.xlu1 %v1862_v26, %s2662_s25  ;;  %v2187_v20 = vmul.f32 %v3905_v47, %v4038_v13 }
 0x6aa   :  { %2170 = vrot.lane.b32.xlu0 %v2163_v16, %s2668_s29 }
 0x6ab   :  { %v1508_v38 = vpop.permute.xlu2 %1507  ;;  %v1484_v15 = vpop.permute.xlu1 %1483 }
 0x6ac   :  { %v1511_v50 = vsel %vm4823_vm14, %v4187_v7, %v1508_v38  ;;  %v1487_v21 = vsel %vm4824_vm15, %v4191_v23, %v1484_v15  ;;  %v1488_v58 = vsel %vm4825_vm5, %v1484_v15, %v1486_v34  ;;  %v4316_v8 = vpop.permute.xlu0 %1915  ;;  %v1910_v15 = vmul.f32 %v3822_v6, %v4025_v12 }
 0x6ad   :  { %v1492_v11 = vadd.f32 %v1487_v21, %v1468_v53  ;;  %v1493_v3 = vadd.f32 %v1488_v58, %v1469_v28  ;;  %vm4831_vm14 = vcmask 1039360  }
 0x6ae   :  { %vm4832_vm15 = vmmov %vm4831_vm14 }
 0x6af   :  { %v1516_v31 = vadd.f32 %v1511_v50, %v1492_v11  ;;  %v2211_v50 = vmul.f32 %v3977_v49, %v4038_v13 }
 0x6b1   :  { %1919 = vrot.lane.b32.xlu2 %v1911_v1, %s2667_s28  ;;  %1893 = vrot.lane.b32.xlu1 %v1886_v36, %s2660_s19  ;;  %v1959_v36 = vmul.f32 %v3824_v39, %v4268_v62 }
 0x6b2   :  { %2194 = vrot.lane.b32.xlu0 %v2187_v20, %s2663_s26  ;;  %v1934_v20 = vmul.f32 %v3878_v55, %v4025_v12 }
 0x6b3   :  { %v1534_v7 = vpop.permute.xlu2 %1533  ;;  %v1510_v23 = vpop.permute.xlu1 %1509 }
 0x6b4   :  { %v1512_v53 = vsel %vm4826_vm10, %v1508_v38, %v1510_v23  ;;  %v1518_v34 = vadd.f32 %v1510_v23, %v1494_v43  ;;  %v4328_v28 = vpop.permute.xlu0 %1939  ;;  %vm4833_vm10 = vcmask 1031168  }
 0x6b5   :  { %v1517_v26 = vadd.f32 %v1512_v53, %v1493_v3 }
 0x6b6   :  { %v1542_v16 = vadd.f32 %v1534_v7, %v1518_v34 }
 0x6b9   :  { %1943 = vrot.lane.b32.xlu2 %v1935_v51, %s2661_s20  ;;  %1917 = vrot.lane.b32.xlu1 %v1910_v15, %s2667_s28  ;;  %v1958_v51 = vmul.f32 %v3824_v39, %v4025_v12 }
 0x6ba   :  { %2218 = vrot.lane.b32.xlu0 %v2211_v50, %s2666_s27 }
 0x6bb   :  { %v1556_v43 = vpop.permute.xlu2 %1555  ;;  %v1532_v38 = vpop.permute.xlu1 %1531 }
 0x6bc   :  { %v1535_v21 = vsel %vm4827_vm6, %v4206_v2, %v1532_v38  ;;  %v1536_v58 = vsel %vm4828_vm9, %v1532_v38, %v1534_v7  ;;  %v4342_v11 = vpop.permute.xlu0 %1963  ;;  %v1559_v1 = vsel %vm4829_vm11, %v4202_v40, %v1556_v43  ;;  %v1983_v40 = vmul.f32 %v3882_v37, %v4268_v62  ;;  %vm4834_vm6 = vmmov %vm4833_vm10 }
 0x6bd   :  { %v1540_v3 = vadd.f32 %v1535_v21, %v1516_v31  ;;  %v1541_v6 = vadd.f32 %v1536_v58, %v1517_v26  ;;  %v2007_v21 = vmul.f32 %v3888_v59, %v4268_v62  ;;  %v1982_v58 = vmul.f32 %v3882_v37, %v4025_v12  ;;  %vm4835_vm9 = vmmov %vm4825_vm5 }
 0x6be   :  { %vm4836_vm11 = vcmask 891904  }
 0x6bf   :  { %v1564_v23 = vadd.f32 %v1559_v1, %v1540_v3 }
 0x6c1   :  { %1967 = vrot.lane.b32.xlu2 %v1959_v36, %s2668_s29  ;;  %1941 = vrot.lane.b32.xlu1 %v1934_v20, %s2661_s20 }
 0x6c3   :  { %v1606_v2 = vpop.permute.xlu2 %1605  ;;  %v1558_v7 = vpop.permute.xlu1 %1557 }
 0x6c4   :  { %v1560_v53 = vsel %vm4830_vm7, %v1556_v43, %v1558_v7  ;;  %v1566_v31 = vadd.f32 %v1558_v7, %v1542_v16  ;;  %v4353_v34 = vpop.permute.xlu0 %1987  ;;  %v1624_v16 = vmul.f32 %v3973_v35, %v4176_v61  ;;  %vm4837_vm7 = vmmov %vm4836_vm11 }
 0x6c5   :  { %v1565_v26 = vadd.f32 %v1560_v53, %v1541_v6 }
 0x6c9   :  { %1991 = vrot.lane.b32.xlu2 %v1983_v40, %s2663_s26  ;;  %1965 = vrot.lane.b32.xlu1 %v1958_v51, %s2668_s29  ;;  %v2043_v40 = vmul.f32 %v3886_v32, %v4038_v13 }
 0x6cb   :  { %v1641_v55 = vpop.permute.xlu2 %1640  ;;  %v1582_v15 = vpop.permute.xlu1 %1581 }
 0x6cc   :  { %v1590_v50 = vadd.f32 %v1582_v15, %v1566_v31  ;;  %v4361_v38 = vpop.permute.xlu0 %2011  ;;  %v2006_v31 = vmul.f32 %v3888_v59, %v4025_v12  ;;  %v1644_v59 = vsel %vm4831_vm14, %v4217_v17, %v1641_v55  ;;  %vm4838_vm14 = vcmask 883712  }
 0x6ce   :  { %v1614_v43 = vadd.f32 %v1606_v2, %v1590_v50 }
 0x6d0   :  { %v1627_v39 = vadd.f32 %v1624_v16, %v1614_v43 }
 0x6d1   :  { %2015 = vrot.lane.b32.xlu2 %v2007_v21, %s2666_s27  ;;  %1989 = vrot.lane.b32.xlu1 %v1982_v58, %s2663_s26 }
 0x6d3   :  { %v1691_v3 = vpop.permute.xlu2 %1690  ;;  %v1604_v6 = vpop.permute.xlu1 %1603 }
 0x6d4   :  { %v1608_v1 = vsel %vm420_vm13, %v1604_v6, %v1606_v2  ;;  %v1580_v36 = vpop.permute.xlu0 %1579  ;;  %v1607_v37 = vsel %vm420_vm13, %v4221_v25, %v1604_v6  ;;  %v1623_v2 = vmul.f32 %v3973_v35, %v4009_v57 }
 0x6d5   :  { %v1583_v20 = vsel %vm395_vm12, %v4137_v27, %v1580_v36  ;;  %v1584_v61 = vsel %vm395_vm12, %v1580_v36, %v1582_v15  ;;  %v1622_v27 = vmul.f32 %v3973_v35, %v4002_v46  ;;  %v2044_v35 = vmul.f32 %v3886_v32, %v4061_v14 }
 0x6d6   :  { %v1588_v7 = vadd.f32 %v1583_v20, %v1564_v23  ;;  %v1589_v53 = vadd.f32 %v1584_v61, %v1565_v26  ;;  %v2186_v46 = vmul.f32 %v3905_v47, %v4004_v56 }
 0x6d8   :  { %v1612_v51 = vadd.f32 %v1607_v37, %v1588_v7  ;;  %v1613_v50 = vadd.f32 %v1608_v1, %v1589_v53  ;;  %v2068_v53 = vmul.f32 %v3892_v18, %v4061_v14  ;;  %v2210_v37 = vmul.f32 %v3977_v49, %v4004_v56 }
 0x6d9   :  { %2013 = vrot.lane.b32.xlu1 %v2006_v31, %s2666_s27  ;;  %2050 = vrot.lane.b32.xlu2 %v2043_v40, %s2659_s18 }
 0x6da   :  { %v1626_v23 = vadd.f32 %v1623_v2, %v1613_v50  ;;  %v1625_v25 = vadd.f32 %v1622_v27, %v1612_v51 }
 0x6db   :  { %v1713_v26 = vpop.permute.xlu2 %1712  ;;  %v1667_v15 = vpop.permute.xlu1 %1666 }
 0x6dc   :  { %v1643_v13 = vpop.permute.xlu0 %1642  ;;  %v1649_v43 = vadd.f32 %v1644_v59, %v1625_v25  ;;  %v1716_v18 = vsel %vm4837_vm7, %v4232_v5, %v1713_v26 }
 0x6dd   :  { %v1645_v16 = vsel %vm4832_vm15, %v1641_v55, %v1643_v13  ;;  %v1651_v21 = vadd.f32 %v1643_v13, %v1627_v39  ;;  %vm4839_vm15 = vmmov %vm4838_vm14 }
 0x6de   :  { %v1650_v57 = vadd.f32 %v1645_v16, %v1626_v23 }
 0x6df   :  { %v1675_v58 = vadd.f32 %v1667_v15, %v1651_v21 }
 0x6e1   :  { %2052 = vrot.lane.b32.xlu1 %v2044_v35, %s2659_s18  ;;  %2192 = vrot.lane.b32.xlu2 %v2186_v46, %s2663_s26  ;;  %v1699_v17 = vadd.f32 %v1691_v3, %v1675_v58 }
 0x6e3   :  { %v1739_v6 = vpop.permute.xlu2 %1738  ;;  %v1689_v1 = vpop.permute.xlu1 %1688 }
 0x6e4   :  { %v1693_v36 = vsel %vm4825_vm5, %v1689_v1, %v1691_v3  ;;  %v1665_v20 = vpop.permute.xlu0 %1664  ;;  %v1692_v7 = vsel %vm4835_vm9, %v4236_v33, %v1689_v1  ;;  %v2092_v33 = vmul.f32 %v3901_v45, %v4061_v14  ;;  %vm4840_vm5 = vcmask 752640  }
 0x6e5   :  { %v1668_v55 = vsel %vm4833_vm10, %v4148_v0, %v1665_v20  ;;  %v1669_v39 = vsel %vm4834_vm6, %v1665_v20, %v1667_v15  ;;  %vm4841_vm10 = vmmov %vm4840_vm5  ;;  %vm4842_vm6 = vcmask 1039360  }
 0x6e6   :  { %v1673_v61 = vadd.f32 %v1668_v55, %v1649_v43  ;;  %v1674_v32 = vadd.f32 %v1669_v39, %v1650_v57  ;;  %v2116_v57 = vmul.f32 %v3894_v22, %v4061_v14  ;;  %vm4843_vm9 = vmmov %vm4842_vm6 }
 0x6e8   :  { %v1697_v31 = vadd.f32 %v1692_v7, %v1673_v61  ;;  %v1698_v40 = vadd.f32 %v1693_v36, %v1674_v32  ;;  %v2164_v32 = vmul.f32 %v3975_v4, %v4061_v14 }
 0x6e9   :  { %2076 = vrot.lane.b32.xlu1 %v2068_v53, %s2662_s25  ;;  %2216 = vrot.lane.b32.xlu2 %v2210_v37, %s2666_s27  ;;  %v1829_v53 = vmul.f32 %v3907_v9, %v4268_v62 }
 0x6ea   :  { %v1721_v25 = vadd.f32 %v1716_v18, %v1697_v31 }
 0x6eb   :  { %v1761_v0 = vpop.permute.xlu2 %1760  ;;  %v1715_v3 = vpop.permute.xlu1 %1714 }
 0x6ec   :  { %v1717_v51 = vsel %vm4836_vm11, %v1713_v26, %v1715_v3  ;;  %v1723_v50 = vadd.f32 %v1715_v3, %v1699_v17  ;;  %v1785_v27 = vpop.permute.xlu0 %1784  ;;  %v1764_v16 = vsel %vm4840_vm5, %v4247_v42, %v1761_v0  ;;  %v1827_v42 = vmul.f32 %v3907_v9, %v4079_v52 }
 0x6ed   :  { %v1722_v2 = vadd.f32 %v1717_v51, %v1698_v40  ;;  %v1788_v5 = vsel %vm395_vm12, %v4159_v63, %v1785_v27  ;;  %v2140_v63 = vmul.f32 %v3903_v41, %v4061_v14  ;;  %v1828_v40 = vmul.f32 %v3907_v9, %v4025_v12 }
 0x6ee   :  { %v1747_v58 = vadd.f32 %v1739_v6, %v1723_v50  ;;  %v2188_v3 = vmul.f32 %v3905_v47, %v4061_v14  ;;  %v2212_v9 = vmul.f32 %v3977_v49, %v4061_v14  ;;  %vm4844_vm11 = vcmask 1031168  }
 0x6ef   :  { %vm4845_vm7 = vmmov %vm4844_vm11  ;;  %vm4848_vm5 = vcmask 891904  }
 0x6f1   :  { %2100 = vrot.lane.b32.xlu1 %v2092_v33, %s2660_s19 }
 0x6f3   :  { %v1848_v56 = vpop.permute.xlu2 %1847  ;;  %v1737_v23 = vpop.permute.xlu1 %1736 }
 0x6f4   :  { %v1740_v59 = vsel %vm4838_vm14, %v4251_v19, %v1737_v23  ;;  %v1741_v15 = vsel %vm4839_vm15, %v1737_v23, %v1739_v6  ;;  %v1809_v45 = vpop.permute.xlu0 %1808  ;;  %vm4846_vm14 = vcmask 900096  }
 0x6f5   :  { %v1745_v13 = vadd.f32 %v1740_v59, %v1721_v25  ;;  %v1746_v43 = vadd.f32 %v1741_v15, %v1722_v2  ;;  %v1812_v19 = vsel %vm420_vm13, %v4170_v30, %v1809_v45  ;;  %vm4847_vm15 = vmmov %vm4846_vm14 }
 0x6f7   :  { %v1769_v21 = vadd.f32 %v1764_v16, %v1745_v13 }
 0x6f9   :  { %v1793_v26 = vadd.f32 %v1788_v5, %v1769_v21  ;;  %2124 = vrot.lane.b32.xlu1 %v2116_v57, %s2667_s28 }
 0x6fb   :  { %v1817_v35 = vadd.f32 %v1812_v19, %v1793_v26  ;;  %v1872_v46 = vpop.permute.xlu2 %1871  ;;  %v1763_v17 = vpop.permute.xlu1 %1762 }
 0x6fc   :  { %v1765_v1 = vsel %vm4841_vm10, %v1761_v0, %v1763_v17  ;;  %v1771_v36 = vadd.f32 %v1763_v17, %v1747_v58  ;;  %vm4849_vm10 = vmmov %vm4848_vm5 }
 0x6fd   :  { %v1770_v22 = vadd.f32 %v1765_v1, %v1746_v43  ;;  %v1830_v20 = vadd.f32 %v1827_v42, %v1817_v35 }
 0x701   :  { %2148 = vrot.lane.b32.xlu1 %v2140_v63, %s2661_s20 }
 0x703   :  { %v1896_v55 = vpop.permute.xlu2 %1895  ;;  %v1787_v39 = vpop.permute.xlu1 %1786 }
 0x704   :  { %v1789_v30 = vsel %vm395_vm12, %v1785_v27, %v1787_v39  ;;  %v1795_v6 = vadd.f32 %v1787_v39, %v1771_v36 }
 0x705   :  { %v1794_v61 = vadd.f32 %v1789_v30, %v1770_v22 }
 0x709   :  { %2172 = vrot.lane.b32.xlu1 %v2164_v32, %s2668_s29 }
 0x70b   :  { %v1920_v52 = vpop.permute.xlu2 %1919  ;;  %v1811_v7 = vpop.permute.xlu1 %1810 }
 0x70c   :  { %v1813_v41 = vsel %vm420_vm13, %v1809_v45, %v1811_v7  ;;  %v1819_v37 = vadd.f32 %v1811_v7, %v1795_v6 }
 0x70d   :  { %v1818_v31 = vadd.f32 %v1813_v41, %v1794_v61 }
 0x70e   :  { %v1832_v0 = vadd.f32 %v1829_v53, %v1819_v37  ;;  %v2075_v53 = vpop.permute.xlu0 %2074 }
 0x70f   :  { %v1831_v51 = vadd.f32 %v1828_v40, %v1818_v31 }
 0x710   :  { %v1856_v18 = vadd.f32 %v1848_v56, %v1832_v0 }
 0x711   :  { %2196 = vrot.lane.b32.xlu1 %v2188_v3, %s2663_s26 }
 0x712   :  { %v1880_v12 = vadd.f32 %v1872_v46, %v1856_v18  ;;  %v4855_v18 = vld [vmem:[#allocation7_spill] sm:$0xff] }
 0x713   :  { %v1944_v4 = vpop.permute.xlu2 %1943  ;;  %v1846_v50 = vpop.permute.xlu1 %1845 }
 0x714   :  { %v1849_v2 = vsel %vm4842_vm6, %v4266_v60, %v1846_v50  ;;  %v1850_v62 = vsel %vm4843_vm9, %v1846_v50, %v1848_v56  ;;  %v1904_v13 = vadd.f32 %v1896_v55, %v1880_v12  ;;  %vm4850_vm6 = vcmask 883712  }
 0x715   :  { %v1854_v27 = vadd.f32 %v1849_v2, %v1830_v20  ;;  %v1855_v33 = vadd.f32 %v1850_v62, %v1831_v51  ;;  %vm4851_vm9 = vmmov %vm4850_vm6 }
 0x716   :  { %v1928_v43 = vadd.f32 %v1920_v52, %v1904_v13  ;;  %v2099_v3 = vpop.permute.xlu0 %2098 }
 0x718   :  { %v1952_v57 = vadd.f32 %v1944_v4, %v1928_v43 }
 0x719   :  { %2220 = vrot.lane.b32.xlu1 %v2212_v9, %s2666_s27 }
 0x71b   :  { %v1968_v47 = vpop.permute.xlu2 %1967  ;;  %v1870_v23 = vpop.permute.xlu1 %1869 }
 0x71c   :  { %v1873_v25 = vsel %vm4844_vm11, %v4288_v10, %v1870_v23  ;;  %v1874_v59 = vsel %vm4845_vm7, %v1870_v23, %v1872_v46  ;;  %v1976_v5 = vadd.f32 %v1968_v47, %v1952_v57  ;;  %vm4852_vm11 = vcmask 752640   ;;  %v4857_v23 = vld [vmem:[#allocation20_spill] sm:$0xff] }
 0x71d   :  { %v1878_v15 = vadd.f32 %v1873_v25, %v1854_v27  ;;  %v1879_v60 = vadd.f32 %v1874_v59, %v1855_v33  ;;  %vm4853_vm7 = vmmov %vm4852_vm11  ;;  %v4859_v59 = vld [vmem:[#allocation22_spill] sm:$0xff] }
 0x723   :  { %v1992_v16 = vpop.permute.xlu2 %1991  ;;  %v1894_v21 = vpop.permute.xlu1 %1893 }
 0x724   :  { %v1897_v56 = vsel %vm4846_vm14, %v4300_v54, %v1894_v21  ;;  %v1898_v49 = vsel %vm4847_vm15, %v1894_v21, %v1896_v55  ;;  %v2000_v26 = vadd.f32 %v1992_v16, %v1976_v5  ;;  %vm4854_vm14 = vcmask 1039360  }
 0x725   :  { %v1902_v14 = vadd.f32 %v1897_v56, %v1878_v15  ;;  %v1903_v45 = vadd.f32 %v1898_v49, %v1879_v60  ;;  %vm4856_vm15 = vcmask 1031168  }
 0x726   :  { %v2078_v9 = vsel %vm4856_vm15, %v4855_v18, %v2075_v53  ;;  %v4873_v18 = vld [vmem:[#allocation17_spill] sm:$0xff] }
 0x72b   :  { %v2016_v19 = vpop.permute.xlu2 %2015  ;;  %v1918_v10 = vpop.permute.xlu1 %1917 }
 0x72c   :  { %v2024_v58 = vadd.f32 %v2016_v19, %v2000_v26  ;;  %v1921_v35 = vsel %vm4848_vm5, %v4316_v8, %v1918_v10  ;;  %v1922_v46 = vsel %vm4849_vm10, %v1918_v10, %v1920_v52  ;;  %vm4858_vm5 = vcmask 900096   ;;  %v4864_v10 = vld [vmem:[#allocation24_spill] sm:$0xff] }
 0x72d   :  { %v1926_v17 = vadd.f32 %v1921_v35, %v1902_v14  ;;  %v1927_v42 = vadd.f32 %v1922_v46, %v1903_v45 }
 0x72e   :  { %v2037_v1 = vadd.f32 %v4068_v29, %v2024_v58 }
 0x733   :  { %v1942_v54 = vpop.permute.xlu1 %1941  ;;  %v2051_v62 = vpop.permute.xlu2 %2050 }
 0x734   :  { %v1945_v36 = vsel %vm4850_vm6, %v4328_v28, %v1942_v54  ;;  %v1946_v22 = vsel %vm4851_vm9, %v1942_v54, %v1944_v4  ;;  %v2123_v4 = vpop.permute.xlu0 %2122  ;;  %v2054_v33 = vsel %vm4854_vm14, %v4264_v44, %v2051_v62  ;;  %vm4860_vm6 = vmmov %vm4854_vm14  ;;  %v4861_v44 = vld [vmem:[#allocation19_spill] sm:$0xff]  ;;  %vm4865_vm14 = vcmask 752640  }
 0x735   :  { %v1950_v20 = vadd.f32 %v1945_v36, %v1926_v17  ;;  %v1951_v63 = vadd.f32 %v1946_v22, %v1927_v42  ;;  %v2126_v15 = vsel %vm4849_vm10, %v4859_v59, %v2123_v4 }
 0x73b   :  { %v1966_v55 = vpop.permute.xlu1 %1965 }
 0x73c   :  { %v1969_v30 = vsel %vm4852_vm11, %v4342_v11, %v1966_v55  ;;  %v1970_v8 = vsel %vm4853_vm7, %v1966_v55, %v1968_v47  ;;  %v2147_v2 = vpop.permute.xlu0 %2146  ;;  %vm4862_vm11 = vmmov %vm4856_vm15 }
 0x73d   :  { %v1974_v61 = vadd.f32 %v1969_v30, %v1950_v20  ;;  %v1975_v32 = vadd.f32 %v1970_v8, %v1951_v63  ;;  %v2150_v21 = vsel %vm4851_vm9, %v4861_v44, %v2147_v2  ;;  %vm4863_vm7 = vmmov %vm4858_vm5 }
 0x73e   :  { %vm4866_vm15 = vmmov %vm4849_vm10 }
 0x73f   :  { %vm4868_vm10 = vmmov %vm4865_vm14 }
 0x743   :  { %v1990_v39 = vpop.permute.xlu1 %1989 }
 0x744   :  { %v1993_v6 = vsel %vm395_vm12, %v4353_v34, %v1990_v39  ;;  %v1994_v29 = vsel %vm395_vm12, %v1990_v39, %v1992_v16  ;;  %v2193_v16 = vpop.permute.xlu2 %2192 }
 0x745   :  { %v1998_v52 = vadd.f32 %v1993_v6, %v1974_v61  ;;  %v1999_v28 = vadd.f32 %v1994_v29, %v1975_v32 }
 0x74b   :  { %v2014_v7 = vpop.permute.xlu1 %2013 }
 0x74c   :  { %v2017_v41 = vsel %vm420_vm13, %v4361_v38, %v2014_v7  ;;  %v2018_v37 = vsel %vm420_vm13, %v2014_v7, %v2016_v19  ;;  %v2217_v39 = vpop.permute.xlu2 %2216 }
 0x74d   :  { %v2022_v31 = vadd.f32 %v2017_v41, %v1998_v52  ;;  %v2023_v11 = vadd.f32 %v2018_v37, %v1999_v28 }
 0x74f   :  { %v2035_v40 = vadd.f32 %v4016_v24, %v2022_v31  ;;  %v2036_v0 = vadd.f32 %v4053_v48, %v2023_v11  ;;  %v2171_v24 = vpop.permute.xlu0 %2170  ;;  %v2102_v48 = vsel %vm4858_vm5, %v4857_v23, %v2099_v3  ;;  %vm4867_vm5 = vmmov %vm4851_vm9 }
 0x750   :  { %v2174_v58 = vsel %vm4865_vm14, %v4864_v10, %v2171_v24 }
 0x751   :  { %v2059_v38 = vadd.f32 %v2054_v33, %v2035_v40  ;;  %v4872_v33 = vld [vmem:[#allocation8_spill] sm:$0xff] }
 0x753   :  { %v2053_v34 = vpop.permute.xlu1 %2052  ;;  %v2083_v12 = vadd.f32 %v2078_v9, %v2059_v38 }
 0x754   :  { %v2055_v43 = vsel %vm4860_vm6, %v2051_v62, %v2053_v34  ;;  %v2061_v56 = vadd.f32 %v2053_v34, %v2037_v1  ;;  %vm4877_vm6 = vmmov %vm4866_vm15 }
 0x755   :  { %v2107_v25 = vadd.f32 %v2102_v48, %v2083_v12  ;;  %v2060_v45 = vadd.f32 %v2055_v43, %v2036_v0  ;;  %v4874_v12 = vld [vmem:[#allocation18_spill] sm:$0xff]  ;;  %vm4878_vm9 = vmmov %vm4877_vm6 }
 0x757   :  { %v2131_v60 = vadd.f32 %v2126_v15, %v2107_v25  ;;  %v2195_v14 = vpop.permute.xlu0 %2194  ;;  %v4875_v25 = vld [vmem:[#allocation15_spill] sm:$0xff] }
 0x758   :  { %v2198_v20 = vsel %vm395_vm12, %v2193_v16, %v2195_v14 }
 0x759   :  { %v2155_v57 = vadd.f32 %v2150_v21, %v2131_v60 }
 0x75b   :  { %v2077_v51 = vpop.permute.xlu1 %2076  ;;  %v2179_v54 = vadd.f32 %v2174_v58, %v2155_v57 }
 0x75c   :  { %v2079_v49 = vsel %vm4862_vm11, %v2075_v53, %v2077_v51  ;;  %v2085_v5 = vadd.f32 %v2077_v51, %v2061_v56 }
 0x75d   :  { %v2084_v19 = vadd.f32 %v2079_v49, %v2060_v45  ;;  %v2203_v8 = vadd.f32 %v2198_v20, %v2179_v54 }
 0x75f   :  { %v2219_v61 = vpop.permute.xlu0 %2218 }
 0x760   :  { %v2222_v52 = vsel %vm420_vm13, %v2217_v39, %v2219_v61 }
 0x761   :  { %v4495_v41 = vadd.f32 %v2222_v52, %v2203_v8 }
 0x763   :  { %v2101_v50 = vpop.permute.xlu1 %2100 }
 0x764   :  { %v2103_v26 = vsel %vm4863_vm7, %v2099_v3, %v2101_v50  ;;  %v2109_v35 = vadd.f32 %v2101_v50, %v2085_v5  ;;  %v2230_v3 = vsel %vm3656_vm0, %v4495_v41, 0.0 }
 0x765   :  { %v2108_v17 = vadd.f32 %v2103_v26, %v2084_v19 }
 0x76b   :  { %v2125_v27 = vpop.permute.xlu1 %2124 }
 0x76c   :  { %v2127_v46 = vsel %vm4866_vm15, %v2123_v4, %v2125_v27  ;;  %v2133_v36 = vadd.f32 %v2125_v27, %v2109_v35 }
 0x76d   :  { %v2132_v22 = vadd.f32 %v2127_v46, %v2108_v17 }
 0x773   :  { %v2149_v47 = vpop.permute.xlu1 %2148 }
 0x774   :  { %v2151_v1 = vsel %vm4867_vm5, %v2147_v2, %v2149_v47  ;;  %v2157_v63 = vadd.f32 %v2149_v47, %v2133_v36 }
 0x775   :  { %v2156_v30 = vadd.f32 %v2151_v1, %v2132_v22 }
 0x77b   :  { %v2173_v13 = vpop.permute.xlu1 %2172 }
 0x77c   :  { %v2175_v55 = vsel %vm4868_vm10, %v2171_v24, %v2173_v13  ;;  %v2181_v6 = vadd.f32 %v2173_v13, %v2157_v63 }
 0x77d   :  { %v2180_v32 = vadd.f32 %v2175_v55, %v2156_v30 }
 0x783   :  { %v2197_v42 = vpop.permute.xlu1 %2196 }
 0x784   :  { %v2199_v29 = vsel %vm395_vm12, %v2195_v14, %v2197_v42  ;;  %v2205_v28 = vadd.f32 %v2197_v42, %v2181_v6 }
 0x785   :  { %v2204_v7 = vadd.f32 %v2199_v29, %v2180_v32 }
 0x78b   :  { %v2221_v53 = vpop.permute.xlu1 %2220 }
 0x78c   :  { %v2223_v37 = vsel %vm420_vm13, %v2219_v61, %v2221_v53  ;;  %v4498_v31 = vadd.f32 %v2221_v53, %v2205_v28 }
 0x78d   :  { %v4500_v11 = vadd.f32 %v2223_v37, %v2204_v7 }
 0x78e   :  { %v2232_v0 = vsel %vm3662_vm4, %v4498_v31, 0.0 }
 0x78f   :  { %v2231_v4 = vsel %vm3669_vm1, %v4500_v11, 0.0  ;;  %v2234_v2 = vsel %vm1048_vm3, %v2232_v0, 0.0 }
 0x790   :  { %v2233_v50 = vadd.f32 %v2231_v4, %v2230_v3 }
 0x792   :  { %v2235_v62 = vadd.f32 %v2234_v2, %v2233_v50 }
 0x794   :  { %2236 = vadd.xlane.f32.xlu2 %v2235_v62 }
 0x807   :  { %v2237_v27 = vpop.xlane.xlu2 %2236 }
 0x808   :  { %v2268_v38 = vmul.f32 %v4872_v33, %v2237_v27  ;;  %v2253_v9 = vmul.f32 %v4873_v18, %v2237_v27  ;;  %v2238_v47 = vmul.f32 %v4874_v12, %v2237_v27  ;;  %v2283_v59 = vmul.f32 %v4875_v25, %v2237_v27 }
 0x80a   :  { %v2269_v24 = vsel %vm1054_vm2, %v2268_v38, 0.0  ;;  %v2254_v23 = vsel %vm1054_vm2, %v2253_v9, 0.0  ;;  %v2239_v48 = vsel %vm1054_vm2, %v2238_v47, 0.0  ;;  %v2284_v15 = vsel %vm1054_vm2, %v2283_v59, 0.0 }
 0x80b   :  { %2270 = vadd.xlane.f32.xlu2 %v2269_v24  ;;  %2255 = vadd.xlane.f32.xlu1 %v2254_v23 }
 0x80c   :  { %2240 = vadd.xlane.f32.xlu0 %v2239_v48 }
 0x814   :  { %2285 = vadd.xlane.f32.xlu0 %v2284_v15 }
 0x87e   :  { %v2271_v60 = vpop.xlane.xlu2 %2270  ;;  %v2256_v13 = vpop.xlane.xlu1 %2255 }
 0x87f   :  { %v2272_v43 = vrot.slane %v2271_v60, 4  ;;  %v2257_v16 = vrot.slane %v2256_v13, 4  ;;  %v2241_v44 = vpop.xlane.xlu0 %2240 }
 0x880   :  { %v2242_v21 = vrot.slane %v2241_v44, 4 }
 0x881   :  { %v2273_v56 = vadd.f32 %v2272_v43, %v2271_v60  ;;  %v2258_v49 = vadd.f32 %v2257_v16, %v2256_v13 }
 0x882   :  { %v2243_v14 = vadd.f32 %v2242_v21, %v2241_v44  ;;  %v4557_v44 = vld [vmem:[%s4604_s2] sm:$0xff] }
 0x883   :  { %v2274_v45 = vrot.slane %v2273_v56, 2  ;;  %v2259_v57 = vrot.slane %v2258_v49, 2 }
 0x884   :  { %v2244_v5 = vrot.slane %v2243_v14, 2 }
 0x885   :  { %v2260_v26 = vadd.f32 %v2259_v57, %v2258_v49  ;;  %v2275_v19 = vadd.f32 %v2274_v45, %v2273_v56 }
 0x886   :  { %v2245_v10 = vadd.f32 %v2244_v5, %v2243_v14 }
 0x887   :  { %v2286_v58 = vpop.xlane.xlu0 %2285  ;;  %v2261_v35 = vrot.slane %v2260_v26, 1  ;;  %v2276_v46 = vrot.slane %v2275_v19, 1 }
 0x888   :  { %v2287_v17 = vrot.slane %v2286_v58, 4  ;;  %v2246_v42 = vrot.slane %v2245_v10, 1 }
 0x889   :  { %v2262_v54 = vadd.f32 %v2261_v35, %v2260_v26  ;;  %v2277_v22 = vadd.f32 %v2276_v46, %v2275_v19 }
 0x88a   :  { %v2288_v36 = vadd.f32 %v2287_v17, %v2286_v58  ;;  %v2247_v1 = vadd.f32 %v2246_v42, %v2245_v10 }
 0x88c   :  { %v2289_v20 = vrot.slane %v2288_v36, 2  ;;  %2486 = vpush %v2247_v1 }
 0x88d   :  { %2488 = vpush %v2262_v54 }
 0x88e   :  { %2490 = vpush %v2277_v22  ;;  %v2290_v63 = vadd.f32 %v2289_v20, %v2288_v36 }
 0x890   :  { %v2291_v55 = vrot.slane %v2290_v63, 1 }
 0x892   :  { %v2292_v39 = vadd.f32 %v2291_v55, %v2290_v63 }
 0x894   :  { %2492 = vpush %v2292_v39 }
 0x8bd   :  { %s2487_s18 = spop %2486 }
 0x8be   :  { %v2249_v30 = vstv %s2487_s18  ;;  %s2489_s19 = spop %2488 }
 0x8bf   :  { %v2250_v8 = vmul.f32 0.001953125, %v2249_v30  ;;  %v2264_v6 = vstv %s2489_s19  ;;  %s2491_s20 = spop %2490 }
 0x8c0   :  { %v2265_v29 = vmul.f32 0.001953125, %v2264_v6  ;;  %v2279_v61 = vstv %s2491_s20 }
 0x8c1   :  { %v2251_v32 = vmul.f32 %v4874_v12, %v2250_v8  ;;  %v2280_v28 = vmul.f32 0.001953125, %v2279_v61 }
 0x8c2   :  { %v2266_v52 = vmul.f32 %v4873_v18, %v2265_v29 }
 0x8c3   :  { %v2281_v37 = vmul.f32 %v4872_v33, %v2280_v28 }
 0x8c4   :  { %v2267_v7 = vadd.f32 %v2266_v52, %v2251_v32 }
 0x8c5   :  { %s2493_s25 = spop %2492 }
 0x8c6   :  { %v2294_v53 = vstv %s2493_s25  ;;  %v2282_v3 = vadd.f32 %v2281_v37, %v2267_v7 }
 0x8c7   :  { %v2295_v0 = vmul.f32 0.001953125, %v2294_v53 }
 0x8c9   :  { %v2296_v4 = vmul.f32 %v4875_v25, %v2295_v0 }
 0x8cb   :  { %v2297_v50 = vadd.f32 %v2296_v4, %v2282_v3 }
 0x8cd   :  { %v4525_v2 = vsub.f32 %v4495_v41, %v2297_v50  ;;  %v4528_v62 = vsub.f32 %v4500_v11, %v2297_v50  ;;  %v4531_v27 = vsub.f32 %v4498_v31, %v2297_v50 }
 0x8cf   :  { %v2301_v38 = vmul.f32 %v4525_v2, %v4525_v2  ;;  %v2302_v9 = vmul.f32 %v4528_v62, %v4528_v62  ;;  %v2303_v47 = vmul.f32 %v4531_v27, %v4531_v27 }
 0x8d1   :  { %v2304_v24 = vsel %vm3656_vm0, %v2301_v38, 0.0  ;;  %v2305_v41 = vsel %vm3669_vm1, %v2302_v9, 0.0  ;;  %v2306_v11 = vsel %vm3662_vm4, %v2303_v47, 0.0 }
 0x8d2   :  { %v2307_v31 = vadd.f32 %v2305_v41, %v2304_v24  ;;  %v2308_v23 = vsel %vm1048_vm3, %v2306_v11, 0.0 }
 0x8d4   :  { %v2309_v48 = vadd.f32 %v2308_v23, %v2307_v31 }
 0x8d6   :  { %2310 = vadd.xlane.f32.xlu1 %v2309_v48 }
 0x949   :  { %v2311_v59 = vpop.xlane.xlu1 %2310 }
 0x94a   :  { %v2342_v15 = vmul.f32 %v4872_v33, %v2311_v59  ;;  %v2327_v60 = vmul.f32 %v4873_v18, %v2311_v59  ;;  %v2312_v13 = vmul.f32 %v4874_v12, %v2311_v59  ;;  %v2357_v40 = vmul.f32 %v4875_v25, %v2311_v59 }
 0x94c   :  { %v2343_v34 = vsel %vm1054_vm2, %v2342_v15, 0.0  ;;  %v2328_v51 = vsel %vm1054_vm2, %v2327_v60, 0.0  ;;  %v2313_v43 = vsel %vm1054_vm2, %v2312_v13, 0.0  ;;  %v2358_v16 = vsel %vm1054_vm2, %v2357_v40, 0.0 }
 0x94d   :  { %2344 = vadd.xlane.f32.xlu1 %v2343_v34  ;;  %2329 = vadd.xlane.f32.xlu0 %v2328_v51 }
 0x94e   :  { %2314 = vadd.xlane.f32.xlu2 %v2313_v43 }
 0x956   :  { %2359 = vadd.xlane.f32.xlu2 %v2358_v16 }
 0x966   :  { %2393 = vperm.xlu1 %2625, %v4557_v44  }
 0x9c0   :  { %v2345_v21 = vpop.xlane.xlu1 %2344  ;;  %v2330_v56 = vpop.xlane.xlu0 %2329 }
 0x9c1   :  { %v2346_v49 = vrot.slane %v2345_v21, 4  ;;  %v2331_v14 = vrot.slane %v2330_v56, 4  ;;  %v2315_v45 = vpop.xlane.xlu2 %2314 }
 0x9c2   :  { %v2316_v57 = vrot.slane %v2315_v45, 4 }
 0x9c3   :  { %v2347_v5 = vadd.f32 %v2346_v49, %v2345_v21  ;;  %v2332_v26 = vadd.f32 %v2331_v14, %v2330_v56  ;;  %v2400_v14 = vld [vmem:[%s4603_s0 + $0x8] sm:$0xff] }
 0x9c4   :  { %v2317_v19 = vadd.f32 %v2316_v57, %v2315_v45 }
 0x9c5   :  { %v2348_v10 = vrot.slane %v2347_v5, 2  ;;  %v2333_v58 = vrot.slane %v2332_v26, 2 }
 0x9c6   :  { %v2318_v35 = vrot.slane %v2317_v19, 2 }
 0x9c7   :  { %v2334_v46 = vadd.f32 %v2333_v58, %v2332_v26  ;;  %v2349_v17 = vadd.f32 %v2348_v10, %v2347_v5 }
 0x9c8   :  { %v2319_v42 = vadd.f32 %v2318_v35, %v2317_v19 }
 0x9c9   :  { %v2360_v54 = vpop.xlane.xlu2 %2359  ;;  %v2335_v36 = vrot.slane %v2334_v46, 1  ;;  %v2350_v1 = vrot.slane %v2349_v17, 1 }
 0x9ca   :  { %v2361_v22 = vrot.slane %v2360_v54, 4  ;;  %v2320_v20 = vrot.slane %v2319_v42, 1 }
 0x9cb   :  { %v2336_v63 = vadd.f32 %v2335_v36, %v2334_v46  ;;  %v2351_v30 = vadd.f32 %v2350_v1, %v2349_v17 }
 0x9cc   :  { %v2362_v55 = vadd.f32 %v2361_v22, %v2360_v54  ;;  %v2321_v39 = vadd.f32 %v2320_v20, %v2319_v42  ;;  %v4879_v20 = vmov 0.0  }
 0x9ce   :  { %v2363_v8 = vrot.slane %v2362_v55, 2  ;;  %2494 = vpush %v2321_v39 }
 0x9cf   :  { %2496 = vpush %v2336_v63 }
 0x9d0   :  { %2498 = vpush %v2351_v30  ;;  %v2364_v6 = vadd.f32 %v2363_v8, %v2362_v55 }
 0x9d2   :  { %v2365_v29 = vrot.slane %v2364_v6, 1 }
 0x9d4   :  { %v2366_v61 = vadd.f32 %v2365_v29, %v2364_v6 }
 0x9d6   :  { %2500 = vpush %v2366_v61 }
 0x9ff   :  { %s2495_s2 = spop %2494 }
 0xa00   :  { %v2323_v32 = vstv %s2495_s2  ;;  %s2497_s29 = spop %2496 }
 0xa01   :  { %v2324_v52 = vmul.f32 0.001953125, %v2323_v32  ;;  %v2338_v28 = vstv %s2497_s29  ;;  %s2499_s4 = spop %2498 }
 0xa02   :  { %v2339_v7 = vmul.f32 0.001953125, %v2338_v28  ;;  %v2353_v53 = vstv %s2499_s4 }
 0xa03   :  { %v2325_v37 = vmul.f32 %v4874_v12, %v2324_v52  ;;  %v2354_v3 = vmul.f32 0.001953125, %v2353_v53 }
 0xa04   :  { %v2340_v0 = vmul.f32 %v4873_v18, %v2339_v7 }
 0xa05   :  { %v2355_v38 = vmul.f32 %v4872_v33, %v2354_v3  ;;  %v4876_v33 = vmov 37  }
 0xa06   :  { %v2341_v4 = vadd.f32 %v2340_v0, %v2325_v37 }
 0xa07   :  { %s2501_s5 = spop %2500 }
 0xa08   :  { %v2368_v50 = vstv %s2501_s5  ;;  %v2356_v47 = vadd.f32 %v2355_v38, %v2341_v4 }
 0xa09   :  { %v2369_v9 = vmul.f32 0.001953125, %v2368_v50 }
 0xa0b   :  { %v2370_v24 = vmul.f32 %v4875_v25, %v2369_v9  ;;  %v2394_v25 = vpop.permute.xlu1 %2393 }
 0xa0d   :  { %v2371_v41 = vadd.f32 %v2370_v24, %v2356_v47 }
 0xa0f   :  { %v2372_v11 = vadd.f32 1e-05, %v2371_v41 }
 0xa11   :  { %2629 = vrsqrt.f32 %v2372_v11  ;;  %vm2379_vm13 = vweird.f32 %v2372_v11 }
 0xa17   :  { %v2630_v31 = vpop.eup %2629 }
 0xa18   :  { %v2374_v23 = vmul.f32 %v2630_v31, %v2372_v11  ;;  %vm2380_vm12 = vweird.f32 %v2630_v31 }
 0xa19   :  { %vm2381_vm0 = vmor %vm2379_vm13, %vm2380_vm12 }
 0xa1a   :  { %v2375_v48 = vmul.f32 %v2630_v31, %v2374_v23 }
 0xa1c   :  { %v2376_v59 = vmul.f32 0.5, %v2375_v48 }
 0xa1e   :  { %v2377_v12 = vsub.f32 1.5, %v2376_v59 }
 0xa20   :  { %v2378_v18 = vmul.f32 %v2630_v31, %v2377_v12 }
 0xa22   :  { %v2382_v15 = vsel %vm2381_vm0, %v2630_v31, %v2378_v18 }
 0xa23   :  { %v2383_v60 = vmul.f32 %v4557_v44, %v2382_v15  ;;  %v2399_v44 = vld [vmem:[%s4603_s0] sm:$0xff] }
 0xa25   :  { %2386 = vperm.xlu0 %2624, %v2383_v60  }
 0xa2d   :  { %2626 = vset.pattern.permute.xlu0 %v4876_v33 }
 0xa97   :  { %v2387_v13 = vpop.permute.xlu0 %2386 }
 0xa98   :  { %v2389_v34 = vmul.f32 %v2387_v13, %v4525_v2  ;;  %v2390_v51 = vmul.f32 %v2387_v13, %v4528_v62  ;;  %v2391_v16 = vmul.f32 %v2387_v13, %v4531_v27  ;;  %v2401_v27 = vld [vmem:[%s4603_s0 + $0x10] sm:$0xff] }
 0xa9a   :  { %v2396_v43 = vadd.f32 %v2394_v25, %v2389_v34  ;;  %v2397_v40 = vadd.f32 %v2394_v25, %v2390_v51  ;;  %v2398_v21 = vadd.f32 %v2394_v25, %v2391_v16 }
 0xa9c   :  { %2407 = vrot.lane.b32.xlu1 %v2397_v40, %s2680_s30  ;;  %2405 = vrot.lane.b32.xlu2 %v2396_v43, %s2680_s30 }
 0xaa4   :  { %2409 = vrot.lane.b32.xlu2 %v2398_v21, %s2680_s30 }
 0xaf6   :  { %v2406_v56 = vpop.permute.xlu2 %2405 }
 0xaf7   :  { %v2416_v49 = vadd.f32 %v2406_v56, %v2399_v44 }
 0xaf9   :  { %v2422_v2 = vmul.f32 0.01, %v2416_v49  ;;  %vm2419_vm4 = vcmp.ge.f32.partialorder %v2416_v49, 0.0 }
 0xafb   :  { %v2425_v62 = vsel %vm2419_vm4, %v2416_v49, %v2422_v2 }
 0xafc   :  { %2431 = vrot.lane.b32.xlu1 %v2425_v62, %s2667_s28 }
 0xafe   :  { %v2410_v45 = vpop.permute.xlu2 %2409 }
 0xb0e   :  { %v2408_v57 = vpop.permute.xlu1 %2407 }
 0xb0f   :  { %v2411_v5 = vsel %vm1265_vm8, %v2406_v56, %v2408_v57  ;;  %v2412_v26 = vsel %vm1265_vm8, %v2408_v57, %v2410_v45  ;;  %vm2445_vm8 = vcmask 1048096  }
 0xb10   :  { %v2417_v19 = vadd.f32 %v2411_v5, %v2400_v14  ;;  %v2418_v10 = vadd.f32 %v2412_v26, %v2401_v27 }
 0xb12   :  { %v2423_v58 = vmul.f32 0.01, %v2417_v19  ;;  %v2424_v35 = vmul.f32 0.01, %v2418_v10  ;;  %vm2420_vm1 = vcmp.ge.f32.partialorder %v2417_v19, 0.0  ;;  %vm2421_vm2 = vcmp.ge.f32.partialorder %v2418_v10, 0.0 }
 0xb14   :  { %v2426_v46 = vsel %vm2420_vm1, %v2417_v19, %v2423_v58  ;;  %v2427_v17 = vsel %vm2421_vm2, %v2418_v10, %v2424_v35 }
 0xb15   :  { %2433 = vrot.lane.b32.xlu2 %v2426_v46, %s2667_s28  ;;  %2435 = vrot.lane.b32.xlu0 %v2427_v17, %s2667_s28 }
 0xb6e   :  { %v2432_v42 = vpop.permute.xlu1 %2431 }
 0xb6f   :  { %v2434_v54 = vpop.permute.xlu2 %2433 }
 0xb70   :  { %v2437_v36 = vsel %vm4877_vm6, %v2432_v42, %v2434_v54 }
 0xb71   :  { %2442 = vst [vmem:[%s4605_s3] sm:$0xff] %v2437_v36 }
 0xb87   :  { %v2436_v1 = vpop.permute.xlu0 %2435 }
 0xb88   :  { %v2438_v22 = vsel %vm4878_vm9, %v2434_v54, %v2436_v1  ;;  %2444 = vst.msk [vmem:[%s4605_s3 + $0x10] sm:$0xff] %vm1048_vm3, %v2436_v1 }
 0xb89   :  { %2443 = vst [vmem:[%s4605_s3 + $0x8] sm:$0xff] %v2438_v22 }
 0xb8a   :  { %2446 = vst.msk [vmem:[%s4605_s3 + $0x10] sm:$0xff] %vm2445_vm8, %v4879_v20 }

</bundles_post_ra>
